<compile_context>
chip_gen: v7x
topology: tpu7x:2x2x1
jax: 0.10.0
libtpu: 0.0.40
codegen_flags: <defaults>
</compile_context>

<pallas_src>
import functools

import jax
import jax.numpy as jnp
from jax.experimental import pallas as pl
from jax.experimental.pallas import tpu as pltpu


# ------------------------------------------------------------------ fused edge-conv layer

def edge_layer_kernel(feat_ref, q_ref, wd_ref, wc_ref, shift_ref, out_ref, *, k):
    """One DGCNN block for a (batch b, query-tile q) grid cell.

    feat_ref : (1, N, C)    full per-batch feature map (resident across query tiles)
    q_ref    : (1, TQ, C)   query tile (a slice of the same feature map)
    wd/wc    : (C, Cout)    BN-scale-folded weights for (feature - x) and x
    shift    : (1, Cout)    folded BN shift
    out_ref  : (1, TQ, Cout)
    """
    feat_st = feat_ref[0]                            # (N, C) storage dtype (bf16 / f32)
    q_st = q_ref[0]                                  # (TQ, C)
    feat32 = feat_st.astype(jnp.float32)
    q32 = q_st.astype(jnp.float32)
    n = feat32.shape[0]
    tq = q32.shape[0]

    # Negative squared pairwise distance for this query tile (kNN criterion), in f32.
    gram = jnp.dot(q32, feat32.T, preferred_element_type=jnp.float32)    # (TQ, N)
    qq = jnp.sum(q32 * q32, axis=-1, keepdims=True)                      # (TQ, 1)
    ff = jnp.sum(feat32 * feat32, axis=-1, keepdims=True)                # (N, 1)
    dist = 2.0 * gram - qq - ff.T                                        # (TQ, N)

    wd = wd_ref[...].astype(jnp.bfloat16)            # (C, Cout)
    wc = wc_ref[...].astype(jnp.bfloat16)
    shift = shift_ref[...]                           # (1, Cout) f32
    cout = wd.shape[1]

    # Center-point projection is shared across the k neighbors.
    h_ctr = jnp.dot(q_st.astype(jnp.bfloat16), wc,
                    preferred_element_type=jnp.float32)                  # (TQ, Cout)

    col = jax.lax.broadcasted_iota(jnp.int32, (tq, n), 1)
    acc = jnp.full((tq, cout), float("-inf"), jnp.float32)

    # Iterative k-nearest selection fused with the edge convolution: each step picks
    # the closest remaining neighbor per query row (lowest-index tie-break), gathers
    # it via a one-hot matmul (stays in VMEM; no HBM (B,k,N,C) tensor), applies the
    # conv + shift + LeakyReLU and folds it into the running max.  k is small/static.
    for _ in range(k):
        mx = jnp.max(dist, axis=-1, keepdims=True)                       # (TQ, 1)
        pick = jnp.min(jnp.where(dist >= mx, col, n), axis=-1,
                       keepdims=True)                                    # (TQ, 1)
        sel = col == pick                                                # one True per row
        onehot = jnp.where(sel, 1.0, 0.0).astype(feat_st.dtype)          # (TQ, N)
        nbr = jnp.dot(onehot, feat_st,
                      preferred_element_type=jnp.float32)                # (TQ, C) exact gather
        diff = (nbr - q32).astype(jnp.bfloat16)
        h = jnp.dot(diff, wd, preferred_element_type=jnp.float32) + h_ctr + shift
        h = jnp.maximum(h, 0.2 * h)                                      # LeakyReLU(0.2)
        acc = jnp.maximum(acc, h)
        dist = jnp.where(sel, float("-inf"), dist)                       # drop picked neighbor

    out_ref[0] = acc.astype(out_ref.dtype)


def _pick_query_tile(n, cap=256):
    """Largest query-tile size <= cap that divides n (multiple of 16 for bf16 tiling)."""
    if n <= cap:
        return n
    t = cap - cap % 16
    while t >= 16:
        if n % t == 0:
            return t
        t -= 16
    return n


def fused_edge_layer(feat, wd, wc, shift, k, *, out_dtype=jnp.bfloat16):
    # feat: (B, N, C) -> (B, N, Cout)
    B, N, C = feat.shape
    Cout = wd.shape[1]
    tq = _pick_query_tile(N)
    kernel = functools.partial(edge_layer_kernel, k=k)
    return pl.pallas_call(
        kernel,
        out_shape=jax.ShapeDtypeStruct((B, N, Cout), out_dtype),
        grid=(B, N // tq),
        in_specs=[
            pl.BlockSpec((1, N, C), lambda b, q: (b, 0, 0)),    # full map, resident over q
            pl.BlockSpec((1, tq, C), lambda b, q: (b, q, 0)),   # query tile
            pl.BlockSpec((C, Cout), lambda b, q: (0, 0)),
            pl.BlockSpec((C, Cout), lambda b, q: (0, 0)),
            pl.BlockSpec((1, Cout), lambda b, q: (0, 0)),
        ],
        out_specs=pl.BlockSpec((1, tq, Cout), lambda b, q: (b, q, 0)),
        compiler_params=pltpu.CompilerParams(
            dimension_semantics=("parallel", "parallel"),
            vmem_limit_bytes=48 * 1024 * 1024,   # safe headroom on v7x (64 MiB physical)
        ),
    )(feat, feat, wd, wc, shift)


# ------------------------------------------------------------------------------- head

def head_kernel(x1_ref, x2_ref, x3_ref, x4_ref,
                w1_ref, w2_ref, w3_ref, w4_ref, shift_ref, out_ref):
    # conv5 on cat(x1..x4) WITHOUT materializing the concat: sum of four matmuls
    # against row-slices of the BN-scale-folded 512xE weight, then pooling.
    def proj(x_ref, w_ref):
        return jnp.dot(x_ref[0].astype(jnp.bfloat16),
                       w_ref[...].astype(jnp.bfloat16),
                       preferred_element_type=jnp.float32)

    h = proj(x1_ref, w1_ref) + proj(x2_ref, w2_ref) + proj(x3_ref, w3_ref) + proj(x4_ref, w4_ref)
    h = h + shift_ref[...]
    h = jnp.maximum(h, 0.2 * h)                                   # LeakyReLU(0.2)
    n = x1_ref.shape[1]
    mx = jnp.max(h, axis=0, keepdims=True)                        # adaptive_max_pool1d(., 1)
    av = jnp.sum(h, axis=0, keepdims=True) / float(n)             # adaptive_avg_pool1d(., 1)
    out_ref[0] = jnp.concatenate([mx, av], axis=0)                # (2, E): row0=max, row1=avg


def head(x1, x2, x3, x4, w5a, w5b, w5c, w5d, shift):
    # xi: (B, N, Ci)  w5*: (Ci, E)  -> (B, 2, E)
    # TODO(synk): head is one block per batch (no N tiling); fine at DGCNN point counts.
    B, N, _ = x1.shape
    E = w5a.shape[1]
    in_specs = (
        [pl.BlockSpec((1, N, x1.shape[2]), lambda b: (b, 0, 0)),
         pl.BlockSpec((1, N, x2.shape[2]), lambda b: (b, 0, 0)),
         pl.BlockSpec((1, N, x3.shape[2]), lambda b: (b, 0, 0)),
         pl.BlockSpec((1, N, x4.shape[2]), lambda b: (b, 0, 0))]
        + [pl.BlockSpec(w.shape, lambda b: (0, 0)) for w in (w5a, w5b, w5c, w5d)]
        + [pl.BlockSpec((1, E), lambda b: (0, 0))]
    )
    return pl.pallas_call(
        head_kernel,
        out_shape=jax.ShapeDtypeStruct((B, 2, E), jnp.float32),
        grid=(B,),
        in_specs=in_specs,
        out_specs=pl.BlockSpec((1, 2, E), lambda b: (b, 0, 0)),
        compiler_params=pltpu.CompilerParams(dimension_semantics=("parallel",)),
    )(x1, x2, x3, x4, w5a, w5b, w5c, w5d, shift)


# ------------------------------------------------------------------------------- model

@functools.partial(jax.jit, static_argnames=("k",))
def dgcnn_forward(x_bcn, params, k):
    # x_bcn: (B, 3, N) PyTorch layout.  Kernels use channel-last (B, N, C).
    B = x_bcn.shape[0]
    x = jnp.transpose(x_bcn, (0, 2, 1)).astype(jnp.float32)   # keep xyz in f32 for kNN fidelity
    x1 = fused_edge_layer(x,  params["w1d"], params["w1c"], params["o1"], k)   # (B, N, 64)
    x2 = fused_edge_layer(x1, params["w2d"], params["w2c"], params["o2"], k)   # (B, N, 64)
    x3 = fused_edge_layer(x2, params["w3d"], params["w3c"], params["o3"], k)   # (B, N, 128)
    x4 = fused_edge_layer(x3, params["w4d"], params["w4c"], params["o4"], k)   # (B, N, 256)
    pooled = head(x1, x2, x3, x4,
                  params["w5a"], params["w5b"], params["w5c"], params["w5d"], params["o5"])
    return pooled.reshape(B, -1)                               # (B, 2E) = [max-pool || avg-pool]


# ------------------------------------------------------------------------------- params

def init_params(key, size_encoder):
    # Deterministic synthetic parameters matching the module's layer shapes.
    # Conv weights stored channel-last: for a real checkpoint W (Cout, 2*Cin, 1, 1) the
    # mapping is wd = W[:, :Cin, 0, 0].T, wc = W[:, Cin:, 0, 0].T  (cat((feature-x, x), dim=1)).
    # BatchNorm is inference-mode: (gamma, beta, running stats) folded to scale/shift; the
    # scale is folded into the weight columns, only the shift is applied in-kernel.
    # TODO(synk): training-mode BatchNorm (batch statistics over B*N*k) not reproduced.
    eps = 1e-5
    keys = jax.random.split(key, 10)

    def conv_w(k_, cin, cout):
        return jax.random.normal(k_, (cin, cout), jnp.float32) / jnp.sqrt(float(cin))

    def bn(k_, c):
        kg, kb, km, kv = jax.random.split(k_, 4)
        gamma = 1.0 + 0.1 * jax.random.normal(kg, (c,), jnp.float32)
        beta = 0.1 * jax.random.normal(kb, (c,), jnp.float32)
        mean = 0.1 * jax.random.normal(km, (c,), jnp.float32)
        var = jnp.abs(jax.random.normal(kv, (c,), jnp.float32)) + 0.5
        scale = gamma / jnp.sqrt(var + eps)
        shift = beta - mean * scale
        return scale, shift

    p = {}
    specs = [("1", 3, 64), ("2", 64, 64), ("3", 64, 128), ("4", 128, 256)]
    for i, (name, cin, cout) in enumerate(specs):
        wd = conv_w(jax.random.fold_in(keys[2 * i], 0), cin, cout)
        wc = conv_w(jax.random.fold_in(keys[2 * i], 1), cin, cout)
        scale, shift = bn(keys[2 * i + 1], cout)
        p[f"w{name}d"] = wd * scale[None, :]
        p[f"w{name}c"] = wc * scale[None, :]
        p[f"o{name}"] = shift.reshape(1, cout)

    E = size_encoder
    w5 = conv_w(keys[8], 512, E)
    scale5, shift5 = bn(keys[9], E)
    w5 = w5 * scale5[None, :]
    p["w5a"] = w5[0:64]       # rows for x1
    p["w5b"] = w5[64:128]     # rows for x2
    p["w5c"] = w5[128:256]    # rows for x3
    p["w5d"] = w5[256:512]    # rows for x4
    p["o5"] = shift5.reshape(1, E)
    return p


# --------------------------------------------------------------------------------- main

if __name__ == "__main__":
    B, C_in, N = 2, 3, 16          # point cloud: batch=2, xyz channels, 16 points
    k = 4                          # args.k
    size_encoder = 32              # args.size_encoder

    key = jax.random.PRNGKey(0)
    k_x, k_p = jax.random.split(key)
    x = jax.random.normal(k_x, (B, C_in, N), jnp.float32)   # PyTorch layout (B, C, N)
    params = init_params(k_p, size_encoder)

    out = dgcnn_forward(x, params, k)
    out = jax.block_until_ready(out)
    assert out.shape == (B, size_encoder * 2), out.shape
    assert bool(jnp.all(jnp.isfinite(out)))
    print("KERNEL_OK")
</pallas_src>

<mosaic_0001>
module attributes {stable_mosaic.version = 11 : i64} {
  func.func @edge_layer_kernel(%arg0: i32, %arg1: i32, %arg2: memref<1x16x3xf32, #tpu.memory_space<vmem>>, %arg3: memref<1x16x3xf32, #tpu.memory_space<vmem>>, %arg4: memref<3x64xf32, #tpu.memory_space<vmem>>, %arg5: memref<3x64xf32, #tpu.memory_space<vmem>>, %arg6: memref<1x64xf32, #tpu.memory_space<vmem>>, %arg7: memref<1x16x64xbf16, #tpu.memory_space<vmem>>) attributes {dimension_semantics = [#tpu.dimension_semantics<parallel>, #tpu.dimension_semantics<parallel>], iteration_bounds = array<i64: 2, 1>, scalar_prefetch = 0 : i64, scratch_operands = 0 : i64, tpu.core_type = #tpu.core_type<tc>, window_params = [{transform_indices = @transform_0, window_bounds = array<i64: 1, 16, 3>}, {transform_indices = @transform_1, window_bounds = array<i64: 1, 16, 3>}, {pipeline_mode = #tpu.pipeline_mode<synchronous>, transform_indices = @transform_2, window_bounds = array<i64: 3, 64>}, {pipeline_mode = #tpu.pipeline_mode<synchronous>, transform_indices = @transform_3, window_bounds = array<i64: 3, 64>}, {pipeline_mode = #tpu.pipeline_mode<synchronous>, transform_indices = @transform_4, window_bounds = array<i64: 1, 64>}, {transform_indices = @transform_5, window_bounds = array<i64: 1, 16, 64>}]} {
    %c0 = arith.constant 0 : index
    %c0_0 = arith.constant 0 : index
    %c0_1 = arith.constant 0 : index
    %0 = vector.load %arg2[%c0, %c0_0, %c0_1] : memref<1x16x3xf32, #tpu.memory_space<vmem>>, vector<1x16x3xf32>
    %1 = vector.shape_cast %0 : vector<1x16x3xf32> to vector<16x3xf32>
    %c0_2 = arith.constant 0 : index
    %c0_3 = arith.constant 0 : index
    %c0_4 = arith.constant 0 : index
    %2 = vector.load %arg3[%c0_2, %c0_3, %c0_4] : memref<1x16x3xf32, #tpu.memory_space<vmem>>, vector<1x16x3xf32>
    %3 = vector.shape_cast %2 : vector<1x16x3xf32> to vector<16x3xf32>
    %4 = tpu.transpose %1, [1, 0] : vector<16x3xf32> -> vector<3x16xf32>
    %cst = arith.constant dense<0.000000e+00> : vector<16x16xf32>
    %5 = tpu.matmul %3, %4, %cst {dimension_numbers = #tpu.dot_dimension_numbers<[1], [0], [0], [1], [0, 0, 1, 1], [], []>} : vector<16x3xf32>, vector<3x16xf32>, vector<16x16xf32> -> vector<16x16xf32>
    %6 = arith.mulf %3, %3 : vector<16x3xf32>
    %cst_5 = arith.constant dense<0.000000e+00> : vector<16xf32>
    %7 = vector.multi_reduction <add>, %6, %cst_5 [1] : vector<16x3xf32> to vector<16xf32>
    %8 = vector.shape_cast %7 : vector<16xf32> to vector<16x1xf32>
    %9 = arith.mulf %1, %1 : vector<16x3xf32>
    %cst_6 = arith.constant dense<0.000000e+00> : vector<16xf32>
    %10 = vector.multi_reduction <add>, %9, %cst_6 [1] : vector<16x3xf32> to vector<16xf32>
    %11 = vector.shape_cast %10 : vector<16xf32> to vector<16x1xf32>
    %cst_7 = arith.constant 2.000000e+00 : f32
    %12 = vector.broadcast %cst_7 : f32 to vector<16x16xf32>
    %13 = arith.mulf %12, %5 : vector<16x16xf32>
    %14 = vector.broadcast %8 : vector<16x1xf32> to vector<16x16xf32>
    %15 = arith.subf %13, %14 : vector<16x16xf32>
    %16 = tpu.transpose %11, [1, 0] : vector<16x1xf32> -> vector<1x16xf32>
    %17 = vector.broadcast %16 : vector<1x16xf32> to vector<16x16xf32>
    %18 = arith.subf %15, %17 : vector<16x16xf32>
    %c0_8 = arith.constant 0 : index
    %c0_9 = arith.constant 0 : index
    %19 = vector.load %arg4[%c0_8, %c0_9] : memref<3x64xf32, #tpu.memory_space<vmem>>, vector<3x64xf32>
    %20 = arith.truncf %19 : vector<3x64xf32> to vector<3x64xbf16>
    %c0_10 = arith.constant 0 : index
    %c0_11 = arith.constant 0 : index
    %21 = vector.load %arg5[%c0_10, %c0_11] : memref<3x64xf32, #tpu.memory_space<vmem>>, vector<3x64xf32>
    %22 = arith.truncf %21 : vector<3x64xf32> to vector<3x64xbf16>
    %c0_12 = arith.constant 0 : index
    %c0_13 = arith.constant 0 : index
    %23 = vector.load %arg6[%c0_12, %c0_13] : memref<1x64xf32, #tpu.memory_space<vmem>>, vector<1x64xf32>
    %24 = arith.truncf %3 : vector<16x3xf32> to vector<16x3xbf16>
    %cst_14 = arith.constant dense<0.000000e+00> : vector<16x64xf32>
    %25 = tpu.matmul %24, %22, %cst_14 {dimension_numbers = #tpu.dot_dimension_numbers<[1], [0], [0], [1], [0, 0, 1, 1], [], []>} : vector<16x3xbf16>, vector<3x64xbf16>, vector<16x64xf32> -> vector<16x64xf32>
    %26 = tpu.iota {dimensions = array<i32: 1>} : vector<16x16xi32>
    %cst_15 = arith.constant 0xFF800000 : f32
    %27 = vector.broadcast %cst_15 : f32 to vector<16x64xf32>
    %cst_16 = arith.constant dense<0xFF800000> : vector<16xf32>
    %28 = vector.multi_reduction <maximumf>, %18, %cst_16 [1] : vector<16x16xf32> to vector<16xf32>
    %29 = vector.shape_cast %28 : vector<16xf32> to vector<16x1xf32>
    %30 = vector.broadcast %29 : vector<16x1xf32> to vector<16x16xf32>
    %31 = arith.cmpf oge, %18, %30 : vector<16x16xf32>
    %c16_i32 = arith.constant 16 : i32
    %32 = vector.broadcast %c16_i32 : i32 to vector<16x16xi32>
    %33 = arith.select %31, %26, %32 : vector<16x16xi1>, vector<16x16xi32>
    %cst_17 = arith.constant dense<2147483647> : vector<16xi32>
    %34 = vector.multi_reduction <minsi>, %33, %cst_17 [1] : vector<16x16xi32> to vector<16xi32>
    %35 = vector.shape_cast %34 : vector<16xi32> to vector<16x1xi32>
    %36 = vector.broadcast %35 : vector<16x1xi32> to vector<16x16xi32>
    %37 = arith.cmpi eq, %26, %36 : vector<16x16xi32>
    %cst_18 = arith.constant 1.000000e+00 : f32
    %cst_19 = arith.constant 0.000000e+00 : f32
    %38 = vector.broadcast %cst_18 : f32 to vector<16x16xf32>
    %39 = vector.broadcast %cst_19 : f32 to vector<16x16xf32>
    %40 = arith.select %37, %38, %39 : vector<16x16xi1>, vector<16x16xf32>
    %cst_20 = arith.constant dense<0.000000e+00> : vector<16x3xf32>
    %41 = tpu.matmul %40, %1, %cst_20 {dimension_numbers = #tpu.dot_dimension_numbers<[1], [0], [0], [1], [0, 0, 1, 1], [], []>} : vector<16x16xf32>, vector<16x3xf32>, vector<16x3xf32> -> vector<16x3xf32>
    %42 = arith.subf %41, %3 : vector<16x3xf32>
    %43 = arith.truncf %42 : vector<16x3xf32> to vector<16x3xbf16>
    %cst_21 = arith.constant dense<0.000000e+00> : vector<16x64xf32>
    %44 = tpu.matmul %43, %20, %cst_21 {dimension_numbers = #tpu.dot_dimension_numbers<[1], [0], [0], [1], [0, 0, 1, 1], [], []>} : vector<16x3xbf16>, vector<3x64xbf16>, vector<16x64xf32> -> vector<16x64xf32>
    %45 = arith.addf %44, %25 : vector<16x64xf32>
    %46 = vector.broadcast %23 : vector<1x64xf32> to vector<16x64xf32>
    %47 = arith.addf %45, %46 : vector<16x64xf32>
    %cst_22 = arith.constant 2.000000e-01 : f32
    %48 = vector.broadcast %cst_22 : f32 to vector<16x64xf32>
    %49 = arith.mulf %48, %47 : vector<16x64xf32>
    %50 = arith.maximumf %47, %49 : vector<16x64xf32>
    %51 = arith.maximumf %27, %50 : vector<16x64xf32>
    %cst_23 = arith.constant 0xFF800000 : f32
    %52 = vector.broadcast %cst_23 : f32 to vector<16x16xf32>
    %53 = arith.select %37, %52, %18 : vector<16x16xi1>, vector<16x16xf32>
    %cst_24 = arith.constant dense<0xFF800000> : vector<16xf32>
    %54 = vector.multi_reduction <maximumf>, %53, %cst_24 [1] : vector<16x16xf32> to vector<16xf32>
    %55 = vector.shape_cast %54 : vector<16xf32> to vector<16x1xf32>
    %56 = vector.broadcast %55 : vector<16x1xf32> to vector<16x16xf32>
    %57 = arith.cmpf oge, %53, %56 : vector<16x16xf32>
    %c16_i32_25 = arith.constant 16 : i32
    %58 = vector.broadcast %c16_i32_25 : i32 to vector<16x16xi32>
    %59 = arith.select %57, %26, %58 : vector<16x16xi1>, vector<16x16xi32>
    %cst_26 = arith.constant dense<2147483647> : vector<16xi32>
    %60 = vector.multi_reduction <minsi>, %59, %cst_26 [1] : vector<16x16xi32> to vector<16xi32>
    %61 = vector.shape_cast %60 : vector<16xi32> to vector<16x1xi32>
    %62 = vector.broadcast %61 : vector<16x1xi32> to vector<16x16xi32>
    %63 = arith.cmpi eq, %26, %62 : vector<16x16xi32>
    %cst_27 = arith.constant 1.000000e+00 : f32
    %cst_28 = arith.constant 0.000000e+00 : f32
    %64 = vector.broadcast %cst_27 : f32 to vector<16x16xf32>
    %65 = vector.broadcast %cst_28 : f32 to vector<16x16xf32>
    %66 = arith.select %63, %64, %65 : vector<16x16xi1>, vector<16x16xf32>
    %cst_29 = arith.constant dense<0.000000e+00> : vector<16x3xf32>
    %67 = tpu.matmul %66, %1, %cst_29 {dimension_numbers = #tpu.dot_dimension_numbers<[1], [0], [0], [1], [0, 0, 1, 1], [], []>} : vector<16x16xf32>, vector<16x3xf32>, vector<16x3xf32> -> vector<16x3xf32>
    %68 = arith.subf %67, %3 : vector<16x3xf32>
    %69 = arith.truncf %68 : vector<16x3xf32> to vector<16x3xbf16>
    %cst_30 = arith.constant dense<0.000000e+00> : vector<16x64xf32>
    %70 = tpu.matmul %69, %20, %cst_30 {dimension_numbers = #tpu.dot_dimension_numbers<[1], [0], [0], [1], [0, 0, 1, 1], [], []>} : vector<16x3xbf16>, vector<3x64xbf16>, vector<16x64xf32> -> vector<16x64xf32>
    %71 = arith.addf %70, %25 : vector<16x64xf32>
    %72 = vector.broadcast %23 : vector<1x64xf32> to vector<16x64xf32>
    %73 = arith.addf %71, %72 : vector<16x64xf32>
    %cst_31 = arith.constant 2.000000e-01 : f32
    %74 = vector.broadcast %cst_31 : f32 to vector<16x64xf32>
    %75 = arith.mulf %74, %73 : vector<16x64xf32>
    %76 = arith.maximumf %73, %75 : vector<16x64xf32>
    %77 = arith.maximumf %51, %76 : vector<16x64xf32>
    %cst_32 = arith.constant 0xFF800000 : f32
    %78 = vector.broadcast %cst_32 : f32 to vector<16x16xf32>
    %79 = arith.select %63, %78, %53 : vector<16x16xi1>, vector<16x16xf32>
    %cst_33 = arith.constant dense<0xFF800000> : vector<16xf32>
    %80 = vector.multi_reduction <maximumf>, %79, %cst_33 [1] : vector<16x16xf32> to vector<16xf32>
    %81 = vector.shape_cast %80 : vector<16xf32> to vector<16x1xf32>
    %82 = vector.broadcast %81 : vector<16x1xf32> to vector<16x16xf32>
    %83 = arith.cmpf oge, %79, %82 : vector<16x16xf32>
    %c16_i32_34 = arith.constant 16 : i32
    %84 = vector.broadcast %c16_i32_34 : i32 to vector<16x16xi32>
    %85 = arith.select %83, %26, %84 : vector<16x16xi1>, vector<16x16xi32>
    %cst_35 = arith.constant dense<2147483647> : vector<16xi32>
    %86 = vector.multi_reduction <minsi>, %85, %cst_35 [1] : vector<16x16xi32> to vector<16xi32>
    %87 = vector.shape_cast %86 : vector<16xi32> to vector<16x1xi32>
    %88 = vector.broadcast %87 : vector<16x1xi32> to vector<16x16xi32>
    %89 = arith.cmpi eq, %26, %88 : vector<16x16xi32>
    %cst_36 = arith.constant 1.000000e+00 : f32
    %cst_37 = arith.constant 0.000000e+00 : f32
    %90 = vector.broadcast %cst_36 : f32 to vector<16x16xf32>
    %91 = vector.broadcast %cst_37 : f32 to vector<16x16xf32>
    %92 = arith.select %89, %90, %91 : vector<16x16xi1>, vector<16x16xf32>
    %cst_38 = arith.constant dense<0.000000e+00> : vector<16x3xf32>
    %93 = tpu.matmul %92, %1, %cst_38 {dimension_numbers = #tpu.dot_dimension_numbers<[1], [0], [0], [1], [0, 0, 1, 1], [], []>} : vector<16x16xf32>, vector<16x3xf32>, vector<16x3xf32> -> vector<16x3xf32>
    %94 = arith.subf %93, %3 : vector<16x3xf32>
    %95 = arith.truncf %94 : vector<16x3xf32> to vector<16x3xbf16>
    %cst_39 = arith.constant dense<0.000000e+00> : vector<16x64xf32>
    %96 = tpu.matmul %95, %20, %cst_39 {dimension_numbers = #tpu.dot_dimension_numbers<[1], [0], [0], [1], [0, 0, 1, 1], [], []>} : vector<16x3xbf16>, vector<3x64xbf16>, vector<16x64xf32> -> vector<16x64xf32>
    %97 = arith.addf %96, %25 : vector<16x64xf32>
    %98 = vector.broadcast %23 : vector<1x64xf32> to vector<16x64xf32>
    %99 = arith.addf %97, %98 : vector<16x64xf32>
    %cst_40 = arith.constant 2.000000e-01 : f32
    %100 = vector.broadcast %cst_40 : f32 to vector<16x64xf32>
    %101 = arith.mulf %100, %99 : vector<16x64xf32>
    %102 = arith.maximumf %99, %101 : vector<16x64xf32>
    %103 = arith.maximumf %77, %102 : vector<16x64xf32>
    %cst_41 = arith.constant 0xFF800000 : f32
    %104 = vector.broadcast %cst_41 : f32 to vector<16x16xf32>
    %105 = arith.select %89, %104, %79 : vector<16x16xi1>, vector<16x16xf32>
    %cst_42 = arith.constant dense<0xFF800000> : vector<16xf32>
    %106 = vector.multi_reduction <maximumf>, %105, %cst_42 [1] : vector<16x16xf32> to vector<16xf32>
    %107 = vector.shape_cast %106 : vector<16xf32> to vector<16x1xf32>
    %108 = vector.broadcast %107 : vector<16x1xf32> to vector<16x16xf32>
    %109 = arith.cmpf oge, %105, %108 : vector<16x16xf32>
    %c16_i32_43 = arith.constant 16 : i32
    %110 = vector.broadcast %c16_i32_43 : i32 to vector<16x16xi32>
    %111 = arith.select %109, %26, %110 : vector<16x16xi1>, vector<16x16xi32>
    %cst_44 = arith.constant dense<2147483647> : vector<16xi32>
    %112 = vector.multi_reduction <minsi>, %111, %cst_44 [1] : vector<16x16xi32> to vector<16xi32>
    %113 = vector.shape_cast %112 : vector<16xi32> to vector<16x1xi32>
    %114 = vector.broadcast %113 : vector<16x1xi32> to vector<16x16xi32>
    %115 = arith.cmpi eq, %26, %114 : vector<16x16xi32>
    %cst_45 = arith.constant 1.000000e+00 : f32
    %cst_46 = arith.constant 0.000000e+00 : f32
    %116 = vector.broadcast %cst_45 : f32 to vector<16x16xf32>
    %117 = vector.broadcast %cst_46 : f32 to vector<16x16xf32>
    %118 = arith.select %115, %116, %117 : vector<16x16xi1>, vector<16x16xf32>
    %cst_47 = arith.constant dense<0.000000e+00> : vector<16x3xf32>
    %119 = tpu.matmul %118, %1, %cst_47 {dimension_numbers = #tpu.dot_dimension_numbers<[1], [0], [0], [1], [0, 0, 1, 1], [], []>} : vector<16x16xf32>, vector<16x3xf32>, vector<16x3xf32> -> vector<16x3xf32>
    %120 = arith.subf %119, %3 : vector<16x3xf32>
    %121 = arith.truncf %120 : vector<16x3xf32> to vector<16x3xbf16>
    %cst_48 = arith.constant dense<0.000000e+00> : vector<16x64xf32>
    %122 = tpu.matmul %121, %20, %cst_48 {dimension_numbers = #tpu.dot_dimension_numbers<[1], [0], [0], [1], [0, 0, 1, 1], [], []>} : vector<16x3xbf16>, vector<3x64xbf16>, vector<16x64xf32> -> vector<16x64xf32>
    %123 = arith.addf %122, %25 : vector<16x64xf32>
    %124 = vector.broadcast %23 : vector<1x64xf32> to vector<16x64xf32>
    %125 = arith.addf %123, %124 : vector<16x64xf32>
    %cst_49 = arith.constant 2.000000e-01 : f32
    %126 = vector.broadcast %cst_49 : f32 to vector<16x64xf32>
    %127 = arith.mulf %126, %125 : vector<16x64xf32>
    %128 = arith.maximumf %125, %127 : vector<16x64xf32>
    %129 = arith.maximumf %103, %128 : vector<16x64xf32>
    %130 = arith.truncf %129 : vector<16x64xf32> to vector<16x64xbf16>
    %c0_50 = arith.constant 0 : index
    %c0_51 = arith.constant 0 : index
    %c0_52 = arith.constant 0 : index
    %131 = vector.load %arg7[%c0_50, %c0_51, %c0_52] : memref<1x16x64xbf16, #tpu.memory_space<vmem>>, vector<1x16x64xbf16>
    %132 = vector.shape_cast %131 : vector<1x16x64xbf16> to vector<16x64xbf16>
    %133 = vector.shape_cast %130 : vector<16x64xbf16> to vector<1x16x64xbf16>
    tpu.vector_store %arg7[%c0_50, %c0_51, %c0_52], %133 {strides = array<i32>} : memref<1x16x64xbf16, #tpu.memory_space<vmem>>, vector<1x16x64xbf16>,
    return
  }
  func.func @transform_0(%arg0: i32, %arg1: i32) -> (i32, i32, i32) {
    %c0_i32 = arith.constant 0 : i32
    %c0_i32_0 = arith.constant 0 : i32
    %c0_i32_1 = arith.constant 0 : i32
    return %arg0, %c0_i32, %c0_i32_0 : i32, i32, i32
  }
  func.func @transform_1(%arg0: i32, %arg1: i32) -> (i32, i32, i32) {
    %c0_i32 = arith.constant 0 : i32
    %c0_i32_0 = arith.constant 0 : i32
    return %arg0, %arg1, %c0_i32 : i32, i32, i32
  }
  func.func @transform_2(%arg0: i32, %arg1: i32) -> (i32, i32) {
    %c0_i32 = arith.constant 0 : i32
    %c0_i32_0 = arith.constant 0 : i32
    %c0_i32_1 = arith.constant 0 : i32
    return %c0_i32, %c0_i32_0 : i32, i32
  }
  func.func @transform_3(%arg0: i32, %arg1: i32) -> (i32, i32) {
    %c0_i32 = arith.constant 0 : i32
    %c0_i32_0 = arith.constant 0 : i32
    %c0_i32_1 = arith.constant 0 : i32
    return %c0_i32, %c0_i32_0 : i32, i32
  }
  func.func @transform_4(%arg0: i32, %arg1: i32) -> (i32, i32) {
    %c0_i32 = arith.constant 0 : i32
    %c0_i32_0 = arith.constant 0 : i32
    %c0_i32_1 = arith.constant 0 : i32
    return %c0_i32, %c0_i32_0 : i32, i32
  }
  func.func @transform_5(%arg0: i32, %arg1: i32) -> (i32, i32, i32) {
    %c0_i32 = arith.constant 0 : i32
    %c0_i32_0 = arith.constant 0 : i32
    return %arg0, %arg1, %c0_i32 : i32, i32, i32
  }
}

module attributes {stable_mosaic.version = 11 : i64} {
  func.func @edge_layer_kernel(%arg0: i32, %arg1: i32, %arg2: memref<1x16x64xbf16, #tpu.memory_space<vmem>>, %arg3: memref<1x16x64xbf16, #tpu.memory_space<vmem>>, %arg4: memref<64x64xf32, #tpu.memory_space<vmem>>, %arg5: memref<64x64xf32, #tpu.memory_space<vmem>>, %arg6: memref<1x64xf32, #tpu.memory_space<vmem>>, %arg7: memref<1x16x64xbf16, #tpu.memory_space<vmem>>) attributes {dimension_semantics = [#tpu.dimension_semantics<parallel>, #tpu.dimension_semantics<parallel>], iteration_bounds = array<i64: 2, 1>, scalar_prefetch = 0 : i64, scratch_operands = 0 : i64, tpu.core_type = #tpu.core_type<tc>, window_params = [{transform_indices = @transform_0, window_bounds = array<i64: 1, 16, 64>}, {transform_indices = @transform_1, window_bounds = array<i64: 1, 16, 64>}, {pipeline_mode = #tpu.pipeline_mode<synchronous>, transform_indices = @transform_2, window_bounds = array<i64: 64, 64>}, {pipeline_mode = #tpu.pipeline_mode<synchronous>, transform_indices = @transform_3, window_bounds = array<i64: 64, 64>}, {pipeline_mode = #tpu.pipeline_mode<synchronous>, transform_indices = @transform_4, window_bounds = array<i64: 1, 64>}, {transform_indices = @transform_5, window_bounds = array<i64: 1, 16, 64>}]} {
    %c0 = arith.constant 0 : index
    %c0_0 = arith.constant 0 : index
    %c0_1 = arith.constant 0 : index
    %0 = vector.load %arg2[%c0, %c0_0, %c0_1] : memref<1x16x64xbf16, #tpu.memory_space<vmem>>, vector<1x16x64xbf16>
    %1 = vector.shape_cast %0 : vector<1x16x64xbf16> to vector<16x64xbf16>
    %c0_2 = arith.constant 0 : index
    %c0_3 = arith.constant 0 : index
    %c0_4 = arith.constant 0 : index
    %2 = vector.load %arg3[%c0_2, %c0_3, %c0_4] : memref<1x16x64xbf16, #tpu.memory_space<vmem>>, vector<1x16x64xbf16>
    %3 = vector.shape_cast %2 : vector<1x16x64xbf16> to vector<16x64xbf16>
    %4 = arith.extf %1 : vector<16x64xbf16> to vector<16x64xf32>
    %5 = arith.extf %3 : vector<16x64xbf16> to vector<16x64xf32>
    %6 = tpu.transpose %4, [1, 0] : vector<16x64xf32> -> vector<64x16xf32>
    %cst = arith.constant dense<0.000000e+00> : vector<16x16xf32>
    %7 = tpu.matmul %5, %6, %cst {dimension_numbers = #tpu.dot_dimension_numbers<[1], [0], [0], [1], [0, 0, 1, 1], [], []>} : vector<16x64xf32>, vector<64x16xf32>, vector<16x16xf32> -> vector<16x16xf32>
    %8 = arith.mulf %5, %5 : vector<16x64xf32>
    %cst_5 = arith.constant dense<0.000000e+00> : vector<16xf32>
    %9 = vector.multi_reduction <add>, %8, %cst_5 [1] : vector<16x64xf32> to vector<16xf32>
    %10 = vector.shape_cast %9 : vector<16xf32> to vector<16x1xf32>
    %11 = arith.mulf %4, %4 : vector<16x64xf32>
    %cst_6 = arith.constant dense<0.000000e+00> : vector<16xf32>
    %12 = vector.multi_reduction <add>, %11, %cst_6 [1] : vector<16x64xf32> to vector<16xf32>
    %13 = vector.shape_cast %12 : vector<16xf32> to vector<16x1xf32>
    %cst_7 = arith.constant 2.000000e+00 : f32
    %14 = vector.broadcast %cst_7 : f32 to vector<16x16xf32>
    %15 = arith.mulf %14, %7 : vector<16x16xf32>
    %16 = vector.broadcast %10 : vector<16x1xf32> to vector<16x16xf32>
    %17 = arith.subf %15, %16 : vector<16x16xf32>
    %18 = tpu.transpose %13, [1, 0] : vector<16x1xf32> -> vector<1x16xf32>
    %19 = vector.broadcast %18 : vector<1x16xf32> to vector<16x16xf32>
    %20 = arith.subf %17, %19 : vector<16x16xf32>
    %c0_8 = arith.constant 0 : index
    %c0_9 = arith.constant 0 : index
    %21 = vector.load %arg4[%c0_8, %c0_9] : memref<64x64xf32, #tpu.memory_space<vmem>>, vector<64x64xf32>
    %22 = arith.truncf %21 : vector<64x64xf32> to vector<64x64xbf16>
    %c0_10 = arith.constant 0 : index
    %c0_11 = arith.constant 0 : index
    %23 = vector.load %arg5[%c0_10, %c0_11] : memref<64x64xf32, #tpu.memory_space<vmem>>, vector<64x64xf32>
    %24 = arith.truncf %23 : vector<64x64xf32> to vector<64x64xbf16>
    %c0_12 = arith.constant 0 : index
    %c0_13 = arith.constant 0 : index
    %25 = vector.load %arg6[%c0_12, %c0_13] : memref<1x64xf32, #tpu.memory_space<vmem>>, vector<1x64xf32>
    %cst_14 = arith.constant dense<0.000000e+00> : vector<16x64xf32>
    %26 = tpu.matmul %3, %24, %cst_14 {dimension_numbers = #tpu.dot_dimension_numbers<[1], [0], [0], [1], [0, 0, 1, 1], [], []>} : vector<16x64xbf16>, vector<64x64xbf16>, vector<16x64xf32> -> vector<16x64xf32>
    %27 = tpu.iota {dimensions = array<i32: 1>} : vector<16x16xi32>
    %cst_15 = arith.constant 0xFF800000 : f32
    %28 = vector.broadcast %cst_15 : f32 to vector<16x64xf32>
    %cst_16 = arith.constant dense<0xFF800000> : vector<16xf32>
    %29 = vector.multi_reduction <maximumf>, %20, %cst_16 [1] : vector<16x16xf32> to vector<16xf32>
    %30 = vector.shape_cast %29 : vector<16xf32> to vector<16x1xf32>
    %31 = vector.broadcast %30 : vector<16x1xf32> to vector<16x16xf32>
    %32 = arith.cmpf oge, %20, %31 : vector<16x16xf32>
    %c16_i32 = arith.constant 16 : i32
    %33 = vector.broadcast %c16_i32 : i32 to vector<16x16xi32>
    %34 = arith.select %32, %27, %33 : vector<16x16xi1>, vector<16x16xi32>
    %cst_17 = arith.constant dense<2147483647> : vector<16xi32>
    %35 = vector.multi_reduction <minsi>, %34, %cst_17 [1] : vector<16x16xi32> to vector<16xi32>
    %36 = vector.shape_cast %35 : vector<16xi32> to vector<16x1xi32>
    %37 = vector.broadcast %36 : vector<16x1xi32> to vector<16x16xi32>
    %38 = arith.cmpi eq, %27, %37 : vector<16x16xi32>
    %cst_18 = arith.constant 1.000000e+00 : f32
    %cst_19 = arith.constant 0.000000e+00 : f32
    %39 = vector.broadcast %cst_18 : f32 to vector<16x16xf32>
    %40 = vector.broadcast %cst_19 : f32 to vector<16x16xf32>
    %41 = arith.select %38, %39, %40 : vector<16x16xi1>, vector<16x16xf32>
    %42 = arith.truncf %41 : vector<16x16xf32> to vector<16x16xbf16>
    %cst_20 = arith.constant dense<0.000000e+00> : vector<16x64xf32>
    %43 = tpu.matmul %42, %1, %cst_20 {dimension_numbers = #tpu.dot_dimension_numbers<[1], [0], [0], [1], [0, 0, 1, 1], [], []>} : vector<16x16xbf16>, vector<16x64xbf16>, vector<16x64xf32> -> vector<16x64xf32>
    %44 = arith.subf %43, %5 : vector<16x64xf32>
    %45 = arith.truncf %44 : vector<16x64xf32> to vector<16x64xbf16>
    %cst_21 = arith.constant dense<0.000000e+00> : vector<16x64xf32>
    %46 = tpu.matmul %45, %22, %cst_21 {dimension_numbers = #tpu.dot_dimension_numbers<[1], [0], [0], [1], [0, 0, 1, 1], [], []>} : vector<16x64xbf16>, vector<64x64xbf16>, vector<16x64xf32> -> vector<16x64xf32>
    %47 = arith.addf %46, %26 : vector<16x64xf32>
    %48 = vector.broadcast %25 : vector<1x64xf32> to vector<16x64xf32>
    %49 = arith.addf %47, %48 : vector<16x64xf32>
    %cst_22 = arith.constant 2.000000e-01 : f32
    %50 = vector.broadcast %cst_22 : f32 to vector<16x64xf32>
    %51 = arith.mulf %50, %49 : vector<16x64xf32>
    %52 = arith.maximumf %49, %51 : vector<16x64xf32>
    %53 = arith.maximumf %28, %52 : vector<16x64xf32>
    %cst_23 = arith.constant 0xFF800000 : f32
    %54 = vector.broadcast %cst_23 : f32 to vector<16x16xf32>
    %55 = arith.select %38, %54, %20 : vector<16x16xi1>, vector<16x16xf32>
    %cst_24 = arith.constant dense<0xFF800000> : vector<16xf32>
    %56 = vector.multi_reduction <maximumf>, %55, %cst_24 [1] : vector<16x16xf32> to vector<16xf32>
    %57 = vector.shape_cast %56 : vector<16xf32> to vector<16x1xf32>
    %58 = vector.broadcast %57 : vector<16x1xf32> to vector<16x16xf32>
    %59 = arith.cmpf oge, %55, %58 : vector<16x16xf32>
    %c16_i32_25 = arith.constant 16 : i32
    %60 = vector.broadcast %c16_i32_25 : i32 to vector<16x16xi32>
    %61 = arith.select %59, %27, %60 : vector<16x16xi1>, vector<16x16xi32>
    %cst_26 = arith.constant dense<2147483647> : vector<16xi32>
    %62 = vector.multi_reduction <minsi>, %61, %cst_26 [1] : vector<16x16xi32> to vector<16xi32>
    %63 = vector.shape_cast %62 : vector<16xi32> to vector<16x1xi32>
    %64 = vector.broadcast %63 : vector<16x1xi32> to vector<16x16xi32>
    %65 = arith.cmpi eq, %27, %64 : vector<16x16xi32>
    %cst_27 = arith.constant 1.000000e+00 : f32
    %cst_28 = arith.constant 0.000000e+00 : f32
    %66 = vector.broadcast %cst_27 : f32 to vector<16x16xf32>
    %67 = vector.broadcast %cst_28 : f32 to vector<16x16xf32>
    %68 = arith.select %65, %66, %67 : vector<16x16xi1>, vector<16x16xf32>
    %69 = arith.truncf %68 : vector<16x16xf32> to vector<16x16xbf16>
    %cst_29 = arith.constant dense<0.000000e+00> : vector<16x64xf32>
    %70 = tpu.matmul %69, %1, %cst_29 {dimension_numbers = #tpu.dot_dimension_numbers<[1], [0], [0], [1], [0, 0, 1, 1], [], []>} : vector<16x16xbf16>, vector<16x64xbf16>, vector<16x64xf32> -> vector<16x64xf32>
    %71 = arith.subf %70, %5 : vector<16x64xf32>
    %72 = arith.truncf %71 : vector<16x64xf32> to vector<16x64xbf16>
    %cst_30 = arith.constant dense<0.000000e+00> : vector<16x64xf32>
    %73 = tpu.matmul %72, %22, %cst_30 {dimension_numbers = #tpu.dot_dimension_numbers<[1], [0], [0], [1], [0, 0, 1, 1], [], []>} : vector<16x64xbf16>, vector<64x64xbf16>, vector<16x64xf32> -> vector<16x64xf32>
    %74 = arith.addf %73, %26 : vector<16x64xf32>
    %75 = vector.broadcast %25 : vector<1x64xf32> to vector<16x64xf32>
    %76 = arith.addf %74, %75 : vector<16x64xf32>
    %cst_31 = arith.constant 2.000000e-01 : f32
    %77 = vector.broadcast %cst_31 : f32 to vector<16x64xf32>
    %78 = arith.mulf %77, %76 : vector<16x64xf32>
    %79 = arith.maximumf %76, %78 : vector<16x64xf32>
    %80 = arith.maximumf %53, %79 : vector<16x64xf32>
    %cst_32 = arith.constant 0xFF800000 : f32
    %81 = vector.broadcast %cst_32 : f32 to vector<16x16xf32>
    %82 = arith.select %65, %81, %55 : vector<16x16xi1>, vector<16x16xf32>
    %cst_33 = arith.constant dense<0xFF800000> : vector<16xf32>
    %83 = vector.multi_reduction <maximumf>, %82, %cst_33 [1] : vector<16x16xf32> to vector<16xf32>
    %84 = vector.shape_cast %83 : vector<16xf32> to vector<16x1xf32>
    %85 = vector.broadcast %84 : vector<16x1xf32> to vector<16x16xf32>
    %86 = arith.cmpf oge, %82, %85 : vector<16x16xf32>
    %c16_i32_34 = arith.constant 16 : i32
    %87 = vector.broadcast %c16_i32_34 : i32 to vector<16x16xi32>
    %88 = arith.select %86, %27, %87 : vector<16x16xi1>, vector<16x16xi32>
    %cst_35 = arith.constant dense<2147483647> : vector<16xi32>
    %89 = vector.multi_reduction <minsi>, %88, %cst_35 [1] : vector<16x16xi32> to vector<16xi32>
    %90 = vector.shape_cast %89 : vector<16xi32> to vector<16x1xi32>
    %91 = vector.broadcast %90 : vector<16x1xi32> to vector<16x16xi32>
    %92 = arith.cmpi eq, %27, %91 : vector<16x16xi32>
    %cst_36 = arith.constant 1.000000e+00 : f32
    %cst_37 = arith.constant 0.000000e+00 : f32
    %93 = vector.broadcast %cst_36 : f32 to vector<16x16xf32>
    %94 = vector.broadcast %cst_37 : f32 to vector<16x16xf32>
    %95 = arith.select %92, %93, %94 : vector<16x16xi1>, vector<16x16xf32>
    %96 = arith.truncf %95 : vector<16x16xf32> to vector<16x16xbf16>
    %cst_38 = arith.constant dense<0.000000e+00> : vector<16x64xf32>
    %97 = tpu.matmul %96, %1, %cst_38 {dimension_numbers = #tpu.dot_dimension_numbers<[1], [0], [0], [1], [0, 0, 1, 1], [], []>} : vector<16x16xbf16>, vector<16x64xbf16>, vector<16x64xf32> -> vector<16x64xf32>
    %98 = arith.subf %97, %5 : vector<16x64xf32>
    %99 = arith.truncf %98 : vector<16x64xf32> to vector<16x64xbf16>
    %cst_39 = arith.constant dense<0.000000e+00> : vector<16x64xf32>
    %100 = tpu.matmul %99, %22, %cst_39 {dimension_numbers = #tpu.dot_dimension_numbers<[1], [0], [0], [1], [0, 0, 1, 1], [], []>} : vector<16x64xbf16>, vector<64x64xbf16>, vector<16x64xf32> -> vector<16x64xf32>
    %101 = arith.addf %100, %26 : vector<16x64xf32>
    %102 = vector.broadcast %25 : vector<1x64xf32> to vector<16x64xf32>
    %103 = arith.addf %101, %102 : vector<16x64xf32>
    %cst_40 = arith.constant 2.000000e-01 : f32
    %104 = vector.broadcast %cst_40 : f32 to vector<16x64xf32>
    %105 = arith.mulf %104, %103 : vector<16x64xf32>
    %106 = arith.maximumf %103, %105 : vector<16x64xf32>
    %107 = arith.maximumf %80, %106 : vector<16x64xf32>
    %cst_41 = arith.constant 0xFF800000 : f32
    %108 = vector.broadcast %cst_41 : f32 to vector<16x16xf32>
    %109 = arith.select %92, %108, %82 : vector<16x16xi1>, vector<16x16xf32>
    %cst_42 = arith.constant dense<0xFF800000> : vector<16xf32>
    %110 = vector.multi_reduction <maximumf>, %109, %cst_42 [1] : vector<16x16xf32> to vector<16xf32>
    %111 = vector.shape_cast %110 : vector<16xf32> to vector<16x1xf32>
    %112 = vector.broadcast %111 : vector<16x1xf32> to vector<16x16xf32>
    %113 = arith.cmpf oge, %109, %112 : vector<16x16xf32>
    %c16_i32_43 = arith.constant 16 : i32
    %114 = vector.broadcast %c16_i32_43 : i32 to vector<16x16xi32>
    %115 = arith.select %113, %27, %114 : vector<16x16xi1>, vector<16x16xi32>
    %cst_44 = arith.constant dense<2147483647> : vector<16xi32>
    %116 = vector.multi_reduction <minsi>, %115, %cst_44 [1] : vector<16x16xi32> to vector<16xi32>
    %117 = vector.shape_cast %116 : vector<16xi32> to vector<16x1xi32>
    %118 = vector.broadcast %117 : vector<16x1xi32> to vector<16x16xi32>
    %119 = arith.cmpi eq, %27, %118 : vector<16x16xi32>
    %cst_45 = arith.constant 1.000000e+00 : f32
    %cst_46 = arith.constant 0.000000e+00 : f32
    %120 = vector.broadcast %cst_45 : f32 to vector<16x16xf32>
    %121 = vector.broadcast %cst_46 : f32 to vector<16x16xf32>
    %122 = arith.select %119, %120, %121 : vector<16x16xi1>, vector<16x16xf32>
    %123 = arith.truncf %122 : vector<16x16xf32> to vector<16x16xbf16>
    %cst_47 = arith.constant dense<0.000000e+00> : vector<16x64xf32>
    %124 = tpu.matmul %123, %1, %cst_47 {dimension_numbers = #tpu.dot_dimension_numbers<[1], [0], [0], [1], [0, 0, 1, 1], [], []>} : vector<16x16xbf16>, vector<16x64xbf16>, vector<16x64xf32> -> vector<16x64xf32>
    %125 = arith.subf %124, %5 : vector<16x64xf32>
    %126 = arith.truncf %125 : vector<16x64xf32> to vector<16x64xbf16>
    %cst_48 = arith.constant dense<0.000000e+00> : vector<16x64xf32>
    %127 = tpu.matmul %126, %22, %cst_48 {dimension_numbers = #tpu.dot_dimension_numbers<[1], [0], [0], [1], [0, 0, 1, 1], [], []>} : vector<16x64xbf16>, vector<64x64xbf16>, vector<16x64xf32> -> vector<16x64xf32>
    %128 = arith.addf %127, %26 : vector<16x64xf32>
    %129 = vector.broadcast %25 : vector<1x64xf32> to vector<16x64xf32>
    %130 = arith.addf %128, %129 : vector<16x64xf32>
    %cst_49 = arith.constant 2.000000e-01 : f32
    %131 = vector.broadcast %cst_49 : f32 to vector<16x64xf32>
    %132 = arith.mulf %131, %130 : vector<16x64xf32>
    %133 = arith.maximumf %130, %132 : vector<16x64xf32>
    %134 = arith.maximumf %107, %133 : vector<16x64xf32>
    %135 = arith.truncf %134 : vector<16x64xf32> to vector<16x64xbf16>
    %c0_50 = arith.constant 0 : index
    %c0_51 = arith.constant 0 : index
    %c0_52 = arith.constant 0 : index
    %136 = vector.load %arg7[%c0_50, %c0_51, %c0_52] : memref<1x16x64xbf16, #tpu.memory_space<vmem>>, vector<1x16x64xbf16>
    %137 = vector.shape_cast %136 : vector<1x16x64xbf16> to vector<16x64xbf16>
    %138 = vector.shape_cast %135 : vector<16x64xbf16> to vector<1x16x64xbf16>
    tpu.vector_store %arg7[%c0_50, %c0_51, %c0_52], %138 {strides = array<i32>} : memref<1x16x64xbf16, #tpu.memory_space<vmem>>, vector<1x16x64xbf16>,
    return
  }
  func.func @transform_0(%arg0: i32, %arg1: i32) -> (i32, i32, i32) {
    %c0_i32 = arith.constant 0 : i32
    %c0_i32_0 = arith.constant 0 : i32
    %c0_i32_1 = arith.constant 0 : i32
    return %arg0, %c0_i32, %c0_i32_0 : i32, i32, i32
  }
  func.func @transform_1(%arg0: i32, %arg1: i32) -> (i32, i32, i32) {
    %c0_i32 = arith.constant 0 : i32
    %c0_i32_0 = arith.constant 0 : i32
    return %arg0, %arg1, %c0_i32 : i32, i32, i32
  }
  func.func @transform_2(%arg0: i32, %arg1: i32) -> (i32, i32) {
    %c0_i32 = arith.constant 0 : i32
    %c0_i32_0 = arith.constant 0 : i32
    %c0_i32_1 = arith.constant 0 : i32
    return %c0_i32, %c0_i32_0 : i32, i32
  }
  func.func @transform_3(%arg0: i32, %arg1: i32) -> (i32, i32) {
    %c0_i32 = arith.constant 0 : i32
    %c0_i32_0 = arith.constant 0 : i32
    %c0_i32_1 = arith.constant 0 : i32
    return %c0_i32, %c0_i32_0 : i32, i32
  }
  func.func @transform_4(%arg0: i32, %arg1: i32) -> (i32, i32) {
    %c0_i32 = arith.constant 0 : i32
    %c0_i32_0 = arith.constant 0 : i32
    %c0_i32_1 = arith.constant 0 : i32
    return %c0_i32, %c0_i32_0 : i32, i32
  }
  func.func @transform_5(%arg0: i32, %arg1: i32) -> (i32, i32, i32) {
    %c0_i32 = arith.constant 0 : i32
    %c0_i32_0 = arith.constant 0 : i32
    return %arg0, %arg1, %c0_i32 : i32, i32, i32
  }
}

module attributes {stable_mosaic.version = 11 : i64} {
  func.func @edge_layer_kernel(%arg0: i32, %arg1: i32, %arg2: memref<1x16x64xbf16, #tpu.memory_space<vmem>>, %arg3: memref<1x16x64xbf16, #tpu.memory_space<vmem>>, %arg4: memref<64x128xf32, #tpu.memory_space<vmem>>, %arg5: memref<64x128xf32, #tpu.memory_space<vmem>>, %arg6: memref<1x128xf32, #tpu.memory_space<vmem>>, %arg7: memref<1x16x128xbf16, #tpu.memory_space<vmem>>) attributes {dimension_semantics = [#tpu.dimension_semantics<parallel>, #tpu.dimension_semantics<parallel>], iteration_bounds = array<i64: 2, 1>, scalar_prefetch = 0 : i64, scratch_operands = 0 : i64, tpu.core_type = #tpu.core_type<tc>, window_params = [{transform_indices = @transform_0, window_bounds = array<i64: 1, 16, 64>}, {transform_indices = @transform_1, window_bounds = array<i64: 1, 16, 64>}, {pipeline_mode = #tpu.pipeline_mode<synchronous>, transform_indices = @transform_2, window_bounds = array<i64: 64, 128>}, {pipeline_mode = #tpu.pipeline_mode<synchronous>, transform_indices = @transform_3, window_bounds = array<i64: 64, 128>}, {pipeline_mode = #tpu.pipeline_mode<synchronous>, transform_indices = @transform_4, window_bounds = array<i64: 1, 128>}, {transform_indices = @transform_5, window_bounds = array<i64: 1, 16, 128>}]} {
    %c0 = arith.constant 0 : index
    %c0_0 = arith.constant 0 : index
    %c0_1 = arith.constant 0 : index
    %0 = vector.load %arg2[%c0, %c0_0, %c0_1] : memref<1x16x64xbf16, #tpu.memory_space<vmem>>, vector<1x16x64xbf16>
    %1 = vector.shape_cast %0 : vector<1x16x64xbf16> to vector<16x64xbf16>
    %c0_2 = arith.constant 0 : index
    %c0_3 = arith.constant 0 : index
    %c0_4 = arith.constant 0 : index
    %2 = vector.load %arg3[%c0_2, %c0_3, %c0_4] : memref<1x16x64xbf16, #tpu.memory_space<vmem>>, vector<1x16x64xbf16>
    %3 = vector.shape_cast %2 : vector<1x16x64xbf16> to vector<16x64xbf16>
    %4 = arith.extf %1 : vector<16x64xbf16> to vector<16x64xf32>
    %5 = arith.extf %3 : vector<16x64xbf16> to vector<16x64xf32>
    %6 = tpu.transpose %4, [1, 0] : vector<16x64xf32> -> vector<64x16xf32>
    %cst = arith.constant dense<0.000000e+00> : vector<16x16xf32>
    %7 = tpu.matmul %5, %6, %cst {dimension_numbers = #tpu.dot_dimension_numbers<[1], [0], [0], [1], [0, 0, 1, 1], [], []>} : vector<16x64xf32>, vector<64x16xf32>, vector<16x16xf32> -> vector<16x16xf32>
    %8 = arith.mulf %5, %5 : vector<16x64xf32>
    %cst_5 = arith.constant dense<0.000000e+00> : vector<16xf32>
    %9 = vector.multi_reduction <add>, %8, %cst_5 [1] : vector<16x64xf32> to vector<16xf32>
    %10 = vector.shape_cast %9 : vector<16xf32> to vector<16x1xf32>
    %11 = arith.mulf %4, %4 : vector<16x64xf32>
    %cst_6 = arith.constant dense<0.000000e+00> : vector<16xf32>
    %12 = vector.multi_reduction <add>, %11, %cst_6 [1] : vector<16x64xf32> to vector<16xf32>
    %13 = vector.shape_cast %12 : vector<16xf32> to vector<16x1xf32>
    %cst_7 = arith.constant 2.000000e+00 : f32
    %14 = vector.broadcast %cst_7 : f32 to vector<16x16xf32>
    %15 = arith.mulf %14, %7 : vector<16x16xf32>
    %16 = vector.broadcast %10 : vector<16x1xf32> to vector<16x16xf32>
    %17 = arith.subf %15, %16 : vector<16x16xf32>
    %18 = tpu.transpose %13, [1, 0] : vector<16x1xf32> -> vector<1x16xf32>
    %19 = vector.broadcast %18 : vector<1x16xf32> to vector<16x16xf32>
    %20 = arith.subf %17, %19 : vector<16x16xf32>
    %c0_8 = arith.constant 0 : index
    %c0_9 = arith.constant 0 : index
    %21 = vector.load %arg4[%c0_8, %c0_9] : memref<64x128xf32, #tpu.memory_space<vmem>>, vector<64x128xf32>
    %22 = arith.truncf %21 : vector<64x128xf32> to vector<64x128xbf16>
    %c0_10 = arith.constant 0 : index
    %c0_11 = arith.constant 0 : index
    %23 = vector.load %arg5[%c0_10, %c0_11] : memref<64x128xf32, #tpu.memory_space<vmem>>, vector<64x128xf32>
    %24 = arith.truncf %23 : vector<64x128xf32> to vector<64x128xbf16>
    %c0_12 = arith.constant 0 : index
    %c0_13 = arith.constant 0 : index
    %25 = vector.load %arg6[%c0_12, %c0_13] : memref<1x128xf32, #tpu.memory_space<vmem>>, vector<1x128xf32>
    %cst_14 = arith.constant dense<0.000000e+00> : vector<16x128xf32>
    %26 = tpu.matmul %3, %24, %cst_14 {dimension_numbers = #tpu.dot_dimension_numbers<[1], [0], [0], [1], [0, 0, 1, 1], [], []>} : vector<16x64xbf16>, vector<64x128xbf16>, vector<16x128xf32> -> vector<16x128xf32>
    %27 = tpu.iota {dimensions = array<i32: 1>} : vector<16x16xi32>
    %cst_15 = arith.constant 0xFF800000 : f32
    %28 = vector.broadcast %cst_15 : f32 to vector<16x128xf32>
    %cst_16 = arith.constant dense<0xFF800000> : vector<16xf32>
    %29 = vector.multi_reduction <maximumf>, %20, %cst_16 [1] : vector<16x16xf32> to vector<16xf32>
    %30 = vector.shape_cast %29 : vector<16xf32> to vector<16x1xf32>
    %31 = vector.broadcast %30 : vector<16x1xf32> to vector<16x16xf32>
    %32 = arith.cmpf oge, %20, %31 : vector<16x16xf32>
    %c16_i32 = arith.constant 16 : i32
    %33 = vector.broadcast %c16_i32 : i32 to vector<16x16xi32>
    %34 = arith.select %32, %27, %33 : vector<16x16xi1>, vector<16x16xi32>
    %cst_17 = arith.constant dense<2147483647> : vector<16xi32>
    %35 = vector.multi_reduction <minsi>, %34, %cst_17 [1] : vector<16x16xi32> to vector<16xi32>
    %36 = vector.shape_cast %35 : vector<16xi32> to vector<16x1xi32>
    %37 = vector.broadcast %36 : vector<16x1xi32> to vector<16x16xi32>
    %38 = arith.cmpi eq, %27, %37 : vector<16x16xi32>
    %cst_18 = arith.constant 1.000000e+00 : f32
    %cst_19 = arith.constant 0.000000e+00 : f32
    %39 = vector.broadcast %cst_18 : f32 to vector<16x16xf32>
    %40 = vector.broadcast %cst_19 : f32 to vector<16x16xf32>
    %41 = arith.select %38, %39, %40 : vector<16x16xi1>, vector<16x16xf32>
    %42 = arith.truncf %41 : vector<16x16xf32> to vector<16x16xbf16>
    %cst_20 = arith.constant dense<0.000000e+00> : vector<16x64xf32>
    %43 = tpu.matmul %42, %1, %cst_20 {dimension_numbers = #tpu.dot_dimension_numbers<[1], [0], [0], [1], [0, 0, 1, 1], [], []>} : vector<16x16xbf16>, vector<16x64xbf16>, vector<16x64xf32> -> vector<16x64xf32>
    %44 = arith.subf %43, %5 : vector<16x64xf32>
    %45 = arith.truncf %44 : vector<16x64xf32> to vector<16x64xbf16>
    %cst_21 = arith.constant dense<0.000000e+00> : vector<16x128xf32>
    %46 = tpu.matmul %45, %22, %cst_21 {dimension_numbers = #tpu.dot_dimension_numbers<[1], [0], [0], [1], [0, 0, 1, 1], [], []>} : vector<16x64xbf16>, vector<64x128xbf16>, vector<16x128xf32> -> vector<16x128xf32>
    %47 = arith.addf %46, %26 : vector<16x128xf32>
    %48 = vector.broadcast %25 : vector<1x128xf32> to vector<16x128xf32>
    %49 = arith.addf %47, %48 : vector<16x128xf32>
    %cst_22 = arith.constant 2.000000e-01 : f32
    %50 = vector.broadcast %cst_22 : f32 to vector<16x128xf32>
    %51 = arith.mulf %50, %49 : vector<16x128xf32>
    %52 = arith.maximumf %49, %51 : vector<16x128xf32>
    %53 = arith.maximumf %28, %52 : vector<16x128xf32>
    %cst_23 = arith.constant 0xFF800000 : f32
    %54 = vector.broadcast %cst_23 : f32 to vector<16x16xf32>
    %55 = arith.select %38, %54, %20 : vector<16x16xi1>, vector<16x16xf32>
    %cst_24 = arith.constant dense<0xFF800000> : vector<16xf32>
    %56 = vector.multi_reduction <maximumf>, %55, %cst_24 [1] : vector<16x16xf32> to vector<16xf32>
    %57 = vector.shape_cast %56 : vector<16xf32> to vector<16x1xf32>
    %58 = vector.broadcast %57 : vector<16x1xf32> to vector<16x16xf32>
    %59 = arith.cmpf oge, %55, %58 : vector<16x16xf32>
    %c16_i32_25 = arith.constant 16 : i32
    %60 = vector.broadcast %c16_i32_25 : i32 to vector<16x16xi32>
    %61 = arith.select %59, %27, %60 : vector<16x16xi1>, vector<16x16xi32>
    %cst_26 = arith.constant dense<2147483647> : vector<16xi32>
    %62 = vector.multi_reduction <minsi>, %61, %cst_26 [1] : vector<16x16xi32> to vector<16xi32>
    %63 = vector.shape_cast %62 : vector<16xi32> to vector<16x1xi32>
    %64 = vector.broadcast %63 : vector<16x1xi32> to vector<16x16xi32>
    %65 = arith.cmpi eq, %27, %64 : vector<16x16xi32>
    %cst_27 = arith.constant 1.000000e+00 : f32
    %cst_28 = arith.constant 0.000000e+00 : f32
    %66 = vector.broadcast %cst_27 : f32 to vector<16x16xf32>
    %67 = vector.broadcast %cst_28 : f32 to vector<16x16xf32>
    %68 = arith.select %65, %66, %67 : vector<16x16xi1>, vector<16x16xf32>
    %69 = arith.truncf %68 : vector<16x16xf32> to vector<16x16xbf16>
    %cst_29 = arith.constant dense<0.000000e+00> : vector<16x64xf32>
    %70 = tpu.matmul %69, %1, %cst_29 {dimension_numbers = #tpu.dot_dimension_numbers<[1], [0], [0], [1], [0, 0, 1, 1], [], []>} : vector<16x16xbf16>, vector<16x64xbf16>, vector<16x64xf32> -> vector<16x64xf32>
    %71 = arith.subf %70, %5 : vector<16x64xf32>
    %72 = arith.truncf %71 : vector<16x64xf32> to vector<16x64xbf16>
    %cst_30 = arith.constant dense<0.000000e+00> : vector<16x128xf32>
    %73 = tpu.matmul %72, %22, %cst_30 {dimension_numbers = #tpu.dot_dimension_numbers<[1], [0], [0], [1], [0, 0, 1, 1], [], []>} : vector<16x64xbf16>, vector<64x128xbf16>, vector<16x128xf32> -> vector<16x128xf32>
    %74 = arith.addf %73, %26 : vector<16x128xf32>
    %75 = vector.broadcast %25 : vector<1x128xf32> to vector<16x128xf32>
    %76 = arith.addf %74, %75 : vector<16x128xf32>
    %cst_31 = arith.constant 2.000000e-01 : f32
    %77 = vector.broadcast %cst_31 : f32 to vector<16x128xf32>
    %78 = arith.mulf %77, %76 : vector<16x128xf32>
    %79 = arith.maximumf %76, %78 : vector<16x128xf32>
    %80 = arith.maximumf %53, %79 : vector<16x128xf32>
    %cst_32 = arith.constant 0xFF800000 : f32
    %81 = vector.broadcast %cst_32 : f32 to vector<16x16xf32>
    %82 = arith.select %65, %81, %55 : vector<16x16xi1>, vector<16x16xf32>
    %cst_33 = arith.constant dense<0xFF800000> : vector<16xf32>
    %83 = vector.multi_reduction <maximumf>, %82, %cst_33 [1] : vector<16x16xf32> to vector<16xf32>
    %84 = vector.shape_cast %83 : vector<16xf32> to vector<16x1xf32>
    %85 = vector.broadcast %84 : vector<16x1xf32> to vector<16x16xf32>
    %86 = arith.cmpf oge, %82, %85 : vector<16x16xf32>
    %c16_i32_34 = arith.constant 16 : i32
    %87 = vector.broadcast %c16_i32_34 : i32 to vector<16x16xi32>
    %88 = arith.select %86, %27, %87 : vector<16x16xi1>, vector<16x16xi32>
    %cst_35 = arith.constant dense<2147483647> : vector<16xi32>
    %89 = vector.multi_reduction <minsi>, %88, %cst_35 [1] : vector<16x16xi32> to vector<16xi32>
    %90 = vector.shape_cast %89 : vector<16xi32> to vector<16x1xi32>
    %91 = vector.broadcast %90 : vector<16x1xi32> to vector<16x16xi32>
    %92 = arith.cmpi eq, %27, %91 : vector<16x16xi32>
    %cst_36 = arith.constant 1.000000e+00 : f32
    %cst_37 = arith.constant 0.000000e+00 : f32
    %93 = vector.broadcast %cst_36 : f32 to vector<16x16xf32>
    %94 = vector.broadcast %cst_37 : f32 to vector<16x16xf32>
    %95 = arith.select %92, %93, %94 : vector<16x16xi1>, vector<16x16xf32>
    %96 = arith.truncf %95 : vector<16x16xf32> to vector<16x16xbf16>
    %cst_38 = arith.constant dense<0.000000e+00> : vector<16x64xf32>
    %97 = tpu.matmul %96, %1, %cst_38 {dimension_numbers = #tpu.dot_dimension_numbers<[1], [0], [0], [1], [0, 0, 1, 1], [], []>} : vector<16x16xbf16>, vector<16x64xbf16>, vector<16x64xf32> -> vector<16x64xf32>
    %98 = arith.subf %97, %5 : vector<16x64xf32>
    %99 = arith.truncf %98 : vector<16x64xf32> to vector<16x64xbf16>
    %cst_39 = arith.constant dense<0.000000e+00> : vector<16x128xf32>
    %100 = tpu.matmul %99, %22, %cst_39 {dimension_numbers = #tpu.dot_dimension_numbers<[1], [0], [0], [1], [0, 0, 1, 1], [], []>} : vector<16x64xbf16>, vector<64x128xbf16>, vector<16x128xf32> -> vector<16x128xf32>
    %101 = arith.addf %100, %26 : vector<16x128xf32>
    %102 = vector.broadcast %25 : vector<1x128xf32> to vector<16x128xf32>
    %103 = arith.addf %101, %102 : vector<16x128xf32>
    %cst_40 = arith.constant 2.000000e-01 : f32
    %104 = vector.broadcast %cst_40 : f32 to vector<16x128xf32>
    %105 = arith.mulf %104, %103 : vector<16x128xf32>
    %106 = arith.maximumf %103, %105 : vector<16x128xf32>
    %107 = arith.maximumf %80, %106 : vector<16x128xf32>
    %cst_41 = arith.constant 0xFF800000 : f32
    %108 = vector.broadcast %cst_41 : f32 to vector<16x16xf32>
    %109 = arith.select %92, %108, %82 : vector<16x16xi1>, vector<16x16xf32>
    %cst_42 = arith.constant dense<0xFF800000> : vector<16xf32>
    %110 = vector.multi_reduction <maximumf>, %109, %cst_42 [1] : vector<16x16xf32> to vector<16xf32>
    %111 = vector.shape_cast %110 : vector<16xf32> to vector<16x1xf32>
    %112 = vector.broadcast %111 : vector<16x1xf32> to vector<16x16xf32>
    %113 = arith.cmpf oge, %109, %112 : vector<16x16xf32>
    %c16_i32_43 = arith.constant 16 : i32
    %114 = vector.broadcast %c16_i32_43 : i32 to vector<16x16xi32>
    %115 = arith.select %113, %27, %114 : vector<16x16xi1>, vector<16x16xi32>
    %cst_44 = arith.constant dense<2147483647> : vector<16xi32>
    %116 = vector.multi_reduction <minsi>, %115, %cst_44 [1] : vector<16x16xi32> to vector<16xi32>
    %117 = vector.shape_cast %116 : vector<16xi32> to vector<16x1xi32>
    %118 = vector.broadcast %117 : vector<16x1xi32> to vector<16x16xi32>
    %119 = arith.cmpi eq, %27, %118 : vector<16x16xi32>
    %cst_45 = arith.constant 1.000000e+00 : f32
    %cst_46 = arith.constant 0.000000e+00 : f32
    %120 = vector.broadcast %cst_45 : f32 to vector<16x16xf32>
    %121 = vector.broadcast %cst_46 : f32 to vector<16x16xf32>
    %122 = arith.select %119, %120, %121 : vector<16x16xi1>, vector<16x16xf32>
    %123 = arith.truncf %122 : vector<16x16xf32> to vector<16x16xbf16>
    %cst_47 = arith.constant dense<0.000000e+00> : vector<16x64xf32>
    %124 = tpu.matmul %123, %1, %cst_47 {dimension_numbers = #tpu.dot_dimension_numbers<[1], [0], [0], [1], [0, 0, 1, 1], [], []>} : vector<16x16xbf16>, vector<16x64xbf16>, vector<16x64xf32> -> vector<16x64xf32>
    %125 = arith.subf %124, %5 : vector<16x64xf32>
    %126 = arith.truncf %125 : vector<16x64xf32> to vector<16x64xbf16>
    %cst_48 = arith.constant dense<0.000000e+00> : vector<16x128xf32>
    %127 = tpu.matmul %126, %22, %cst_48 {dimension_numbers = #tpu.dot_dimension_numbers<[1], [0], [0], [1], [0, 0, 1, 1], [], []>} : vector<16x64xbf16>, vector<64x128xbf16>, vector<16x128xf32> -> vector<16x128xf32>
    %128 = arith.addf %127, %26 : vector<16x128xf32>
    %129 = vector.broadcast %25 : vector<1x128xf32> to vector<16x128xf32>
    %130 = arith.addf %128, %129 : vector<16x128xf32>
    %cst_49 = arith.constant 2.000000e-01 : f32
    %131 = vector.broadcast %cst_49 : f32 to vector<16x128xf32>
    %132 = arith.mulf %131, %130 : vector<16x128xf32>
    %133 = arith.maximumf %130, %132 : vector<16x128xf32>
    %134 = arith.maximumf %107, %133 : vector<16x128xf32>
    %135 = arith.truncf %134 : vector<16x128xf32> to vector<16x128xbf16>
    %c0_50 = arith.constant 0 : index
    %c0_51 = arith.constant 0 : index
    %c0_52 = arith.constant 0 : index
    %136 = vector.load %arg7[%c0_50, %c0_51, %c0_52] : memref<1x16x128xbf16, #tpu.memory_space<vmem>>, vector<1x16x128xbf16>
    %137 = vector.shape_cast %136 : vector<1x16x128xbf16> to vector<16x128xbf16>
    %138 = vector.shape_cast %135 : vector<16x128xbf16> to vector<1x16x128xbf16>
    tpu.vector_store %arg7[%c0_50, %c0_51, %c0_52], %138 {strides = array<i32>} : memref<1x16x128xbf16, #tpu.memory_space<vmem>>, vector<1x16x128xbf16>,
    return
  }
  func.func @transform_0(%arg0: i32, %arg1: i32) -> (i32, i32, i32) {
    %c0_i32 = arith.constant 0 : i32
    %c0_i32_0 = arith.constant 0 : i32
    %c0_i32_1 = arith.constant 0 : i32
    return %arg0, %c0_i32, %c0_i32_0 : i32, i32, i32
  }
  func.func @transform_1(%arg0: i32, %arg1: i32) -> (i32, i32, i32) {
    %c0_i32 = arith.constant 0 : i32
    %c0_i32_0 = arith.constant 0 : i32
    return %arg0, %arg1, %c0_i32 : i32, i32, i32
  }
  func.func @transform_2(%arg0: i32, %arg1: i32) -> (i32, i32) {
    %c0_i32 = arith.constant 0 : i32
    %c0_i32_0 = arith.constant 0 : i32
    %c0_i32_1 = arith.constant 0 : i32
    return %c0_i32, %c0_i32_0 : i32, i32
  }
  func.func @transform_3(%arg0: i32, %arg1: i32) -> (i32, i32) {
    %c0_i32 = arith.constant 0 : i32
    %c0_i32_0 = arith.constant 0 : i32
    %c0_i32_1 = arith.constant 0 : i32
    return %c0_i32, %c0_i32_0 : i32, i32
  }
  func.func @transform_4(%arg0: i32, %arg1: i32) -> (i32, i32) {
    %c0_i32 = arith.constant 0 : i32
    %c0_i32_0 = arith.constant 0 : i32
    %c0_i32_1 = arith.constant 0 : i32
    return %c0_i32, %c0_i32_0 : i32, i32
  }
  func.func @transform_5(%arg0: i32, %arg1: i32) -> (i32, i32, i32) {
    %c0_i32 = arith.constant 0 : i32
    %c0_i32_0 = arith.constant 0 : i32
    return %arg0, %arg1, %c0_i32 : i32, i32, i32
  }
}

module attributes {stable_mosaic.version = 11 : i64} {
  func.func @edge_layer_kernel(%arg0: i32, %arg1: i32, %arg2: memref<1x16x128xbf16, #tpu.memory_space<vmem>>, %arg3: memref<1x16x128xbf16, #tpu.memory_space<vmem>>, %arg4: memref<128x256xf32, #tpu.memory_space<vmem>>, %arg5: memref<128x256xf32, #tpu.memory_space<vmem>>, %arg6: memref<1x256xf32, #tpu.memory_space<vmem>>, %arg7: memref<1x16x256xbf16, #tpu.memory_space<vmem>>) attributes {dimension_semantics = [#tpu.dimension_semantics<parallel>, #tpu.dimension_semantics<parallel>], iteration_bounds = array<i64: 2, 1>, scalar_prefetch = 0 : i64, scratch_operands = 0 : i64, tpu.core_type = #tpu.core_type<tc>, window_params = [{transform_indices = @transform_0, window_bounds = array<i64: 1, 16, 128>}, {transform_indices = @transform_1, window_bounds = array<i64: 1, 16, 128>}, {pipeline_mode = #tpu.pipeline_mode<synchronous>, transform_indices = @transform_2, window_bounds = array<i64: 128, 256>}, {pipeline_mode = #tpu.pipeline_mode<synchronous>, transform_indices = @transform_3, window_bounds = array<i64: 128, 256>}, {pipeline_mode = #tpu.pipeline_mode<synchronous>, transform_indices = @transform_4, window_bounds = array<i64: 1, 256>}, {transform_indices = @transform_5, window_bounds = array<i64: 1, 16, 256>}]} {
    %c0 = arith.constant 0 : index
    %c0_0 = arith.constant 0 : index
    %c0_1 = arith.constant 0 : index
    %0 = vector.load %arg2[%c0, %c0_0, %c0_1] : memref<1x16x128xbf16, #tpu.memory_space<vmem>>, vector<1x16x128xbf16>
    %1 = vector.shape_cast %0 : vector<1x16x128xbf16> to vector<16x128xbf16>
    %c0_2 = arith.constant 0 : index
    %c0_3 = arith.constant 0 : index
    %c0_4 = arith.constant 0 : index
    %2 = vector.load %arg3[%c0_2, %c0_3, %c0_4] : memref<1x16x128xbf16, #tpu.memory_space<vmem>>, vector<1x16x128xbf16>
    %3 = vector.shape_cast %2 : vector<1x16x128xbf16> to vector<16x128xbf16>
    %4 = arith.extf %1 : vector<16x128xbf16> to vector<16x128xf32>
    %5 = arith.extf %3 : vector<16x128xbf16> to vector<16x128xf32>
    %6 = tpu.transpose %4, [1, 0] : vector<16x128xf32> -> vector<128x16xf32>
    %cst = arith.constant dense<0.000000e+00> : vector<16x16xf32>
    %7 = tpu.matmul %5, %6, %cst {dimension_numbers = #tpu.dot_dimension_numbers<[1], [0], [0], [1], [0, 0, 1, 1], [], []>} : vector<16x128xf32>, vector<128x16xf32>, vector<16x16xf32> -> vector<16x16xf32>
    %8 = arith.mulf %5, %5 : vector<16x128xf32>
    %cst_5 = arith.constant dense<0.000000e+00> : vector<16xf32>
    %9 = vector.multi_reduction <add>, %8, %cst_5 [1] : vector<16x128xf32> to vector<16xf32>
    %10 = vector.shape_cast %9 : vector<16xf32> to vector<16x1xf32>
    %11 = arith.mulf %4, %4 : vector<16x128xf32>
    %cst_6 = arith.constant dense<0.000000e+00> : vector<16xf32>
    %12 = vector.multi_reduction <add>, %11, %cst_6 [1] : vector<16x128xf32> to vector<16xf32>
    %13 = vector.shape_cast %12 : vector<16xf32> to vector<16x1xf32>
    %cst_7 = arith.constant 2.000000e+00 : f32
    %14 = vector.broadcast %cst_7 : f32 to vector<16x16xf32>
    %15 = arith.mulf %14, %7 : vector<16x16xf32>
    %16 = vector.broadcast %10 : vector<16x1xf32> to vector<16x16xf32>
    %17 = arith.subf %15, %16 : vector<16x16xf32>
    %18 = tpu.transpose %13, [1, 0] : vector<16x1xf32> -> vector<1x16xf32>
    %19 = vector.broadcast %18 : vector<1x16xf32> to vector<16x16xf32>
    %20 = arith.subf %17, %19 : vector<16x16xf32>
    %c0_8 = arith.constant 0 : index
    %c0_9 = arith.constant 0 : index
    %21 = vector.load %arg4[%c0_8, %c0_9] : memref<128x256xf32, #tpu.memory_space<vmem>>, vector<128x256xf32>
    %22 = arith.truncf %21 : vector<128x256xf32> to vector<128x256xbf16>
    %c0_10 = arith.constant 0 : index
    %c0_11 = arith.constant 0 : index
    %23 = vector.load %arg5[%c0_10, %c0_11] : memref<128x256xf32, #tpu.memory_space<vmem>>, vector<128x256xf32>
    %24 = arith.truncf %23 : vector<128x256xf32> to vector<128x256xbf16>
    %c0_12 = arith.constant 0 : index
    %c0_13 = arith.constant 0 : index
    %25 = vector.load %arg6[%c0_12, %c0_13] : memref<1x256xf32, #tpu.memory_space<vmem>>, vector<1x256xf32>
    %cst_14 = arith.constant dense<0.000000e+00> : vector<16x256xf32>
    %26 = tpu.matmul %3, %24, %cst_14 {dimension_numbers = #tpu.dot_dimension_numbers<[1], [0], [0], [1], [0, 0, 1, 1], [], []>} : vector<16x128xbf16>, vector<128x256xbf16>, vector<16x256xf32> -> vector<16x256xf32>
    %27 = tpu.iota {dimensions = array<i32: 1>} : vector<16x16xi32>
    %cst_15 = arith.constant 0xFF800000 : f32
    %28 = vector.broadcast %cst_15 : f32 to vector<16x256xf32>
    %cst_16 = arith.constant dense<0xFF800000> : vector<16xf32>
    %29 = vector.multi_reduction <maximumf>, %20, %cst_16 [1] : vector<16x16xf32> to vector<16xf32>
    %30 = vector.shape_cast %29 : vector<16xf32> to vector<16x1xf32>
    %31 = vector.broadcast %30 : vector<16x1xf32> to vector<16x16xf32>
    %32 = arith.cmpf oge, %20, %31 : vector<16x16xf32>
    %c16_i32 = arith.constant 16 : i32
    %33 = vector.broadcast %c16_i32 : i32 to vector<16x16xi32>
    %34 = arith.select %32, %27, %33 : vector<16x16xi1>, vector<16x16xi32>
    %cst_17 = arith.constant dense<2147483647> : vector<16xi32>
    %35 = vector.multi_reduction <minsi>, %34, %cst_17 [1] : vector<16x16xi32> to vector<16xi32>
    %36 = vector.shape_cast %35 : vector<16xi32> to vector<16x1xi32>
    %37 = vector.broadcast %36 : vector<16x1xi32> to vector<16x16xi32>
    %38 = arith.cmpi eq, %27, %37 : vector<16x16xi32>
    %cst_18 = arith.constant 1.000000e+00 : f32
    %cst_19 = arith.constant 0.000000e+00 : f32
    %39 = vector.broadcast %cst_18 : f32 to vector<16x16xf32>
    %40 = vector.broadcast %cst_19 : f32 to vector<16x16xf32>
    %41 = arith.select %38, %39, %40 : vector<16x16xi1>, vector<16x16xf32>
    %42 = arith.truncf %41 : vector<16x16xf32> to vector<16x16xbf16>
    %cst_20 = arith.constant dense<0.000000e+00> : vector<16x128xf32>
    %43 = tpu.matmul %42, %1, %cst_20 {dimension_numbers = #tpu.dot_dimension_numbers<[1], [0], [0], [1], [0, 0, 1, 1], [], []>} : vector<16x16xbf16>, vector<16x128xbf16>, vector<16x128xf32> -> vector<16x128xf32>
    %44 = arith.subf %43, %5 : vector<16x128xf32>
    %45 = arith.truncf %44 : vector<16x128xf32> to vector<16x128xbf16>
    %cst_21 = arith.constant dense<0.000000e+00> : vector<16x256xf32>
    %46 = tpu.matmul %45, %22, %cst_21 {dimension_numbers = #tpu.dot_dimension_numbers<[1], [0], [0], [1], [0, 0, 1, 1], [], []>} : vector<16x128xbf16>, vector<128x256xbf16>, vector<16x256xf32> -> vector<16x256xf32>
    %47 = arith.addf %46, %26 : vector<16x256xf32>
    %48 = vector.broadcast %25 : vector<1x256xf32> to vector<16x256xf32>
    %49 = arith.addf %47, %48 : vector<16x256xf32>
    %cst_22 = arith.constant 2.000000e-01 : f32
    %50 = vector.broadcast %cst_22 : f32 to vector<16x256xf32>
    %51 = arith.mulf %50, %49 : vector<16x256xf32>
    %52 = arith.maximumf %49, %51 : vector<16x256xf32>
    %53 = arith.maximumf %28, %52 : vector<16x256xf32>
    %cst_23 = arith.constant 0xFF800000 : f32
    %54 = vector.broadcast %cst_23 : f32 to vector<16x16xf32>
    %55 = arith.select %38, %54, %20 : vector<16x16xi1>, vector<16x16xf32>
    %cst_24 = arith.constant dense<0xFF800000> : vector<16xf32>
    %56 = vector.multi_reduction <maximumf>, %55, %cst_24 [1] : vector<16x16xf32> to vector<16xf32>
    %57 = vector.shape_cast %56 : vector<16xf32> to vector<16x1xf32>
    %58 = vector.broadcast %57 : vector<16x1xf32> to vector<16x16xf32>
    %59 = arith.cmpf oge, %55, %58 : vector<16x16xf32>
    %c16_i32_25 = arith.constant 16 : i32
    %60 = vector.broadcast %c16_i32_25 : i32 to vector<16x16xi32>
    %61 = arith.select %59, %27, %60 : vector<16x16xi1>, vector<16x16xi32>
    %cst_26 = arith.constant dense<2147483647> : vector<16xi32>
    %62 = vector.multi_reduction <minsi>, %61, %cst_26 [1] : vector<16x16xi32> to vector<16xi32>
    %63 = vector.shape_cast %62 : vector<16xi32> to vector<16x1xi32>
    %64 = vector.broadcast %63 : vector<16x1xi32> to vector<16x16xi32>
    %65 = arith.cmpi eq, %27, %64 : vector<16x16xi32>
    %cst_27 = arith.constant 1.000000e+00 : f32
    %cst_28 = arith.constant 0.000000e+00 : f32
    %66 = vector.broadcast %cst_27 : f32 to vector<16x16xf32>
    %67 = vector.broadcast %cst_28 : f32 to vector<16x16xf32>
    %68 = arith.select %65, %66, %67 : vector<16x16xi1>, vector<16x16xf32>
    %69 = arith.truncf %68 : vector<16x16xf32> to vector<16x16xbf16>
    %cst_29 = arith.constant dense<0.000000e+00> : vector<16x128xf32>
    %70 = tpu.matmul %69, %1, %cst_29 {dimension_numbers = #tpu.dot_dimension_numbers<[1], [0], [0], [1], [0, 0, 1, 1], [], []>} : vector<16x16xbf16>, vector<16x128xbf16>, vector<16x128xf32> -> vector<16x128xf32>
    %71 = arith.subf %70, %5 : vector<16x128xf32>
    %72 = arith.truncf %71 : vector<16x128xf32> to vector<16x128xbf16>
    %cst_30 = arith.constant dense<0.000000e+00> : vector<16x256xf32>
    %73 = tpu.matmul %72, %22, %cst_30 {dimension_numbers = #tpu.dot_dimension_numbers<[1], [0], [0], [1], [0, 0, 1, 1], [], []>} : vector<16x128xbf16>, vector<128x256xbf16>, vector<16x256xf32> -> vector<16x256xf32>
    %74 = arith.addf %73, %26 : vector<16x256xf32>
    %75 = vector.broadcast %25 : vector<1x256xf32> to vector<16x256xf32>
    %76 = arith.addf %74, %75 : vector<16x256xf32>
    %cst_31 = arith.constant 2.000000e-01 : f32
    %77 = vector.broadcast %cst_31 : f32 to vector<16x256xf32>
    %78 = arith.mulf %77, %76 : vector<16x256xf32>
    %79 = arith.maximumf %76, %78 : vector<16x256xf32>
    %80 = arith.maximumf %53, %79 : vector<16x256xf32>
    %cst_32 = arith.constant 0xFF800000 : f32
    %81 = vector.broadcast %cst_32 : f32 to vector<16x16xf32>
    %82 = arith.select %65, %81, %55 : vector<16x16xi1>, vector<16x16xf32>
    %cst_33 = arith.constant dense<0xFF800000> : vector<16xf32>
    %83 = vector.multi_reduction <maximumf>, %82, %cst_33 [1] : vector<16x16xf32> to vector<16xf32>
    %84 = vector.shape_cast %83 : vector<16xf32> to vector<16x1xf32>
    %85 = vector.broadcast %84 : vector<16x1xf32> to vector<16x16xf32>
    %86 = arith.cmpf oge, %82, %85 : vector<16x16xf32>
    %c16_i32_34 = arith.constant 16 : i32
    %87 = vector.broadcast %c16_i32_34 : i32 to vector<16x16xi32>
    %88 = arith.select %86, %27, %87 : vector<16x16xi1>, vector<16x16xi32>
    %cst_35 = arith.constant dense<2147483647> : vector<16xi32>
    %89 = vector.multi_reduction <minsi>, %88, %cst_35 [1] : vector<16x16xi32> to vector<16xi32>
    %90 = vector.shape_cast %89 : vector<16xi32> to vector<16x1xi32>
    %91 = vector.broadcast %90 : vector<16x1xi32> to vector<16x16xi32>
    %92 = arith.cmpi eq, %27, %91 : vector<16x16xi32>
    %cst_36 = arith.constant 1.000000e+00 : f32
    %cst_37 = arith.constant 0.000000e+00 : f32
    %93 = vector.broadcast %cst_36 : f32 to vector<16x16xf32>
    %94 = vector.broadcast %cst_37 : f32 to vector<16x16xf32>
    %95 = arith.select %92, %93, %94 : vector<16x16xi1>, vector<16x16xf32>
    %96 = arith.truncf %95 : vector<16x16xf32> to vector<16x16xbf16>
    %cst_38 = arith.constant dense<0.000000e+00> : vector<16x128xf32>
    %97 = tpu.matmul %96, %1, %cst_38 {dimension_numbers = #tpu.dot_dimension_numbers<[1], [0], [0], [1], [0, 0, 1, 1], [], []>} : vector<16x16xbf16>, vector<16x128xbf16>, vector<16x128xf32> -> vector<16x128xf32>
    %98 = arith.subf %97, %5 : vector<16x128xf32>
    %99 = arith.truncf %98 : vector<16x128xf32> to vector<16x128xbf16>
    %cst_39 = arith.constant dense<0.000000e+00> : vector<16x256xf32>
    %100 = tpu.matmul %99, %22, %cst_39 {dimension_numbers = #tpu.dot_dimension_numbers<[1], [0], [0], [1], [0, 0, 1, 1], [], []>} : vector<16x128xbf16>, vector<128x256xbf16>, vector<16x256xf32> -> vector<16x256xf32>
    %101 = arith.addf %100, %26 : vector<16x256xf32>
    %102 = vector.broadcast %25 : vector<1x256xf32> to vector<16x256xf32>
    %103 = arith.addf %101, %102 : vector<16x256xf32>
    %cst_40 = arith.constant 2.000000e-01 : f32
    %104 = vector.broadcast %cst_40 : f32 to vector<16x256xf32>
    %105 = arith.mulf %104, %103 : vector<16x256xf32>
    %106 = arith.maximumf %103, %105 : vector<16x256xf32>
    %107 = arith.maximumf %80, %106 : vector<16x256xf32>
    %cst_41 = arith.constant 0xFF800000 : f32
    %108 = vector.broadcast %cst_41 : f32 to vector<16x16xf32>
    %109 = arith.select %92, %108, %82 : vector<16x16xi1>, vector<16x16xf32>
    %cst_42 = arith.constant dense<0xFF800000> : vector<16xf32>
    %110 = vector.multi_reduction <maximumf>, %109, %cst_42 [1] : vector<16x16xf32> to vector<16xf32>
    %111 = vector.shape_cast %110 : vector<16xf32> to vector<16x1xf32>
    %112 = vector.broadcast %111 : vector<16x1xf32> to vector<16x16xf32>
    %113 = arith.cmpf oge, %109, %112 : vector<16x16xf32>
    %c16_i32_43 = arith.constant 16 : i32
    %114 = vector.broadcast %c16_i32_43 : i32 to vector<16x16xi32>
    %115 = arith.select %113, %27, %114 : vector<16x16xi1>, vector<16x16xi32>
    %cst_44 = arith.constant dense<2147483647> : vector<16xi32>
    %116 = vector.multi_reduction <minsi>, %115, %cst_44 [1] : vector<16x16xi32> to vector<16xi32>
    %117 = vector.shape_cast %116 : vector<16xi32> to vector<16x1xi32>
    %118 = vector.broadcast %117 : vector<16x1xi32> to vector<16x16xi32>
    %119 = arith.cmpi eq, %27, %118 : vector<16x16xi32>
    %cst_45 = arith.constant 1.000000e+00 : f32
    %cst_46 = arith.constant 0.000000e+00 : f32
    %120 = vector.broadcast %cst_45 : f32 to vector<16x16xf32>
    %121 = vector.broadcast %cst_46 : f32 to vector<16x16xf32>
    %122 = arith.select %119, %120, %121 : vector<16x16xi1>, vector<16x16xf32>
    %123 = arith.truncf %122 : vector<16x16xf32> to vector<16x16xbf16>
    %cst_47 = arith.constant dense<0.000000e+00> : vector<16x128xf32>
    %124 = tpu.matmul %123, %1, %cst_47 {dimension_numbers = #tpu.dot_dimension_numbers<[1], [0], [0], [1], [0, 0, 1, 1], [], []>} : vector<16x16xbf16>, vector<16x128xbf16>, vector<16x128xf32> -> vector<16x128xf32>
    %125 = arith.subf %124, %5 : vector<16x128xf32>
    %126 = arith.truncf %125 : vector<16x128xf32> to vector<16x128xbf16>
    %cst_48 = arith.constant dense<0.000000e+00> : vector<16x256xf32>
    %127 = tpu.matmul %126, %22, %cst_48 {dimension_numbers = #tpu.dot_dimension_numbers<[1], [0], [0], [1], [0, 0, 1, 1], [], []>} : vector<16x128xbf16>, vector<128x256xbf16>, vector<16x256xf32> -> vector<16x256xf32>
    %128 = arith.addf %127, %26 : vector<16x256xf32>
    %129 = vector.broadcast %25 : vector<1x256xf32> to vector<16x256xf32>
    %130 = arith.addf %128, %129 : vector<16x256xf32>
    %cst_49 = arith.constant 2.000000e-01 : f32
    %131 = vector.broadcast %cst_49 : f32 to vector<16x256xf32>
    %132 = arith.mulf %131, %130 : vector<16x256xf32>
    %133 = arith.maximumf %130, %132 : vector<16x256xf32>
    %134 = arith.maximumf %107, %133 : vector<16x256xf32>
    %135 = arith.truncf %134 : vector<16x256xf32> to vector<16x256xbf16>
    %c0_50 = arith.constant 0 : index
    %c0_51 = arith.constant 0 : index
    %c0_52 = arith.constant 0 : index
    %136 = vector.load %arg7[%c0_50, %c0_51, %c0_52] : memref<1x16x256xbf16, #tpu.memory_space<vmem>>, vector<1x16x256xbf16>
    %137 = vector.shape_cast %136 : vector<1x16x256xbf16> to vector<16x256xbf16>
    %138 = vector.shape_cast %135 : vector<16x256xbf16> to vector<1x16x256xbf16>
    tpu.vector_store %arg7[%c0_50, %c0_51, %c0_52], %138 {strides = array<i32>} : memref<1x16x256xbf16, #tpu.memory_space<vmem>>, vector<1x16x256xbf16>,
    return
  }
  func.func @transform_0(%arg0: i32, %arg1: i32) -> (i32, i32, i32) {
    %c0_i32 = arith.constant 0 : i32
    %c0_i32_0 = arith.constant 0 : i32
    %c0_i32_1 = arith.constant 0 : i32
    return %arg0, %c0_i32, %c0_i32_0 : i32, i32, i32
  }
  func.func @transform_1(%arg0: i32, %arg1: i32) -> (i32, i32, i32) {
    %c0_i32 = arith.constant 0 : i32
    %c0_i32_0 = arith.constant 0 : i32
    return %arg0, %arg1, %c0_i32 : i32, i32, i32
  }
  func.func @transform_2(%arg0: i32, %arg1: i32) -> (i32, i32) {
    %c0_i32 = arith.constant 0 : i32
    %c0_i32_0 = arith.constant 0 : i32
    %c0_i32_1 = arith.constant 0 : i32
    return %c0_i32, %c0_i32_0 : i32, i32
  }
  func.func @transform_3(%arg0: i32, %arg1: i32) -> (i32, i32) {
    %c0_i32 = arith.constant 0 : i32
    %c0_i32_0 = arith.constant 0 : i32
    %c0_i32_1 = arith.constant 0 : i32
    return %c0_i32, %c0_i32_0 : i32, i32
  }
  func.func @transform_4(%arg0: i32, %arg1: i32) -> (i32, i32) {
    %c0_i32 = arith.constant 0 : i32
    %c0_i32_0 = arith.constant 0 : i32
    %c0_i32_1 = arith.constant 0 : i32
    return %c0_i32, %c0_i32_0 : i32, i32
  }
  func.func @transform_5(%arg0: i32, %arg1: i32) -> (i32, i32, i32) {
    %c0_i32 = arith.constant 0 : i32
    %c0_i32_0 = arith.constant 0 : i32
    return %arg0, %arg1, %c0_i32 : i32, i32, i32
  }
}

module attributes {stable_mosaic.version = 11 : i64} {
  func.func @head_kernel(%arg0: i32, %arg1: memref<1x16x64xbf16, #tpu.memory_space<vmem>>, %arg2: memref<1x16x64xbf16, #tpu.memory_space<vmem>>, %arg3: memref<1x16x128xbf16, #tpu.memory_space<vmem>>, %arg4: memref<1x16x256xbf16, #tpu.memory_space<vmem>>, %arg5: memref<64x32xf32, #tpu.memory_space<vmem>>, %arg6: memref<64x32xf32, #tpu.memory_space<vmem>>, %arg7: memref<128x32xf32, #tpu.memory_space<vmem>>, %arg8: memref<256x32xf32, #tpu.memory_space<vmem>>, %arg9: memref<1x32xf32, #tpu.memory_space<vmem>>, %arg10: memref<1x2x32xf32, #tpu.memory_space<vmem>>) attributes {dimension_semantics = [#tpu.dimension_semantics<parallel>], iteration_bounds = array<i64: 2>, scalar_prefetch = 0 : i64, scratch_operands = 0 : i64, tpu.core_type = #tpu.core_type<tc>, window_params = [{transform_indices = @transform_0, window_bounds = array<i64: 1, 16, 64>}, {transform_indices = @transform_1, window_bounds = array<i64: 1, 16, 64>}, {transform_indices = @transform_2, window_bounds = array<i64: 1, 16, 128>}, {transform_indices = @transform_3, window_bounds = array<i64: 1, 16, 256>}, {pipeline_mode = #tpu.pipeline_mode<synchronous>, transform_indices = @transform_4, window_bounds = array<i64: 64, 32>}, {pipeline_mode = #tpu.pipeline_mode<synchronous>, transform_indices = @transform_5, window_bounds = array<i64: 64, 32>}, {pipeline_mode = #tpu.pipeline_mode<synchronous>, transform_indices = @transform_6, window_bounds = array<i64: 128, 32>}, {pipeline_mode = #tpu.pipeline_mode<synchronous>, transform_indices = @transform_7, window_bounds = array<i64: 256, 32>}, {pipeline_mode = #tpu.pipeline_mode<synchronous>, transform_indices = @transform_8, window_bounds = array<i64: 1, 32>}, {transform_indices = @transform_9, window_bounds = array<i64: 1, 2, 32>}]} {
    %c0 = arith.constant 0 : index
    %c0_0 = arith.constant 0 : index
    %c0_1 = arith.constant 0 : index
    %0 = vector.load %arg1[%c0, %c0_0, %c0_1] : memref<1x16x64xbf16, #tpu.memory_space<vmem>>, vector<1x16x64xbf16>
    %1 = vector.shape_cast %0 : vector<1x16x64xbf16> to vector<16x64xbf16>
    %c0_2 = arith.constant 0 : index
    %c0_3 = arith.constant 0 : index
    %2 = vector.load %arg5[%c0_2, %c0_3] : memref<64x32xf32, #tpu.memory_space<vmem>>, vector<64x32xf32>
    %3 = arith.truncf %2 : vector<64x32xf32> to vector<64x32xbf16>
    %cst = arith.constant dense<0.000000e+00> : vector<16x32xf32>
    %4 = tpu.matmul %1, %3, %cst {dimension_numbers = #tpu.dot_dimension_numbers<[1], [0], [0], [1], [0, 0, 1, 1], [], []>} : vector<16x64xbf16>, vector<64x32xbf16>, vector<16x32xf32> -> vector<16x32xf32>
    %c0_4 = arith.constant 0 : index
    %c0_5 = arith.constant 0 : index
    %c0_6 = arith.constant 0 : index
    %5 = vector.load %arg2[%c0_4, %c0_5, %c0_6] : memref<1x16x64xbf16, #tpu.memory_space<vmem>>, vector<1x16x64xbf16>
    %6 = vector.shape_cast %5 : vector<1x16x64xbf16> to vector<16x64xbf16>
    %c0_7 = arith.constant 0 : index
    %c0_8 = arith.constant 0 : index
    %7 = vector.load %arg6[%c0_7, %c0_8] : memref<64x32xf32, #tpu.memory_space<vmem>>, vector<64x32xf32>
    %8 = arith.truncf %7 : vector<64x32xf32> to vector<64x32xbf16>
    %cst_9 = arith.constant dense<0.000000e+00> : vector<16x32xf32>
    %9 = tpu.matmul %6, %8, %cst_9 {dimension_numbers = #tpu.dot_dimension_numbers<[1], [0], [0], [1], [0, 0, 1, 1], [], []>} : vector<16x64xbf16>, vector<64x32xbf16>, vector<16x32xf32> -> vector<16x32xf32>
    %10 = arith.addf %4, %9 : vector<16x32xf32>
    %c0_10 = arith.constant 0 : index
    %c0_11 = arith.constant 0 : index
    %c0_12 = arith.constant 0 : index
    %11 = vector.load %arg3[%c0_10, %c0_11, %c0_12] : memref<1x16x128xbf16, #tpu.memory_space<vmem>>, vector<1x16x128xbf16>
    %12 = vector.shape_cast %11 : vector<1x16x128xbf16> to vector<16x128xbf16>
    %c0_13 = arith.constant 0 : index
    %c0_14 = arith.constant 0 : index
    %13 = vector.load %arg7[%c0_13, %c0_14] : memref<128x32xf32, #tpu.memory_space<vmem>>, vector<128x32xf32>
    %14 = arith.truncf %13 : vector<128x32xf32> to vector<128x32xbf16>
    %cst_15 = arith.constant dense<0.000000e+00> : vector<16x32xf32>
    %15 = tpu.matmul %12, %14, %cst_15 {dimension_numbers = #tpu.dot_dimension_numbers<[1], [0], [0], [1], [0, 0, 1, 1], [], []>} : vector<16x128xbf16>, vector<128x32xbf16>, vector<16x32xf32> -> vector<16x32xf32>
    %16 = arith.addf %10, %15 : vector<16x32xf32>
    %c0_16 = arith.constant 0 : index
    %c0_17 = arith.constant 0 : index
    %c0_18 = arith.constant 0 : index
    %17 = vector.load %arg4[%c0_16, %c0_17, %c0_18] : memref<1x16x256xbf16, #tpu.memory_space<vmem>>, vector<1x16x256xbf16>
    %18 = vector.shape_cast %17 : vector<1x16x256xbf16> to vector<16x256xbf16>
    %c0_19 = arith.constant 0 : index
    %c0_20 = arith.constant 0 : index
    %19 = vector.load %arg8[%c0_19, %c0_20] : memref<256x32xf32, #tpu.memory_space<vmem>>, vector<256x32xf32>
    %20 = arith.truncf %19 : vector<256x32xf32> to vector<256x32xbf16>
    %cst_21 = arith.constant dense<0.000000e+00> : vector<16x32xf32>
    %21 = tpu.matmul %18, %20, %cst_21 {dimension_numbers = #tpu.dot_dimension_numbers<[1], [0], [0], [1], [0, 0, 1, 1], [], []>} : vector<16x256xbf16>, vector<256x32xbf16>, vector<16x32xf32> -> vector<16x32xf32>
    %22 = arith.addf %16, %21 : vector<16x32xf32>
    %c0_22 = arith.constant 0 : index
    %c0_23 = arith.constant 0 : index
    %23 = vector.load %arg9[%c0_22, %c0_23] : memref<1x32xf32, #tpu.memory_space<vmem>>, vector<1x32xf32>
    %24 = vector.broadcast %23 : vector<1x32xf32> to vector<16x32xf32>
    %25 = arith.addf %22, %24 : vector<16x32xf32>
    %cst_24 = arith.constant 2.000000e-01 : f32
    %26 = vector.broadcast %cst_24 : f32 to vector<16x32xf32>
    %27 = arith.mulf %26, %25 : vector<16x32xf32>
    %28 = arith.maximumf %25, %27 : vector<16x32xf32>
    %cst_25 = arith.constant dense<0xFF800000> : vector<32xf32>
    %29 = vector.multi_reduction <maximumf>, %28, %cst_25 [0] : vector<16x32xf32> to vector<32xf32>
    %30 = vector.shape_cast %29 : vector<32xf32> to vector<1x32xf32>
    %cst_26 = arith.constant dense<0.000000e+00> : vector<32xf32>
    %31 = vector.multi_reduction <add>, %28, %cst_26 [0] : vector<16x32xf32> to vector<32xf32>
    %32 = vector.shape_cast %31 : vector<32xf32> to vector<1x32xf32>
    %cst_27 = arith.constant 1.600000e+01 : f32
    %33 = vector.broadcast %cst_27 : f32 to vector<1x32xf32>
    %34 = arith.divf %32, %33 : vector<1x32xf32>
    %35 = tpu.concatenate %30, %34 in 0 : vector<1x32xf32>, vector<1x32xf32> -> vector<2x32xf32>
    %c0_28 = arith.constant 0 : index
    %c0_29 = arith.constant 0 : index
    %c0_30 = arith.constant 0 : index
    %36 = vector.load %arg10[%c0_28, %c0_29, %c0_30] : memref<1x2x32xf32, #tpu.memory_space<vmem>>, vector<1x2x32xf32>
    %37 = vector.shape_cast %36 : vector<1x2x32xf32> to vector<2x32xf32>
    %38 = vector.shape_cast %35 : vector<2x32xf32> to vector<1x2x32xf32>
    tpu.vector_store %arg10[%c0_28, %c0_29, %c0_30], %38 {strides = array<i32>} : memref<1x2x32xf32, #tpu.memory_space<vmem>>, vector<1x2x32xf32>,
    return
  }
  func.func @transform_0(%arg0: i32) -> (i32, i32, i32) {
    %c0_i32 = arith.constant 0 : i32
    %c0_i32_0 = arith.constant 0 : i32
    %c0_i32_1 = arith.constant 0 : i32
    return %arg0, %c0_i32, %c0_i32_0 : i32, i32, i32
  }
  func.func @transform_1(%arg0: i32) -> (i32, i32, i32) {
    %c0_i32 = arith.constant 0 : i32
    %c0_i32_0 = arith.constant 0 : i32
    %c0_i32_1 = arith.constant 0 : i32
    return %arg0, %c0_i32, %c0_i32_0 : i32, i32, i32
  }
  func.func @transform_2(%arg0: i32) -> (i32, i32, i32) {
    %c0_i32 = arith.constant 0 : i32
    %c0_i32_0 = arith.constant 0 : i32
    %c0_i32_1 = arith.constant 0 : i32
    return %arg0, %c0_i32, %c0_i32_0 : i32, i32, i32
  }
  func.func @transform_3(%arg0: i32) -> (i32, i32, i32) {
    %c0_i32 = arith.constant 0 : i32
    %c0_i32_0 = arith.constant 0 : i32
    %c0_i32_1 = arith.constant 0 : i32
    return %arg0, %c0_i32, %c0_i32_0 : i32, i32, i32
  }
  func.func @transform_4(%arg0: i32) -> (i32, i32) {
    %c0_i32 = arith.constant 0 : i32
    %c0_i32_0 = arith.constant 0 : i32
    %c0_i32_1 = arith.constant 0 : i32
    return %c0_i32, %c0_i32_0 : i32, i32
  }
  func.func @transform_5(%arg0: i32) -> (i32, i32) {
    %c0_i32 = arith.constant 0 : i32
    %c0_i32_0 = arith.constant 0 : i32
    %c0_i32_1 = arith.constant 0 : i32
    return %c0_i32, %c0_i32_0 : i32, i32
  }
  func.func @transform_6(%arg0: i32) -> (i32, i32) {
    %c0_i32 = arith.constant 0 : i32
    %c0_i32_0 = arith.constant 0 : i32
    %c0_i32_1 = arith.constant 0 : i32
    return %c0_i32, %c0_i32_0 : i32, i32
  }
  func.func @transform_7(%arg0: i32) -> (i32, i32) {
    %c0_i32 = arith.constant 0 : i32
    %c0_i32_0 = arith.constant 0 : i32
    %c0_i32_1 = arith.constant 0 : i32
    return %c0_i32, %c0_i32_0 : i32, i32
  }
  func.func @transform_8(%arg0: i32) -> (i32, i32) {
    %c0_i32 = arith.constant 0 : i32
    %c0_i32_0 = arith.constant 0 : i32
    %c0_i32_1 = arith.constant 0 : i32
    return %c0_i32, %c0_i32_0 : i32, i32
  }
  func.func @transform_9(%arg0: i32) -> (i32, i32, i32) {
    %c0_i32 = arith.constant 0 : i32
    %c0_i32_0 = arith.constant 0 : i32
    %c0_i32_1 = arith.constant 0 : i32
    return %arg0, %c0_i32, %c0_i32_0 : i32, i32, i32
  }
}

</mosaic_0001>

<bundles_post_ra>
// kernel: dgcnn_forward.7
= control target key start
LH: loop header
LB: loop body
LE: loop exit
PB: predicated region body
PF: predicated region fallthrough
CT: control target
= control target key end

     0   :  { %10 = vsyncpa [#allocation3], 0  ;;  %s2043_s0 = inlined_call_operand.vmem [shape: bf16[2,16,64], index: 0, kind: input, shape index: {}, may-alias: {0,1}]   ;;  %s2044_s1 = inlined_call_operand.vmem [shape: bf16[2,16,64], index: 1, kind: input, shape index: {}, may-alias: {0,1}]   ;;  %s2045_s2 = inlined_call_operand.hbm [shape: f32[64,128], index: 2, kind: input, shape index: {}]   ;;  %s2046_s3 = inlined_call_operand.hbm [shape: f32[64,128], index: 3, kind: input, shape index: {}]   ;;  %s2047_s4 = inlined_call_operand.hbm [shape: f32[1,128], index: 4, kind: input, shape index: {}]   ;;  %s2048_s5 = inlined_call_operand.vmem [shape: bf16[2,16,128], index: 5, kind: output, shape index: {}]  }
   0x1   :  { %11 = vsyncpa [#allocation5], 0  ;;  %s1689_s18 = smov 0   ;;  %s1691_s19 = smov 0  }
   0x2   :  { %s1693_s20 = smov 0  }
   0x3 LB: > { %s1290_s21 = sadd.s32 4294967295, %s1650_s20   ;;  %p1292_p0 = scmp.ge.s32.totalorder %s1650_s20, 1  ;;  %s1650_s20 = sphi %s1693_s20, %s17_s20   ;;  %s1646_s19 = sphi %s1691_s19, %s2060_s19   ;;  %s1642_s18 = sphi %s1689_s18, %s2059_s18  }
   0x4   : > { %p179_p1 = scmp.lt.s32.totalorder %s1650_s20, 3  ;;  %p1707_p2 = scmp.eq.s32.totalorder %s1290_s21, 0 }
   0x5   : > { %s1652_s24 = smov [#allocation4]   ;;  %s29_s27 = sadd.s32 1, %s1646_s19 }
   0x6   : > { %s2052_s22 = scalar_select %p1707_p2, 1, 0 }
   0x7   : > { %p1711_p3 = pnand %p1292_p0, %p179_p1  ;;  %s204_s25 = sshll.u32 %s1652_s24, 4  ;;  %s1715_s25 = int_to_ptr.vmem [resolvable:$true] %s204_s25 }
   0x8   : > { %p1726_p6 = scmp.ge.s32.totalorder %s29_s27, 2  ;;  %s1653_s29 = smov [#allocation2]  }
   0x9   : > { %s2053_s23 = scalar_select %p1711_p3, 1, 0 }
   0xa   : > { %p1485_p4 = pneg %p1711_p3  ;;  %s191_s30 = sshll.u32 %s1653_s29, 4  ;;  %s192_s30 = int_to_ptr.vmem [resolvable:$true] %s191_s30 }
   0xb   : > { %s1536_s8 = scalar_lea.hbm %s2046_s3, 1024 }
   0xc   : > { %p1721_p5 = pnand %p1707_p2, %p1485_p4  ;;  %p1537_p7 = scmp.ne.s32.totalorder %s2046_s3, %s1536_s8 }
   0xd   : > { %p1543_p11 = scmp.lt.u32.totalorder %s1536_s8, %s2046_s3 }
   0xe   : > { %p1738_p8 = pneg %p1721_p5 }
  0x10   : > { %p1539_p9 = pnand %p1738_p8, %p1537_p7 }
  0x12   : > { %p1540_p10 = pneg %p1539_p9 }
  0x14   : > { %p1545_p12 = pnand %p1543_p11, %p1540_p10 }
  0x16   : > { %1548 = shalt.err (!%p1545_p12)
}
  0x17   : > { %s1549_s14 = scalar_lea.vmem %s1715_s25, 1024  ;;  %p1557_p4 = scmp.lt.s32.totalorder %s1715_s25, %s1715_s25 }
  0x18   : > { %p1550_p13 = scmp.ne.s32.totalorder %s1715_s25, %s1549_s14  ;;  %p1558_p2 = scmp.lt.s32.totalorder %s1549_s14, %s1549_s14 }
  0x1a   : > { %p1552_p0 = pnand %p1550_p13, %p1738_p8  ;;  %p1559_p7 = por %p1558_p2, %p1557_p4 }
  0x1c   : > { %p1553_p1 = pneg %p1552_p0 }
  0x1e   : > { %p1560_p9 = pnand %p1559_p7, %p1553_p1 }
  0x20   : > { %1563 = shalt.err (!%p1560_p9)
}
  0x21   : > { %s1654_s15 = smov 128   ;;  %s1655_s16 = smov 8  }
  0x22   : > { %1491 = dma.hbm_to_vmem [thread:$0]  (!%p1721_p5), %s2046_s3, 1024, %s1715_s25, [#allocation5], %s1654_s15, %s1654_s15, %s1655_s16  }
  0x23   : > { %s2062_s27 = smov (%p1726_p6, %s29_s27), 0  ;;  %s1564_s6 = scalar_lea.hbm %s2045_s2, 1024 }
  0x24   : > { %p1565_p2 = scmp.ne.s32.totalorder %s2045_s2, %s1564_s6  ;;  %p1571_p12 = scmp.lt.u32.totalorder %s1564_s6, %s2045_s2 }
  0x26   : > { %p1567_p10 = pnand %p1565_p2, %p1738_p8 }
  0x28   : > { %p1568_p11 = pneg %p1567_p10 }
  0x2a   : > { %p1573_p13 = pnand %p1571_p12, %p1568_p11 }
  0x2c   : > { %1576 = shalt.err (!%p1573_p13)
}
  0x2d   : > { %s1577_s25 = scalar_lea.vmem %s192_s30, 1024  ;;  %p1585_p4 = scmp.lt.s32.totalorder %s192_s30, %s192_s30 }
  0x2e   : > { %p1578_p6 = scmp.ne.s32.totalorder %s192_s30, %s1577_s25  ;;  %p1586_p7 = scmp.lt.s32.totalorder %s1577_s25, %s1577_s25 }
  0x30   : > { %p1580_p0 = pnand %p1578_p6, %p1738_p8  ;;  %p1587_p9 = por %p1586_p7, %p1585_p4 }
  0x32   : > { %p1581_p1 = pneg %p1580_p0 }
  0x34   : > { %p1588_p3 = pnand %p1587_p9, %p1581_p1 }
  0x36   : > { %1591 = shalt.err (!%p1588_p3)
}
  0x37   : > { %1488 = dma.hbm_to_vmem [thread:$0]  (!%p1721_p5), %s2045_s2, 1024, %s192_s30, [#allocation3], %s1654_s15, %s1654_s15, %s1655_s16  }
  0x38   : > { %s1656_s13 = smov [#allocation6]   ;;  %s1592_s24 = scalar_lea.hbm %s2047_s4, 16 }
  0x39   : > { %s218_s14 = sshll.u32 %s1656_s13, 4  ;;  %p1593_p2 = scmp.ne.s32.totalorder %s2047_s4, %s1592_s24  ;;  %s219_s14 = int_to_ptr.vmem [resolvable:$true] %s218_s14 }
  0x3a   : > { %p1599_p11 = scmp.lt.u32.totalorder %s1592_s24, %s2047_s4 }
  0x3b   : > { %p1595_p3 = pnand %p1593_p2, %p1738_p8 }
  0x3d   : > { %p1596_p10 = pneg %p1595_p3 }
  0x3f   : > { %p1601_p12 = pnand %p1599_p11, %p1596_p10 }
  0x41   : > { %1604 = shalt.err (!%p1601_p12)
}
  0x42   : > { %s1605_s30 = scalar_lea.vmem %s219_s14, 16  ;;  %s1612_s15 = scalar_lea.vmem %s219_s14, 32 }
  0x43   : > { %p1606_p13 = scmp.ne.s32.totalorder %s219_s14, %s1605_s30  ;;  %p1613_p1 = scmp.lt.s32.totalorder %s219_s14, %s219_s14 }
  0x44   : > { %p1614_p4 = scmp.lt.s32.totalorder %s1612_s15, %s1605_s30 }
  0x45   : > { %p1608_p6 = pnand %p1606_p13, %p1738_p8 }
  0x46   : > { %p1615_p7 = por %p1614_p4, %p1613_p1 }
  0x47   : > { %p1609_p0 = pneg %p1608_p6 }
  0x49   : > { %p1616_p9 = pnand %p1615_p7, %p1609_p0 }
  0x4b   : > { %1619 = shalt.err (!%p1616_p9)
}
  0x4c   : > { %1494 = dma.hbm_to_vmem [thread:$0]  (!%p1721_p5), %s2047_s4, 16, %s219_s14, [#allocation5]  }
  0x4d   : > { %p2057_p2 = scmp.ne.s32.totalorder %s2053_s23, 0 }
  0x4e   : > { %p2058_p3 = scmp.ne.s32.totalorder (!%p2057_p2), %s2052_s22, 0 }
  0x4f   : > { %252 = sbr.rel (%p2057_p2) target bundleno = 2594 (0xa22), region = 40 }
  0x56   : > { %1633 = dma.done.wait (%p2058_p3), [#allocation3], 1024  }
  0x57   : > { %1635 = vsyncadd (%p2058_p3), [#allocation3], 4294966272 }
  0x58   : > { %1637 = dma.done.wait (%p2058_p3), [#allocation5], 1040  }
  0x59   : > { %1639 = vsyncadd (%p2058_p3), [#allocation5], 4294966256  ;;  %p301_p8 = scmp.lt.s32.totalorder %s1642_s18, 1  ;;  %vm335_vm0 = vcmask 523264   ;;  %v475_v18 = vlaneseq  ;;  %vm557_vm2 = vcmask 130048   ;;  %v1657_v52 = vmov 0.0  }
  0x5a   : > { %vm1466_vm1 = vmpackc.low %vm335_vm0, %vm335_vm0  ;;  %1381 = vmatprep.subr.bf16.mxu1 %v1657_v52  ;;  %vm1658_vm7 = vmmov 0  }
  0x5b   : > { %s2064_s18 = smov (!%p301_p8, %s1642_s18), 1  ;;  %v476_v20 = vshrl.u32 %v475_v18, 7  ;;  %v1851_v33 = vand.u32 127, %v475_v18  ;;  %1389 = vmatprep.mubr.msk.bf16.mxu1 %vm1658_vm7, %v1657_v52  ;;  %v483_v18 = vld [vmem:[#allocation2 + $0x10] sm:$0xff] }
  0x5c   : > { %s1811_s26 = sshll.u32 %s2064_s18, 3 }
  0x5d   : > { %s305_s10 = scalar_lea.vmem %s2043_s0, %s1811_s26  ;;  %s314_s12 = scalar_lea.vmem %s2044_s1, %s1811_s26  ;;  %v477_v23 = vsub.s32 0, %v476_v20 }
  0x5e   : > { %v1821_v0 = vld [vmem:[%s305_s10] sm:$0xff]   ;;  %s324_s13 = scalar_lea.vmem %s2048_s5, %s1811_s26 }
  0x5f   : > { %v1823_v1 = vld [vmem:[%s314_s12] sm:$0xff]   ;;  %v331_v2 = vunpack.c.l.bf16 %v1821_v0  ;;  %v332_v5 = vunpack.c.h.bf16 %v1821_v0  ;;  %1467 = vmatprep.subr.msk.bf16.mxu0 %vm1466_vm1, %v1821_v0 }
  0x60   : > { %v1827_v3 = vunpack.c.l.bf16 %v1823_v1  ;;  %v1830_v4 = vunpack.c.h.bf16 %v1823_v1  ;;  %1470 = vmatpush3.bf16.xpose.msk.msra.mxu0 %vm1466_vm1, %v1821_v0 }
  0x61   : > { %v431_v6 = vmul.f32 %v331_v2, %v331_v2  ;;  %v432_v7 = vmul.f32 %v332_v5, %v332_v5  ;;  %1393 = vmatprep.subr.bf16.mxu0 %v1657_v52 }
  0x62   : > { %1378 = vmatprep.mubr.msk.f32.mxu0 %vm335_vm0, %v1827_v3  ;;  %v423_v8 = vmul.f32 %v1827_v3, %v1827_v3  ;;  %v424_v9 = vmul.f32 %v1830_v4, %v1830_v4 }
  0x63   : > { %v433_v10 = vsel %vm335_vm0, %v431_v6, 0.0  ;;  %v436_v12 = vsel %vm335_vm0, %v432_v7, 0.0 }
  0x64   : > { %v425_v11 = vsel %vm335_vm0, %v423_v8, 0.0  ;;  %434 = vadd.xlane.f32.xlu0 %v433_v10  ;;  %v428_v13 = vsel %vm335_vm0, %v424_v9, 0.0  ;;  %v493_v10 = vld [vmem:[#allocation4] sm:$0xff] }
  0x65   : > { %426 = vadd.xlane.f32.xlu1 %v425_v11  ;;  %v494_v11 = vld [vmem:[#allocation4 + $0x8] sm:$0xff] }
  0x67   : > { %1379 = vmatmul.mubr.msk.f32.vlgmr.msra.gmra.mrb[0].mxu0 %vm335_vm0, %v1830_v4 }
  0x68   : > { %437 = vadd.xlane.f32.xlu0 %v436_v12  ;;  %1394 = vmatpush3.bf16.msra.mxu0 %v1821_v0  ;;  %v481_v12 = vld [vmem:[#allocation2] sm:$0xff] }
  0x69   : > { %429 = vadd.xlane.f32.xlu1 %v428_v13  ;;  %1399 = vmatprep.subr.bf16.mxu0 %v1657_v52  ;;  %v501_v13 = vpack.c.bf16 %v494_v11, %v493_v10 }
  0x6a   : > { %1395 = vmatprep.mubr.msk.bf16.mxu0 %vm1658_vm7, %v1657_v52 }
  0x6b   : > { %1382 = vmatpush3.bf16.msra.mxu1 %v501_v13 }
  0x6c   : > { %1383 = vmatprep.subr.bf16.mxu1 %v1657_v52 }
  0xf1   : > { %v435_v14 = vpop.xlane.xlu0 %434 }
  0xf2   : > { %443 = vxpose.xlu0.b32.start [1/2] (short) (narrow) %v435_v14, 8  ;;  %v427_v19 = vpop.xlane.xlu1 %426  ;;  %v482_v14 = vld [vmem:[#allocation2 + $0x8] sm:$0xff] }
  0xf5   : > { %v438_v15 = vpop.xlane.xlu0 %437 }
  0xf6   : > { %444 = vxpose.xlu0.b32.end [2/2] (short) (narrow) %v438_v15, 8  ;;  %v430_v24 = vpop.xlane.xlu1 %429  ;;  %v495_v15 = vld [vmem:[#allocation4 + $0x10] sm:$0xff] }
 0x13a   : > { %v1380_v16 = vpop.f32.mrb[0].mxu0 }
 0x13b   : > { %v414_v17 = vpop.f32.mrb[1].mxu0  ;;  %v440_v22 = vmul.f32 2.0, %v1380_v16  ;;  %v496_v16 = vld [vmem:[#allocation4 + $0x18] sm:$0xff] }
 0x13c   : > { %v439_v21 = vmul.f32 2.0, %v414_v17  ;;  %v1880_v17 = vpack.c.bf16 %v482_v14, %v481_v12  ;;  %v502_v20 = vpack.c.bf16 %v496_v16, %v495_v15 }
 0x13d   : > { %v442_v27 = vsub.f32 %v440_v22, %v430_v24  ;;  %v497_v22 = vld [vmem:[#allocation4 + $0x20] sm:$0xff] }
 0x13e   : > { %v441_v25 = vsub.f32 %v439_v21, %v427_v19  ;;  %v484_v19 = vld [vmem:[#allocation2 + $0x18] sm:$0xff]  ;;  %1384 = vmatpush3.bf16.msra.mxu1 %v502_v20 }
 0x13f   : > { %v1884_v21 = vpack.c.bf16 %v484_v19, %v483_v18  ;;  %1385 = vmatprep.subr.bf16.mxu1 %v1657_v52 }
 0x172   : > { %v459_v26 = vpop.trf.xlu0 }
 0x173   : > { %v478_v28 = vrot.slane %v459_v26, %v477_v23  ;;  %v498_v23 = vld [vmem:[#allocation4 + $0x28] sm:$0xff] }
 0x174   : > { %v503_v24 = vpack.c.bf16 %v498_v23, %v497_v22  ;;  %v486_v26 = vld [vmem:[#allocation2 + $0x28] sm:$0xff] }
 0x175   : > { %v479_v29 = vsub.f32 %v441_v25, %v478_v28  ;;  %v480_v30 = vsub.f32 %v442_v27, %v478_v28  ;;  %v485_v25 = vld [vmem:[#allocation2 + $0x20] sm:$0xff]  ;;  %v499_v28 = vld [vmem:[#allocation4 + $0x30] sm:$0xff] }
 0x176   : > { %1386 = vmatpush3.bf16.msra.mxu1 %v503_v24  ;;  %v1891_v27 = vpack.c.bf16 %v486_v26, %v485_v25 }
 0x177   : > { %v558_v31 = vsel %vm557_vm2, %v479_v29, -inf  ;;  %v561_v32 = vsel %vm557_vm2, %v480_v30, -inf  ;;  %1387 = vmatprep.subr.bf16.mxu1 %v1657_v52 }
 0x178   : > { %559 = vmax.xlane.f32.xlu1 %v558_v31 }
 0x17c   : > { %562 = vmax.xlane.f32.xlu1 %v561_v32  ;;  %v488_v32 = vld [vmem:[#allocation2 + $0x38] sm:$0xff] }
 0x205   : > { %v560_v34 = vpop.xlane.xlu1 %559 }
 0x206   : > { %vm564_vm3 = vcmp.ge.f32.partialorder %v479_v29, %v560_v34 }
 0x207   : > { %v566_v35 = vsel %vm564_vm3, %v1851_v33, 16 }
 0x208   : > { %v568_v36 = vsel %vm557_vm2, %v566_v35, 2147483647 }
 0x209   : > { %v563_v37 = vpop.xlane.xlu1 %562  ;;  %v570_v38 = vshra.s32 %v568_v36, 16  ;;  %v569_v44 = vand.u32 65535, %v568_v36 }
 0x20a   : > { %vm565_vm4 = vcmp.ge.f32.partialorder %v480_v30, %v563_v37 }
 0x20b   : > { %v567_v39 = vsel %vm565_vm4, %v1851_v33, 16  ;;  %v572_v40 = vcvt.s32.f32 %v570_v38  ;;  %v571_v46 = vcvt.s32.f32 %v569_v44 }
 0x20c   : > { %v583_v41 = vsel %vm557_vm2, %v567_v39, 2147483647 }
 0x20d   : > { %573 = vmin.xlane.f32.xlu1 %v572_v40  ;;  %v585_v42 = vshra.s32 %v583_v41, 16  ;;  %v584_v47 = vand.u32 65535, %v583_v41 }
 0x20f   : > { %v587_v43 = vcvt.s32.f32 %v585_v42  ;;  %v586_v50 = vcvt.s32.f32 %v584_v47 }
 0x211   : > { %588 = vmin.xlane.f32.xlu1 %v587_v43 }
 0x29a   : > { %v574_v45 = vpop.xlane.xlu1 %573 }
 0x29b   : > { %vm575_vm5 = vcmp.eq.f32.partialorder %v572_v40, %v574_v45  ;;  %v580_v53 = vcvt.f32.s32 %v574_v45 }
 0x29c   : > { %v576_v48 = vsel %vm575_vm5, %v571_v46, inf }
 0x29d   : > { %577 = vmin.xlane.f32.xlu1 %v576_v48  ;;  %v581_v55 = vshll.u32 %v580_v53, 16 }
 0x29e   : > { %v589_v49 = vpop.xlane.xlu1 %588 }
 0x29f   : > { %vm590_vm6 = vcmp.eq.f32.partialorder %v587_v43, %v589_v49  ;;  %v595_v56 = vcvt.f32.s32 %v589_v49 }
 0x2a0   : > { %v591_v51 = vsel %vm590_vm6, %v586_v50, inf }
 0x2a1   : > { %592 = vmin.xlane.f32.xlu1 %v591_v51  ;;  %v596_v60 = vshll.u32 %v595_v56, 16 }
 0x32a   : > { %v578_v54 = vpop.xlane.xlu1 %577 }
 0x32b   : > { %v579_v57 = vcvt.f32.s32 %v578_v54 }
 0x32d   : > { %v582_v58 = vadd.s32 %v581_v55, %v579_v57 }
 0x32e   : > { %v593_v59 = vpop.xlane.xlu1 %592 }
 0x32f   : > { %v594_v61 = vcvt.f32.s32 %v593_v59  ;;  %vm598_vm8 = vcmp.eq.s32.totalorder %v1851_v33, %v582_v58 }
 0x330   : > { %v1866_v62 = vsel %vm598_vm8, -inf, %v479_v29  ;;  %v600_v5 = vsel %vm598_vm8, 1.0, %v1657_v52  ;;  %v500_v29 = vld [vmem:[#allocation4 + $0x38] sm:$0xff] }
 0x331   : > { %v597_v63 = vadd.s32 %v596_v60, %v594_v61  ;;  %v714_v2 = vsel %vm557_vm2, %v1866_v62, -inf  ;;  %v504_v31 = vpack.c.bf16 %v500_v29, %v499_v28 }
 0x332   : > { %715 = vmax.xlane.f32.xlu1 %v714_v2 }
 0x333   : > { %vm599_vm9 = vcmp.eq.s32.totalorder %v1851_v33, %v597_v63  ;;  %1388 = vmatpush3.bf16.msra.mxu1 %v504_v31 }
 0x334   : > { %v1872_v6 = vsel %vm599_vm9, -inf, %v480_v30  ;;  %v601_v7 = vsel %vm599_vm9, 1.0, %v1657_v52  ;;  %v487_v30 = vld [vmem:[#allocation2 + $0x30] sm:$0xff]  ;;  %1417 = vmatprep.subr.bf16.mxu1 %v1657_v52 }
 0x335   : > { %v717_v8 = vsel %vm557_vm2, %v1872_v6, -inf  ;;  %v602_v9 = vpack.c.bf16 %v601_v7, %v600_v5  ;;  %v1895_v34 = vpack.c.bf16 %v488_v32, %v487_v30 }
 0x336   : > { %718 = vmax.xlane.f32.xlu1 %v717_v8  ;;  %1390 = vmatmul.mubr.msk.bf16.vlgmr.msra.gmra.mrb[0].mxu1 %vm335_vm0, %v1823_v1 }
 0x337   : > { %1396 = vmatmul.mubr.msk.bf16.vlgmr.msra.gmra.mrb[4].mxu0 %vm557_vm2, %v602_v9  ;;  %1418 = vmatpush3.bf16.msra.mxu1 %v1880_v17 }
 0x338   : > { %1407 = vmatprep.mubr.msk.bf16.mxu0 %vm1658_vm7, %v1657_v52  ;;  %1400 = vmatpush3.bf16.msra.mxu0 %v1880_v17 }
 0x339   : > { %1401 = vmatprep.subr.bf16.mxu0 %v1657_v52  ;;  %1425 = vmatprep.mubr.msk.bf16.mxu1 %vm1658_vm7, %v1657_v52 }
 0x33a   : > { %1419 = vmatprep.subr.bf16.mxu1 %v1657_v52 }
 0x33b   : > { %1420 = vmatpush3.bf16.msra.mxu1 %v1884_v21 }
 0x33c   : > { %1402 = vmatpush3.bf16.msra.mxu0 %v1884_v21  ;;  %1421 = vmatprep.subr.bf16.mxu1 %v1657_v52 }
 0x33d   : > { %1403 = vmatprep.subr.bf16.mxu0 %v1657_v52 }
 0x33f   : > { %1422 = vmatpush3.bf16.msra.mxu1 %v1891_v27 }
 0x340   : > { %1404 = vmatpush3.bf16.msra.mxu0 %v1891_v27  ;;  %1423 = vmatprep.subr.bf16.mxu1 %v1657_v52 }
 0x341   : > { %1405 = vmatprep.subr.bf16.mxu0 %v1657_v52 }
 0x343   : > { %1424 = vmatpush3.bf16.msra.mxu1 %v1895_v34 }
 0x344   : > { %1406 = vmatpush3.bf16.msra.mxu0 %v1895_v34  ;;  %1447 = vmatprep.subr.bf16.mxu1 %v1657_v52 }
 0x345   : > { %1411 = vmatprep.subr.bf16.mxu0 %v1657_v52 }
 0x3bf   : > { %v716_v1 = vpop.xlane.xlu1 %715 }
 0x3c0   : > { %vm720_vm10 = vcmp.ge.f32.partialorder %v1866_v62, %v716_v1 }
 0x3c1   : > { %v722_v35 = vsel %vm720_vm10, %v1851_v33, 16 }
 0x3c2   : > { %v724_v36 = vsel %vm557_vm2, %v722_v35, 2147483647 }
 0x3c3   : > { %v719_v37 = vpop.xlane.xlu1 %718  ;;  %v726_v38 = vshra.s32 %v724_v36, 16  ;;  %v725_v51 = vand.u32 65535, %v724_v36 }
 0x3c4   : > { %vm721_vm11 = vcmp.ge.f32.partialorder %v1872_v6, %v719_v37 }
 0x3c5   : > { %v723_v39 = vsel %vm721_vm11, %v1851_v33, 16  ;;  %v728_v40 = vcvt.s32.f32 %v726_v38  ;;  %v727_v54 = vcvt.s32.f32 %v725_v51 }
 0x3c6   : > { %v739_v41 = vsel %vm557_vm2, %v723_v39, 2147483647 }
 0x3c7   : > { %729 = vmin.xlane.f32.xlu1 %v728_v40  ;;  %v741_v42 = vshra.s32 %v739_v41, 16  ;;  %v740_v55 = vand.u32 65535, %v739_v41 }
 0x3c9   : > { %v743_v43 = vcvt.s32.f32 %v741_v42  ;;  %v742_v58 = vcvt.s32.f32 %v740_v55 }
 0x3cb   : > { %744 = vmin.xlane.f32.xlu1 %v743_v43 }
 0x409   : > { %v1925_v60 = vpop.f32.mrb[0].mxu1 }
 0x40a   : > { %v646_v44 = vpop.f32.mrb[4].mxu0  ;;  %v1391_v61 = vpop.f32.mrb[1].mxu1 }
 0x40b   : > { %v1397_v45 = vpop.f32.mrb[5].mxu0  ;;  %v653_v47 = vsub.f32 %v646_v44, %v1827_v3  ;;  %v1927_v63 = vpop.f32.mrb[2].mxu1 }
 0x40c   : > { %v649_v46 = vpop.f32.mrb[6].mxu0  ;;  %v1392_v2 = vpop.f32.mrb[3].mxu1 }
 0x40d   : > { %v654_v48 = vsub.f32 %v649_v46, %v1830_v4  ;;  %v1398_v49 = vpop.f32.mrb[7].mxu0 }
 0x40f   : > { %v655_v50 = vpack.c.bf16 %v654_v48, %v653_v47 }
 0x411   : > { %1408 = vmatmul.mubr.msk.bf16.vlgmr.msra.gmra.mrb[8].mxu0 %vm335_vm0, %v655_v50 }
 0x412   : > { %1412 = vmatpush3.bf16.msra.mxu0 %v1821_v0  ;;  %1413 = vmatprep.mubr.msk.bf16.mxu0 %vm1658_vm7, %v1657_v52 }
 0x413   : > { %1429 = vmatprep.subr.bf16.mxu0 %v1657_v52 }
 0x454   : > { %v730_v53 = vpop.xlane.xlu1 %729 }
 0x455   : > { %vm731_vm12 = vcmp.eq.f32.partialorder %v728_v40, %v730_v53  ;;  %v736_v5 = vcvt.f32.s32 %v730_v53 }
 0x456   : > { %v732_v56 = vsel %vm731_vm12, %v727_v54, inf }
 0x457   : > { %733 = vmin.xlane.f32.xlu1 %v732_v56  ;;  %v737_v9 = vshll.u32 %v736_v5, 16 }
 0x458   : > { %v745_v57 = vpop.xlane.xlu1 %744 }
 0x459   : > { %vm746_vm13 = vcmp.eq.f32.partialorder %v743_v43, %v745_v57  ;;  %v751_v10 = vcvt.f32.s32 %v745_v57  ;;  %v1965_v57 = vld [vmem:[#allocation6] ss:$0 sm:$0xff] }
 0x45a   : > { %v747_v59 = vsel %vm746_vm13, %v742_v58, inf }
 0x45b   : > { %748 = vmin.xlane.f32.xlu1 %v747_v59  ;;  %v752_v20 = vshll.u32 %v751_v10, 16 }
 0x4e4   : > { %v693_v7 = vpop.f32.mrb[8].mxu0  ;;  %v734_v8 = vpop.xlane.xlu1 %733 }
 0x4e5   : > { %v1930_v11 = vadd.f32 %v693_v7, %v1925_v60  ;;  %v735_v12 = vcvt.f32.s32 %v734_v8  ;;  %v1409_v13 = vpop.f32.mrb[9].mxu0 }
 0x4e6   : > { %v696_v14 = vpop.f32.mrb[10].mxu0 }
 0x4e7   : > { %v738_v15 = vadd.s32 %v737_v9, %v735_v12  ;;  %v697_v16 = vadd.f32 %v696_v14, %v1927_v63  ;;  %v1410_v18 = vpop.f32.mrb[11].mxu0  ;;  %v706_v58 = vadd.f32 %v1965_v57, %v1930_v11 }
 0x4e8   : > { %v749_v19 = vpop.xlane.xlu1 %748 }
 0x4e9   : > { %v750_v22 = vcvt.f32.s32 %v749_v19  ;;  %vm754_vm14 = vcmp.eq.s32.totalorder %v1851_v33, %v738_v15  ;;  %v707_v59 = vadd.f32 %v1965_v57, %v697_v16  ;;  %v708_v12 = vmul.f32 0.2, %v706_v58 }
 0x4ea   : > { %v1935_v23 = vsel %vm754_vm14, -inf, %v1866_v62  ;;  %v756_v26 = vsel %vm754_vm14, 1.0, %v1657_v52 }
 0x4eb   : > { %v753_v24 = vadd.s32 %v752_v20, %v750_v22  ;;  %v860_v25 = vsel %vm557_vm2, %v1935_v23, -inf  ;;  %v709_v20 = vmul.f32 0.2, %v707_v59 }
 0x4ec   : > { %861 = vmax.xlane.f32.xlu1 %v860_v25 }
 0x4ed   : > { %vm755_vm15 = vcmp.eq.s32.totalorder %v1851_v33, %v753_v24 }
 0x4ee   : > { %v1942_v28 = vsel %vm755_vm15, -inf, %v1872_v6  ;;  %v757_v29 = vsel %vm755_vm15, 1.0, %v1657_v52 }
 0x4ef   : > { %v863_v30 = vsel %vm557_vm2, %v1942_v28, -inf  ;;  %v758_v31 = vpack.c.bf16 %v757_v29, %v756_v26  ;;  %v710_v26 = vmax.f32 %v706_v58, %v708_v12 }
 0x4f0   : > { %864 = vmax.xlane.f32.xlu0 %v863_v30 }
 0x4f1   : > { %1414 = vmatmul.mubr.msk.bf16.vlgmr.msra.gmra.mrb[12].mxu0 %vm557_vm2, %v758_v31 }
 0x4f2   : > { %1430 = vmatpush3.bf16.msra.mxu0 %v1821_v0  ;;  %1431 = vmatprep.mubr.msk.bf16.mxu0 %vm1658_vm7, %v1657_v52 }
 0x4f3   : > { %1435 = vmatprep.subr.bf16.mxu0 %v1657_v52 }
 0x579   : > { %v862_v62 = vpop.xlane.xlu1 %861 }
 0x57a   : > { %vm866_vm1 = vcmp.ge.f32.partialorder %v1935_v23, %v862_v62 }
 0x57b   : > { %v868_v6 = vsel %vm866_vm1, %v1851_v33, 16 }
 0x57c   : > { %v870_v32 = vsel %vm557_vm2, %v868_v6, 2147483647 }
 0x57d   : > { %v865_v1 = vpop.xlane.xlu0 %864  ;;  %v872_v35 = vshra.s32 %v870_v32, 16  ;;  %v871_v48 = vand.u32 65535, %v870_v32  ;;  %v711_v32 = vmax.f32 %v707_v59, %v709_v20 }
 0x57e   : > { %vm867_vm3 = vcmp.ge.f32.partialorder %v1942_v28, %v865_v1 }
 0x57f   : > { %v869_v36 = vsel %vm867_vm3, %v1851_v33, 16  ;;  %v874_v37 = vcvt.s32.f32 %v872_v35  ;;  %v873_v50 = vcvt.s32.f32 %v871_v48 }
 0x580   : > { %v885_v38 = vsel %vm557_vm2, %v869_v36, 2147483647 }
 0x581   : > { %875 = vmin.xlane.f32.xlu1 %v874_v37  ;;  %v887_v39 = vshra.s32 %v885_v38, 16  ;;  %v886_v51 = vand.u32 65535, %v885_v38 }
 0x583   : > { %v889_v40 = vcvt.s32.f32 %v887_v39  ;;  %v888_v55 = vcvt.s32.f32 %v886_v51 }
 0x585   : > { %890 = vmin.xlane.f32.xlu1 %v889_v40 }
 0x5c4   : > { %v796_v41 = vpop.f32.mrb[12].mxu0 }
 0x5c5   : > { %v1415_v42 = vpop.f32.mrb[13].mxu0  ;;  %v803_v44 = vsub.f32 %v796_v41, %v1827_v3 }
 0x5c6   : > { %v799_v43 = vpop.f32.mrb[14].mxu0 }
 0x5c7   : > { %v804_v45 = vsub.f32 %v799_v43, %v1830_v4  ;;  %v1416_v46 = vpop.f32.mrb[15].mxu0 }
 0x5c9   : > { %v805_v47 = vpack.c.bf16 %v804_v45, %v803_v44 }
 0x5cb   : > { %1426 = vmatmul.mubr.msk.bf16.vlgmr.msra.gmra.mrb[4].mxu1 %vm335_vm0, %v805_v47 }
 0x5cc   : > { %1448 = vmatpush3.bf16.msra.mxu1 %v1821_v0  ;;  %1449 = vmatprep.mubr.msk.bf16.mxu1 %vm1658_vm7, %v1657_v52 }
 0x5cd   : > { %1453 = vmatprep.subr.bf16.mxu1 %v1657_v52 }
 0x60e   : > { %v876_v49 = vpop.xlane.xlu1 %875 }
 0x60f   : > { %vm877_vm4 = vcmp.eq.f32.partialorder %v874_v37, %v876_v49  ;;  %v882_v0 = vcvt.f32.s32 %v876_v49 }
 0x610   : > { %v878_v53 = vsel %vm877_vm4, %v873_v50, inf }
 0x611   : > { %879 = vmin.xlane.f32.xlu1 %v878_v53  ;;  %v883_v7 = vshll.u32 %v882_v0, 16 }
 0x612   : > { %v891_v54 = vpop.xlane.xlu1 %890 }
 0x613   : > { %vm892_vm5 = vcmp.eq.f32.partialorder %v889_v40, %v891_v54  ;;  %v897_v61 = vcvt.f32.s32 %v891_v54 }
 0x614   : > { %v893_v56 = vsel %vm892_vm5, %v888_v55, inf }
 0x615   : > { %894 = vmin.xlane.f32.xlu1 %v893_v56  ;;  %v898_v11 = vshll.u32 %v897_v61, 16 }
 0x69e   : > { %v843_v2 = vpop.f32.mrb[4].mxu1  ;;  %v880_v5 = vpop.xlane.xlu1 %879 }
 0x69f   : > { %v844_v8 = vadd.f32 %v843_v2, %v1925_v60  ;;  %v881_v9 = vcvt.f32.s32 %v880_v5  ;;  %v1427_v10 = vpop.f32.mrb[5].mxu1 }
 0x6a0   : > { %v846_v13 = vpop.f32.mrb[6].mxu1 }
 0x6a1   : > { %v850_v14 = vadd.f32 %v1965_v57, %v844_v8  ;;  %v884_v15 = vadd.s32 %v883_v7, %v881_v9  ;;  %v847_v18 = vadd.f32 %v846_v13, %v1927_v63  ;;  %v1428_v19 = vpop.f32.mrb[7].mxu1 }
 0x6a2   : > { %v895_v22 = vpop.xlane.xlu1 %894 }
 0x6a3   : > { %v852_v16 = vmul.f32 0.2, %v850_v14  ;;  %v851_v24 = vadd.f32 %v1965_v57, %v847_v18  ;;  %v896_v25 = vcvt.f32.s32 %v895_v22  ;;  %vm900_vm6 = vcmp.eq.s32.totalorder %v1851_v33, %v884_v15 }
 0x6a4   : > { %v1004_v29 = vsel %vm900_vm6, -inf, %v1935_v23  ;;  %v902_v36 = vsel %vm900_vm6, 1.0, %v1657_v52 }
 0x6a5   : > { %v854_v30 = vmax.f32 %v850_v14, %v852_v16  ;;  %v853_v31 = vmul.f32 0.2, %v851_v24  ;;  %v899_v62 = vadd.s32 %v898_v11, %v896_v25  ;;  %v1006_v6 = vsel %vm557_vm2, %v1004_v29, -inf }
 0x6a6   : > { %1007 = vmax.xlane.f32.xlu1 %v1006_v6 }
 0x6a7   : > { %v1977_v1 = vmax.f32 %v710_v26, %v854_v30  ;;  %v855_v35 = vmax.f32 %v851_v24, %v853_v31  ;;  %vm901_vm8 = vcmp.eq.s32.totalorder %v1851_v33, %v899_v62 }
 0x6a8   : > { %v1005_v37 = vsel %vm901_vm8, -inf, %v1942_v28  ;;  %v903_v38 = vsel %vm901_vm8, 1.0, %v1657_v52 }
 0x6a9   : > { %v1983_v39 = vmax.f32 %v711_v32, %v855_v35  ;;  %v1009_v23 = vsel %vm557_vm2, %v1005_v37, -inf  ;;  %v904_v40 = vpack.c.bf16 %v903_v38, %v902_v36 }
 0x6aa   : > { %1010 = vmax.xlane.f32.xlu1 %v1009_v23 }
 0x6ab   : > { %1432 = vmatmul.mubr.msk.bf16.vlgmr.msra.gmra.mrb[16].mxu0 %vm557_vm2, %v904_v40 }
 0x6ac   : > { %1436 = vmatpush3.bf16.msra.mxu0 %v1880_v17  ;;  %1443 = vmatprep.mubr.msk.bf16.mxu0 %vm1658_vm7, %v1657_v52 }
 0x6ad   : > { %1437 = vmatprep.subr.bf16.mxu0 %v1657_v52 }
 0x6b0   : > { %1438 = vmatpush3.bf16.msra.mxu0 %v1884_v21 }
 0x6b1   : > { %1439 = vmatprep.subr.bf16.mxu0 %v1657_v52 }
 0x6b4   : > { %1440 = vmatpush3.bf16.msra.mxu0 %v1891_v27 }
 0x6b5   : > { %1441 = vmatprep.subr.bf16.mxu0 %v1657_v52 }
 0x6b8   : > { %1442 = vmatpush3.bf16.msra.mxu0 %v1895_v34 }
 0x733   : > { %v1008_v28 = vpop.xlane.xlu1 %1007 }
 0x734   : > { %vm1012_vm9 = vcmp.ge.f32.partialorder %v1004_v29, %v1008_v28 }
 0x735   : > { %v1014_v41 = vsel %vm1012_vm9, %v1851_v33, 16 }
 0x736   : > { %v1016_v42 = vsel %vm557_vm2, %v1014_v41, 2147483647 }
 0x737   : > { %v1011_v43 = vpop.xlane.xlu1 %1010  ;;  %v1018_v44 = vshra.s32 %v1016_v42, 16  ;;  %v1017_v58 = vand.u32 65535, %v1016_v42 }
 0x738   : > { %vm1013_vm10 = vcmp.ge.f32.partialorder %v1005_v37, %v1011_v43 }
 0x739   : > { %v1015_v45 = vsel %vm1013_vm10, %v1851_v33, 16  ;;  %v1020_v46 = vcvt.s32.f32 %v1018_v44  ;;  %v1019_v61 = vcvt.s32.f32 %v1017_v58 }
 0x73a   : > { %v1031_v47 = vsel %vm557_vm2, %v1015_v45, 2147483647 }
 0x73b   : > { %1021 = vmin.xlane.f32.xlu1 %v1020_v46  ;;  %v1033_v48 = vshra.s32 %v1031_v47, 16  ;;  %v1032_v2 = vand.u32 65535, %v1031_v47 }
 0x73d   : > { %v1035_v49 = vcvt.s32.f32 %v1033_v48  ;;  %v1034_v8 = vcvt.s32.f32 %v1032_v2 }
 0x73f   : > { %1036 = vmin.xlane.f32.xlu1 %v1035_v49 }
 0x77e   : > { %v942_v50 = vpop.f32.mrb[16].mxu0 }
 0x77f   : > { %v1433_v51 = vpop.f32.mrb[17].mxu0  ;;  %v949_v54 = vsub.f32 %v942_v50, %v1827_v3 }
 0x780   : > { %v945_v53 = vpop.f32.mrb[18].mxu0 }
 0x781   : > { %v950_v55 = vsub.f32 %v945_v53, %v1830_v4  ;;  %v1434_v56 = vpop.f32.mrb[19].mxu0 }
 0x783   : > { %v951_v0 = vpack.c.bf16 %v950_v55, %v949_v54 }
 0x785   : > { %1444 = vmatmul.mubr.msk.bf16.vlgmr.msra.gmra.mrb[20].mxu0 %vm335_vm0, %v951_v0 }
 0x7c8   : > { %v1022_v59 = vpop.xlane.xlu1 %1021 }
 0x7c9   : > { %vm1023_vm11 = vcmp.eq.f32.partialorder %v1020_v46, %v1022_v59  ;;  %v1028_v10 = vcvt.f32.s32 %v1022_v59 }
 0x7ca   : > { %v1024_v5 = vsel %vm1023_vm11, %v1019_v61, inf }
 0x7cb   : > { %1025 = vmin.xlane.f32.xlu1 %v1024_v5  ;;  %v1029_v14 = vshll.u32 %v1028_v10, 16 }
 0x7cc   : > { %v1037_v7 = vpop.xlane.xlu1 %1036 }
 0x7cd   : > { %vm1038_vm12 = vcmp.eq.f32.partialorder %v1035_v49, %v1037_v7  ;;  %v1043_v15 = vcvt.f32.s32 %v1037_v7 }
 0x7ce   : > { %v1039_v9 = vsel %vm1038_vm12, %v1034_v8, inf }
 0x7cf   : > { %1040 = vmin.xlane.f32.xlu1 %v1039_v9  ;;  %v1044_v29 = vshll.u32 %v1043_v15, 16 }
 0x858   : > { %v989_v12 = vpop.f32.mrb[20].mxu0  ;;  %v1026_v13 = vpop.xlane.xlu1 %1025 }
 0x859   : > { %v990_v18 = vadd.f32 %v989_v12, %v1925_v60  ;;  %v1027_v19 = vcvt.f32.s32 %v1026_v13  ;;  %v1445_v20 = vpop.f32.mrb[21].mxu0 }
 0x85a   : > { %v992_v11 = vpop.f32.mrb[22].mxu0 }
 0x85b   : > { %v996_v22 = vadd.f32 %v1965_v57, %v990_v18  ;;  %v1030_v16 = vadd.s32 %v1029_v14, %v1027_v19  ;;  %v993_v24 = vadd.f32 %v992_v11, %v1927_v63  ;;  %v1446_v25 = vpop.f32.mrb[23].mxu0 }
 0x85c   : > { %v1041_v26 = vpop.xlane.xlu1 %1040 }
 0x85d   : > { %v998_v30 = vmul.f32 0.2, %v996_v22  ;;  %v997_v31 = vadd.f32 %v1965_v57, %v993_v24  ;;  %v1042_v62 = vcvt.f32.s32 %v1041_v26  ;;  %vm1046_vm13 = vcmp.eq.s32.totalorder %v1851_v33, %v1030_v16 }
 0x85e   : > { %v1048_v38 = vsel %vm1046_vm13, 1.0, %v1657_v52 }
 0x85f   : > { %v1000_v6 = vmax.f32 %v996_v22, %v998_v30  ;;  %v999_v32 = vmul.f32 0.2, %v997_v31  ;;  %v1045_v35 = vadd.s32 %v1044_v29, %v1042_v62 }
 0x861   : > { %v1002_v36 = vmax.f32 %v1977_v1, %v1000_v6  ;;  %v1001_v37 = vmax.f32 %v997_v31, %v999_v32  ;;  %vm1047_vm14 = vcmp.eq.s32.totalorder %v1851_v33, %v1045_v35 }
 0x862   : > { %v1049_v23 = vsel %vm1047_vm14, 1.0, %v1657_v52 }
 0x863   : > { %v1003_v40 = vmax.f32 %v1983_v39, %v1001_v37  ;;  %v1050_v28 = vpack.c.bf16 %v1049_v23, %v1048_v38 }
 0x865   : > { %1450 = vmatmul.mubr.msk.bf16.vlgmr.msra.gmra.mrb[8].mxu1 %vm557_vm2, %v1050_v28 }
 0x866   : > { %1454 = vmatpush3.bf16.msra.mxu1 %v1880_v17  ;;  %1461 = vmatprep.mubr.msk.bf16.mxu1 %vm1658_vm7, %v1657_v52 }
 0x867   : > { %1455 = vmatprep.subr.bf16.mxu1 %v1657_v52 }
 0x86a   : > { %1456 = vmatpush3.bf16.msra.mxu1 %v1884_v21 }
 0x86b   : > { %1457 = vmatprep.subr.bf16.mxu1 %v1657_v52 }
 0x86e   : > { %1458 = vmatpush3.bf16.msra.mxu1 %v1891_v27 }
 0x86f   : > { %1459 = vmatprep.subr.bf16.mxu1 %v1657_v52 }
 0x872   : > { %1460 = vmatpush3.bf16.msra.mxu1 %v1895_v34 }
 0x938   : > { %v1088_v33 = vpop.f32.mrb[8].mxu1 }
 0x939   : > { %v1451_v1 = vpop.f32.mrb[9].mxu1  ;;  %v1095_v17 = vsub.f32 %v1088_v33, %v1827_v3 }
 0x93a   : > { %v1091_v39 = vpop.f32.mrb[10].mxu1 }
 0x93b   : > { %v1096_v41 = vsub.f32 %v1091_v39, %v1830_v4  ;;  %v1452_v42 = vpop.f32.mrb[11].mxu1 }
 0x93d   : > { %v1097_v43 = vpack.c.bf16 %v1096_v41, %v1095_v17 }
 0x93f   : > { %1462 = vmatmul.mubr.msk.bf16.vlgmr.msra.gmra.mrb[12].mxu1 %vm335_vm0, %v1097_v43 }
 0xa12   : > { %v1135_v21 = vpop.f32.mrb[12].mxu1 }
 0xa13   : > { %v1136_v44 = vadd.f32 %v1135_v21, %v1925_v60  ;;  %v1463_v27 = vpop.f32.mrb[13].mxu1 }
 0xa14   : > { %v1138_v45 = vpop.f32.mrb[14].mxu1 }
 0xa15   : > { %v1142_v52 = vadd.f32 %v1965_v57, %v1136_v44  ;;  %v1139_v34 = vadd.f32 %v1138_v45, %v1927_v63  ;;  %v1464_v46 = vpop.f32.mrb[15].mxu1 }
 0xa17   : > { %v1144_v47 = vmul.f32 0.2, %v1142_v52  ;;  %v1143_v3 = vadd.f32 %v1965_v57, %v1139_v34 }
 0xa19   : > { %v1146_v48 = vmax.f32 %v1142_v52, %v1144_v47  ;;  %v1145_v4 = vmul.f32 0.2, %v1143_v3 }
 0xa1b   : > { %v1148_v49 = vmax.f32 %v1002_v36, %v1146_v48  ;;  %v1147_v50 = vmax.f32 %v1143_v3, %v1145_v4 }
 0xa1d   : > { %v1149_v51 = vmax.f32 %v1003_v40, %v1147_v50 }
 0xa1f   : > { %v1335_v60 = vpack.c.bf16 %v1149_v51, %v1148_v49 }
 0xa21   : > { %1336 = vst [vmem:[%s324_s13] sm:$0xff] %v1335_v60  }
 0xa22 PF: > { %s17_s20 = sadd.s32 1, %s1650_s20   ;;  %s2059_s18 = smov %s1646_s19 }
 0xa23   : > { %p14_p5 = scmp.ge.s32.totalorder %s17_s20, 4   ;;  %s2060_s19 = smov %s2062_s27 }
 0xa25   :  { %16 = sbr.rel (!%p14_p5) target bundleno = 3 (0x3), region = 86 }
 0xa2c   :  { %1190 = vsyncpa [#allocation3], 1 }
 0xa2d   :  { %1192 = vsyncpa [#allocation3 + $0x1], 1 }
 0xa2e   :  { %1193 = vsyncpa [#allocation5], 1 }

// kernel: dgcnn_forward.5
= control target key start
LH: loop header
LB: loop body
LE: loop exit
PB: predicated region body
PF: predicated region fallthrough
CT: control target
= control target key end

     0   :  { %10 = vsyncpa [#allocation3], 0  ;;  %s2099_s0 = inlined_call_operand.vmem [shape: f32[2,16,3], index: 0, kind: input, shape index: {}, may-alias: {0,1}]   ;;  %s2100_s1 = inlined_call_operand.vmem [shape: f32[2,16,3], index: 1, kind: input, shape index: {}, may-alias: {0,1}]   ;;  %s2101_s2 = inlined_call_operand.hbm [shape: f32[3,64], index: 2, kind: input, shape index: {}]   ;;  %s2102_s3 = inlined_call_operand.hbm [shape: f32[3,64], index: 3, kind: input, shape index: {}]   ;;  %s2103_s4 = inlined_call_operand.hbm [shape: f32[1,64], index: 4, kind: input, shape index: {}]   ;;  %s2104_s5 = inlined_call_operand.vmem [shape: bf16[2,16,64], index: 5, kind: output, shape index: {}]  }
   0x1   :  { %11 = vsyncpa [#allocation5], 0  ;;  %s1778_s18 = smov 0   ;;  %s1780_s19 = smov 0  }
   0x2   :  { %s1782_s20 = smov 0  }
   0x3 LB: > { %s1742_s21 = smov [#allocation4]   ;;  %s1407_s23 = sadd.s32 4294967295, %s1740_s20   ;;  %s1740_s20 = sphi %s1782_s20, %s17_s20   ;;  %s1736_s19 = sphi %s1780_s19, %s2117_s19   ;;  %s1732_s18 = sphi %s1778_s18, %s2116_s18  }
   0x4   : > { %s203_s22 = sshll.u32 %s1742_s21, 4  ;;  %p1409_p0 = scmp.ge.s32.totalorder %s1740_s20, 1  ;;  %s204_s22 = int_to_ptr.vmem [resolvable:$true] %s203_s22 }
   0x5   : > { %p179_p1 = scmp.lt.s32.totalorder %s1740_s20, 3  ;;  %p1796_p2 = scmp.eq.s32.totalorder %s1407_s23, 0 }
   0x6   : > { %s29_s26 = sadd.s32 1, %s1736_s19  ;;  %s1743_s29 = smov [#allocation2]  }
   0x7   : > { %s2108_s24 = scalar_select %p1796_p2, 1, 0 }
   0x8   : > { %p1800_p3 = pnand %p1409_p0, %p179_p1  ;;  %p1813_p6 = scmp.ge.s32.totalorder %s29_s26, 2 }
   0x9   : > { %s192_s30 = sshll.u32 %s1743_s29, 4  ;;  %s1626_s8 = scalar_lea.hbm %s2102_s3, 64  ;;  %s1817_s30 = int_to_ptr.vmem [resolvable:$true] %s192_s30 }
   0xa   : > { %s2109_s25 = scalar_select %p1800_p3, 1, 0 }
   0xb   : > { %p1580_p4 = pneg %p1800_p3  ;;  %p1627_p7 = scmp.ne.s32.totalorder %s2102_s3, %s1626_s8 }
   0xc   : > { %s2111_s28 = scalar_select %p1813_p6, 1, 0 }
   0xd   : > { %p1809_p5 = pnand %p1796_p2, %p1580_p4  ;;  %p1633_p11 = scmp.lt.u32.totalorder %s1626_s8, %s2102_s3 }
   0xf   : > { %p1827_p8 = pneg %p1809_p5 }
  0x11   : > { %p1629_p9 = pnand %p1827_p8, %p1627_p7 }
  0x13   : > { %p1630_p10 = pneg %p1629_p9 }
  0x15   : > { %p1635_p12 = pnand %p1633_p11, %p1630_p10 }
  0x17   : > { %1638 = shalt.err (!%p1635_p12)
}
  0x18   : > { %s1639_s14 = scalar_lea.vmem %s204_s22, 64  ;;  %p1647_p4 = scmp.lt.s32.totalorder %s204_s22, %s204_s22 }
  0x19   : > { %p1640_p13 = scmp.ne.s32.totalorder %s204_s22, %s1639_s14  ;;  %p1648_p2 = scmp.lt.s32.totalorder %s1639_s14, %s1639_s14 }
  0x1b   : > { %p1642_p0 = pnand %p1640_p13, %p1827_p8  ;;  %p1649_p3 = por %p1648_p2, %p1647_p4 }
  0x1d   : > { %p1643_p1 = pneg %p1642_p0 }
  0x1f   : > { %p1650_p6 = pnand %p1649_p3, %p1643_p1 }
  0x21   : > { %1653 = shalt.err (!%p1650_p6)
}
  0x22   : > { %1586 = dma.hbm_to_vmem [thread:$0]  (!%p1809_p5), %s2102_s3, 64, %s204_s22, [#allocation5]  }
  0x23   : > { %p2113_p7 = scmp.ne.s32.totalorder %s2111_s28, 0  ;;  %s1654_s23 = scalar_lea.hbm %s2101_s2, 64 }
  0x24   : > { %p1655_p2 = scmp.ne.s32.totalorder %s2101_s2, %s1654_s23  ;;  %p1661_p9 = scmp.lt.u32.totalorder %s1654_s23, %s2101_s2 }
  0x25   : > { %s2119_s26 = smov (%p2113_p7, %s29_s26), 0 }
  0x26   : > { %p1657_p3 = pnand %p1655_p2, %p1827_p8 }
  0x28   : > { %p1658_p6 = pneg %p1657_p3 }
  0x2a   : > { %p1663_p10 = pnand %p1661_p9, %p1658_p6 }
  0x2c   : > { %1666 = shalt.err (!%p1663_p10)
}
  0x2d   : > { %s1667_s22 = scalar_lea.vmem %s1817_s30, 64  ;;  %p1675_p0 = scmp.lt.s32.totalorder %s1817_s30, %s1817_s30 }
  0x2e   : > { %p1668_p11 = scmp.ne.s32.totalorder %s1817_s30, %s1667_s22  ;;  %p1676_p1 = scmp.lt.s32.totalorder %s1667_s22, %s1667_s22 }
  0x30   : > { %p1670_p12 = pnand %p1668_p11, %p1827_p8  ;;  %p1677_p4 = por %p1676_p1, %p1675_p0 }
  0x32   : > { %p1671_p13 = pneg %p1670_p12 }
  0x34   : > { %p1678_p7 = pnand %p1677_p4, %p1671_p13 }
  0x36   : > { %1681 = shalt.err (!%p1678_p7)
}
  0x37   : > { %1583 = dma.hbm_to_vmem [thread:$0]  (!%p1809_p5), %s2101_s2, 64, %s1817_s30, [#allocation3]  }
  0x38   : > { %s1744_s10 = smov [#allocation6]   ;;  %s1682_s15 = scalar_lea.hbm %s2103_s4, 16 }
  0x39   : > { %s214_s12 = sshll.u32 %s1744_s10, 4  ;;  %p1683_p2 = scmp.ne.s32.totalorder %s2103_s4, %s1682_s15  ;;  %s215_s12 = int_to_ptr.vmem [resolvable:$true] %s214_s12 }
  0x3a   : > { %p1689_p9 = scmp.lt.u32.totalorder %s1682_s15, %s2103_s4 }
  0x3b   : > { %p1685_p3 = pnand %p1683_p2, %p1827_p8 }
  0x3d   : > { %p1686_p6 = pneg %p1685_p3 }
  0x3f   : > { %p1691_p10 = pnand %p1689_p9, %p1686_p6 }
  0x41   : > { %1694 = shalt.err (!%p1691_p10)
}
  0x42   : > { %s1695_s30 = scalar_lea.vmem %s215_s12, 16  ;;  %s1702_s29 = scalar_lea.vmem %s215_s12, 32 }
  0x43   : > { %p1696_p11 = scmp.ne.s32.totalorder %s215_s12, %s1695_s30  ;;  %p1703_p0 = scmp.lt.s32.totalorder %s215_s12, %s215_s12 }
  0x44   : > { %p1704_p1 = scmp.lt.s32.totalorder %s1702_s29, %s1695_s30 }
  0x45   : > { %p1698_p12 = pnand %p1696_p11, %p1827_p8 }
  0x46   : > { %p1705_p4 = por %p1704_p1, %p1703_p0 }
  0x47   : > { %p1699_p13 = pneg %p1698_p12 }
  0x49   : > { %p1706_p7 = pnand %p1705_p4, %p1699_p13 }
  0x4b   : > { %1709 = shalt.err (!%p1706_p7)
}
  0x4c   : > { %1589 = dma.hbm_to_vmem [thread:$0]  (!%p1809_p5), %s2103_s4, 16, %s215_s12, [#allocation5]  }
  0x4d   : > { %p2114_p2 = scmp.ne.s32.totalorder %s2109_s25, 0 }
  0x4e   : > { %p2115_p3 = scmp.ne.s32.totalorder (!%p2114_p2), %s2108_s24, 0 }
  0x4f   : > { %248 = sbr.rel (%p2114_p2) target bundleno = 2589 (0xa1d), region = 40 }
  0x56   : > { %1723 = dma.done.wait (%p2115_p3), [#allocation3], 64  }
  0x57   : > { %1725 = vsyncadd (%p2115_p3), [#allocation3], 4294967232 }
  0x58   : > { %1727 = dma.done.wait (%p2115_p3), [#allocation5], 80  }
  0x59   : > { %1729 = vsyncadd (%p2115_p3), [#allocation5], 4294967216  ;;  %p297_p8 = scmp.lt.s32.totalorder %s1732_s18, 1  ;;  %vm327_vm0 = vcmask 23552   ;;  %v467_v17 = vlaneseq  ;;  %vm532_vm2 = vcmask 130048   ;;  %vm482_vm5 = vcmask 1040384  }
  0x5a   : > { %vm1547_vm1 = vmpackc.low %vm327_vm0, %vm327_vm0  ;;  %v475_v43 = vld [vmem:[#allocation4] sm:$0x7]  ;;  %v1745_v44 = vmov 0.0   ;;  %vm483_vm6 = vcmask 1041408   ;;  %v1746_v46 = vmov 65535   ;;  %vm1747_vm9 = vmmov 0  }
  0x5b   : > { %s2121_s18 = smov (!%p297_p8, %s1732_s18), 1  ;;  %v468_v19 = vshrl.u32 %v467_v17, 7  ;;  %v1941_v32 = vand.u32 127, %v467_v17  ;;  %1488 = vmatprep.subr.bf16.mxu1 %v1745_v44  ;;  %v476_v45 = vpack.c.bf16 %v475_v43, %v475_v43  ;;  %v484_v47 = vsel %vm482_vm5, 4294967295, %v1746_v46  ;;  %1490 = vmatprep.mubr.msk.bf16.mxu1 %vm1747_vm9, %v1745_v44  ;;  %v473_v63 = vld [vmem:[#allocation2] sm:$0x7] }
  0x5c   : > { %s1446_s25 = sshll.u32 %s2121_s18, 4  ;;  %v485_v48 = vsel %vm483_vm6, %v484_v47, 0  ;;  %s1448_s24 = sshll.u32 %s2121_s18, 3 }
  0x5d   : > { %s301_s8 = scalar_lea.vmem %s2099_s0, %s1446_s25  ;;  %s310_s9 = scalar_lea.vmem %s2100_s1, %s1446_s25  ;;  %v469_v22 = vsub.s32 0, %v468_v19  ;;  %v487_v49 = vand.u32 %v485_v48, %v476_v45 }
  0x5e   : > { %v323_v0 = vld [vmem:[%s301_s8] sm:$0xff]  ;;  %v1911_v2 = vld [vmem:[%s310_s9 + $0x8] sm:$0xff]  ;;  %s320_s13 = scalar_lea.vmem %s2104_s5, %s1448_s24 }
  0x5f   : > { %v1909_v1 = vld [vmem:[%s310_s9] sm:$0xff]  ;;  %v423_v3 = vmul.f32 %v323_v0, %v323_v0  ;;  %v324_v4 = vld [vmem:[%s301_s8 + $0x8] sm:$0xff]  ;;  %v416_v8 = vmul.f32 %v1911_v2, %v1911_v2  ;;  %1489 = vmatpush3.bf16.msra.mxu1 %v487_v49 }
  0x60   : > { %1485 = vmatprep.mubr.msk.f32.mxu0 %vm327_vm0, %v1909_v1  ;;  %v415_v5 = vmul.f32 %v1909_v1, %v1909_v1  ;;  %v424_v6 = vmul.f32 %v324_v4, %v324_v4  ;;  %v1919_v7 = vpack.c.bf16 %v324_v4, %v323_v0  ;;  %v478_v58 = vpack.c.bf16 %v1911_v2, %v1909_v1 }
  0x61   : > { %v425_v9 = vsel %vm327_vm0, %v423_v3, 0.0  ;;  %v420_v12 = vsel %vm327_vm0, %v416_v8, 0.0  ;;  %v474_v4 = vpack.c.bf16 %v473_v63, %v473_v63 }
  0x62   : > { %v417_v10 = vsel %vm327_vm0, %v415_v5, 0.0  ;;  %426 = vadd.xlane.f32.xlu0 %v425_v9  ;;  %1548 = vmatprep.subr.msk.bf16.mxu0 %vm1547_vm1, %v1919_v7  ;;  %v428_v11 = vsel %vm327_vm0, %v424_v6, 0.0 }
  0x63   : > { %1551 = vmatpush3.bf16.xpose.msk.msra.mxu0 %vm1547_vm1, %v1919_v7  ;;  %418 = vadd.xlane.f32.xlu1 %v417_v10 }
  0x64   : > { %1557 = vmatprep.subr.bf16.mxu0 %v1919_v7  ;;  %1553 = vmatprep.subr.bf16.mxu1 %v1919_v7 }
  0x65   : > { %1491 = vmatmul.mubr.msk.bf16.vlgmr.msra.gmra.mrb[0].mxu1 %vm327_vm0, %v478_v58 }
  0x66   : > { %429 = vadd.xlane.f32.xlu0 %v428_v11  ;;  %1555 = vmatpush3.bf16.msra.mxu1 %v1919_v7 }
  0x67   : > { %421 = vadd.xlane.f32.xlu1 %v420_v12  ;;  %1501 = vmatprep.subr.bf16.mxu1 %v1745_v44 }
  0x6a   : > { %1486 = vmatmul.mubr.msk.f32.vlgmr.msra.gmra.mrb[0].mxu0 %vm327_vm0, %v1911_v2 }
  0x6b   : > { %1559 = vmatpush3.bf16.msra.mxu0 %v1919_v7 }
  0x6c   : > { %1514 = vmatprep.subr.bf16.mxu0 %v1745_v44 }
  0xef   : > { %v427_v13 = vpop.xlane.xlu0 %426 }
  0xf0   : > { %435 = vxpose.xlu0.b32.start [1/2] (short) (narrow) %v427_v13, 8  ;;  %v419_v18 = vpop.xlane.xlu1 %418  ;;  %v1967_v13 = vand.u32 %v485_v48, %v474_v4 }
  0xf3   : > { %v430_v14 = vpop.xlane.xlu0 %429 }
  0xf4   : > { %436 = vxpose.xlu0.b32.end [2/2] (short) (narrow) %v430_v14, 8  ;;  %v422_v23 = vpop.xlane.xlu1 %421 }
 0x138   : > { %v1981_v17 = vpop.f32.mrb[0].mxu1 }
 0x13d   : > { %v1487_v15 = vpop.f32.mrb[0].mxu0 }
 0x13e   : > { %v406_v16 = vpop.f32.mrb[1].mxu0  ;;  %v432_v21 = vmul.f32 2.0, %v1487_v15 }
 0x13f   : > { %v431_v20 = vmul.f32 2.0, %v406_v16 }
 0x140   : > { %v434_v26 = vsub.f32 %v432_v21, %v422_v23 }
 0x141   : > { %v433_v24 = vsub.f32 %v431_v20, %v419_v18  ;;  %v1492_v18 = vpop.f32.mrb[1].mxu1 }
 0x142   : > { %v1983_v19 = vpop.f32.mrb[2].mxu1 }
 0x143   : > { %v1493_v20 = vpop.f32.mrb[3].mxu1 }
 0x170   : > { %v451_v25 = vpop.trf.xlu0 }
 0x171   : > { %v470_v27 = vrot.slane %v451_v25, %v469_v22 }
 0x173   : > { %v1933_v28 = vsub.f32 %v433_v24, %v470_v27  ;;  %v1935_v29 = vsub.f32 %v434_v26, %v470_v27 }
 0x175   : > { %v533_v30 = vsel %vm532_vm2, %v1933_v28, -inf  ;;  %v536_v31 = vsel %vm532_vm2, %v1935_v29, -inf }
 0x176   : > { %534 = vmax.xlane.f32.xlu1 %v533_v30 }
 0x17a   : > { %537 = vmax.xlane.f32.xlu1 %v536_v31 }
 0x203   : > { %v535_v33 = vpop.xlane.xlu1 %534 }
 0x204   : > { %vm539_vm3 = vcmp.ge.f32.partialorder %v1933_v28, %v535_v33 }
 0x205   : > { %v541_v34 = vsel %vm539_vm3, %v1941_v32, 16 }
 0x206   : > { %v543_v35 = vsel %vm532_vm2, %v541_v34, 2147483647 }
 0x207   : > { %v538_v36 = vpop.xlane.xlu1 %537  ;;  %v545_v37 = vshra.s32 %v543_v35, 16  ;;  %v544_v50 = vand.u32 65535, %v543_v35 }
 0x208   : > { %vm540_vm4 = vcmp.ge.f32.partialorder %v1935_v29, %v538_v36 }
 0x209   : > { %v542_v38 = vsel %vm540_vm4, %v1941_v32, 16  ;;  %v547_v39 = vcvt.s32.f32 %v545_v37  ;;  %v546_v52 = vcvt.s32.f32 %v544_v50 }
 0x20a   : > { %v558_v40 = vsel %vm532_vm2, %v542_v38, 2147483647 }
 0x20b   : > { %548 = vmin.xlane.f32.xlu1 %v547_v39  ;;  %v560_v41 = vshra.s32 %v558_v40, 16  ;;  %v559_v53 = vand.u32 65535, %v558_v40 }
 0x20d   : > { %v562_v42 = vcvt.s32.f32 %v560_v41  ;;  %v561_v56 = vcvt.s32.f32 %v559_v53 }
 0x20f   : > { %563 = vmin.xlane.f32.xlu1 %v562_v42 }
 0x298   : > { %v549_v51 = vpop.xlane.xlu1 %548 }
 0x299   : > { %vm550_vm7 = vcmp.eq.f32.partialorder %v547_v39, %v549_v51  ;;  %v555_v59 = vcvt.f32.s32 %v549_v51 }
 0x29a   : > { %v551_v54 = vsel %vm550_vm7, %v546_v52, inf }
 0x29b   : > { %552 = vmin.xlane.f32.xlu1 %v551_v54  ;;  %v556_v61 = vshll.u32 %v555_v59, 16 }
 0x29c   : > { %v564_v55 = vpop.xlane.xlu1 %563 }
 0x29d   : > { %vm565_vm8 = vcmp.eq.f32.partialorder %v562_v42, %v564_v55  ;;  %v570_v62 = vcvt.f32.s32 %v564_v55 }
 0x29e   : > { %v566_v57 = vsel %vm565_vm8, %v561_v56, inf }
 0x29f   : > { %567 = vmin.xlane.f32.xlu1 %v566_v57  ;;  %v571_v6 = vshll.u32 %v570_v62, 16 }
 0x328   : > { %v553_v60 = vpop.xlane.xlu1 %552 }
 0x329   : > { %v554_v0 = vcvt.f32.s32 %v553_v60 }
 0x32b   : > { %v557_v3 = vadd.s32 %v556_v61, %v554_v0 }
 0x32c   : > { %v568_v5 = vpop.xlane.xlu1 %567 }
 0x32d   : > { %v569_v8 = vcvt.f32.s32 %v568_v5  ;;  %vm573_vm10 = vcmp.eq.s32.totalorder %v1941_v32, %v557_v3 }
 0x32e   : > { %v575_v9 = vsel %vm573_vm10, 1.0, %v1745_v44  ;;  %v1962_v10 = vsel %vm573_vm10, -inf, %v1933_v28 }
 0x32f   : > { %v572_v11 = vadd.s32 %v571_v6, %v569_v8  ;;  %1498 = vmatprep.mubr.msk.f32.mxu1 %vm532_vm2, %v575_v9  ;;  %v722_v12 = vsel %vm532_vm2, %v1962_v10, -inf }
 0x330   : > { %723 = vmax.xlane.f32.xlu1 %v722_v12 }
 0x331   : > { %vm574_vm11 = vcmp.eq.s32.totalorder %v1941_v32, %v572_v11 }
 0x332   : > { %v576_v14 = vsel %vm574_vm11, 1.0, %v1745_v44  ;;  %v1972_v15 = vsel %vm574_vm11, -inf, %v1935_v29 }
 0x333   : > { %1499 = vmatmul.mubr.msk.f32.vlgmr.msra.gmra.mrb[4].mxu1 %vm532_vm2, %v576_v14  ;;  %v725_v16 = vsel %vm532_vm2, %v1972_v15, -inf }
 0x334   : > { %726 = vmax.xlane.f32.xlu1 %v725_v16  ;;  %1502 = vmatpush3.bf16.msra.mxu1 %v1967_v13 }
 0x335   : > { %1503 = vmatprep.mubr.msk.bf16.mxu1 %vm1747_vm9, %v1745_v44  ;;  %1561 = vmatprep.subr.bf16.mxu1 %v1919_v7 }
 0x3bd   : > { %v724_v21 = vpop.xlane.xlu1 %723 }
 0x3be   : > { %vm728_vm12 = vcmp.ge.f32.partialorder %v1962_v10, %v724_v21 }
 0x3bf   : > { %v730_v22 = vsel %vm728_vm12, %v1941_v32, 16 }
 0x3c0   : > { %v732_v23 = vsel %vm532_vm2, %v730_v22, 2147483647 }
 0x3c1   : > { %v727_v24 = vpop.xlane.xlu1 %726  ;;  %v734_v25 = vshra.s32 %v732_v23, 16  ;;  %v733_v37 = vand.u32 65535, %v732_v23 }
 0x3c2   : > { %vm729_vm13 = vcmp.ge.f32.partialorder %v1972_v15, %v727_v24 }
 0x3c3   : > { %v731_v26 = vsel %vm729_vm13, %v1941_v32, 16  ;;  %v736_v27 = vcvt.s32.f32 %v734_v25  ;;  %v735_v39 = vcvt.s32.f32 %v733_v37 }
 0x3c4   : > { %v747_v28 = vsel %vm532_vm2, %v731_v26, 2147483647 }
 0x3c5   : > { %737 = vmin.xlane.f32.xlu1 %v736_v27  ;;  %v749_v29 = vshra.s32 %v747_v28, 16  ;;  %v748_v40 = vand.u32 65535, %v747_v28 }
 0x3c7   : > { %v751_v30 = vcvt.s32.f32 %v749_v29  ;;  %v750_v43 = vcvt.s32.f32 %v748_v40 }
 0x3c9   : > { %752 = vmin.xlane.f32.xlu1 %v751_v30 }
 0x406   : > { %v1500_v31 = vpop.f32.mrb[4].mxu1 }
 0x407   : > { %v659_v33 = vsub.f32 %v1500_v31, %v1911_v2  ;;  %v649_v34 = vpop.f32.mrb[5].mxu1 }
 0x408   : > { %v658_v35 = vsub.f32 %v649_v34, %v1909_v1  ;;  %v2031_v34 = vld [vmem:[#allocation6] ss:$0 sm:$0xff] }
 0x40a   : > { %v660_v36 = vpack.c.bf16 %v659_v33, %v658_v35 }
 0x40c   : > { %1504 = vmatmul.mubr.msk.bf16.vlgmr.msra.gmra.mrb[8].mxu1 %vm327_vm0, %v660_v36 }
 0x40d   : > { %1563 = vmatpush3.bf16.msra.mxu1 %v1919_v7 }
 0x40e   : > { %1527 = vmatprep.subr.bf16.mxu1 %v1745_v44 }
 0x452   : > { %v738_v38 = vpop.xlane.xlu1 %737 }
 0x453   : > { %vm739_vm14 = vcmp.eq.f32.partialorder %v736_v27, %v738_v38  ;;  %v744_v46 = vcvt.f32.s32 %v738_v38 }
 0x454   : > { %v740_v41 = vsel %vm739_vm14, %v735_v39, inf }
 0x455   : > { %741 = vmin.xlane.f32.xlu1 %v740_v41  ;;  %v745_v54 = vshll.u32 %v744_v46, 16 }
 0x456   : > { %v753_v42 = vpop.xlane.xlu1 %752 }
 0x457   : > { %vm754_vm15 = vcmp.eq.f32.partialorder %v751_v30, %v753_v42  ;;  %v759_v55 = vcvt.f32.s32 %v753_v42 }
 0x458   : > { %v755_v45 = vsel %vm754_vm15, %v750_v43, inf }
 0x459   : > { %756 = vmin.xlane.f32.xlu1 %v755_v45  ;;  %v760_v59 = vshll.u32 %v759_v55, 16 }
 0x4df   : > { %v701_v47 = vpop.f32.mrb[8].mxu1 }
 0x4e0   : > { %v1997_v48 = vadd.f32 %v701_v47, %v1981_v17  ;;  %v1505_v49 = vpop.f32.mrb[9].mxu1 }
 0x4e1   : > { %v704_v50 = vpop.f32.mrb[10].mxu1 }
 0x4e2   : > { %v705_v51 = vadd.f32 %v704_v50, %v1983_v19  ;;  %v1506_v52 = vpop.f32.mrb[11].mxu1  ;;  %v742_v53 = vpop.xlane.xlu1 %741  ;;  %v714_v35 = vadd.f32 %v2031_v34, %v1997_v48 }
 0x4e3   : > { %v743_v56 = vcvt.f32.s32 %v742_v53 }
 0x4e4   : > { %v716_v41 = vmul.f32 0.2, %v714_v35 }
 0x4e5   : > { %v746_v57 = vadd.s32 %v745_v54, %v743_v56 }
 0x4e6   : > { %v757_v58 = vpop.xlane.xlu1 %756  ;;  %v718_v54 = vmax.f32 %v714_v35, %v716_v41 }
 0x4e7   : > { %v758_v60 = vcvt.f32.s32 %v757_v58  ;;  %vm762_vm1 = vcmp.eq.s32.totalorder %v1941_v32, %v746_v57 }
 0x4e8   : > { %v764_v61 = vsel %vm762_vm1, 1.0, %v1745_v44  ;;  %v2003_v62 = vsel %vm762_vm1, -inf, %v1962_v10 }
 0x4e9   : > { %v761_v63 = vadd.s32 %v760_v59, %v758_v60  ;;  %1511 = vmatprep.mubr.msk.f32.mxu0 %vm532_vm2, %v764_v61  ;;  %v904_v0 = vsel %vm532_vm2, %v2003_v62, -inf }
 0x4ea   : > { %905 = vmax.xlane.f32.xlu1 %v904_v0 }
 0x4eb   : > { %vm763_vm3 = vcmp.eq.s32.totalorder %v1941_v32, %v761_v63 }
 0x4ec   : > { %v765_v3 = vsel %vm763_vm3, 1.0, %v1745_v44  ;;  %v2011_v4 = vsel %vm763_vm3, -inf, %v1972_v15 }
 0x4ed   : > { %1512 = vmatmul.mubr.msk.f32.vlgmr.msra.gmra.mrb[2].mxu0 %vm532_vm2, %v765_v3  ;;  %v907_v5 = vsel %vm532_vm2, %v2011_v4, -inf }
 0x4ee   : > { %908 = vmax.xlane.f32.xlu0 %v907_v5  ;;  %1515 = vmatpush3.bf16.msra.mxu0 %v1967_v13 }
 0x4ef   : > { %1516 = vmatprep.mubr.msk.bf16.mxu0 %vm1747_vm9, %v1745_v44  ;;  %1565 = vmatprep.subr.bf16.mxu0 %v1919_v7 }
 0x577   : > { %v906_v6 = vpop.xlane.xlu1 %905 }
 0x578   : > { %vm910_vm4 = vcmp.ge.f32.partialorder %v2003_v62, %v906_v6 }
 0x579   : > { %v912_v8 = vsel %vm910_vm4, %v1941_v32, 16 }
 0x57a   : > { %v914_v9 = vsel %vm532_vm2, %v912_v8, 2147483647 }
 0x57b   : > { %v909_v10 = vpop.xlane.xlu0 %908  ;;  %v916_v11 = vshra.s32 %v914_v9, 16  ;;  %v915_v25 = vand.u32 65535, %v914_v9 }
 0x57c   : > { %vm911_vm5 = vcmp.ge.f32.partialorder %v2011_v4, %v909_v10 }
 0x57d   : > { %v913_v12 = vsel %vm911_vm5, %v1941_v32, 16  ;;  %v918_v14 = vcvt.s32.f32 %v916_v11  ;;  %v917_v27 = vcvt.s32.f32 %v915_v25 }
 0x57e   : > { %v929_v15 = vsel %vm532_vm2, %v913_v12, 2147483647 }
 0x57f   : > { %919 = vmin.xlane.f32.xlu1 %v918_v14  ;;  %v931_v16 = vshra.s32 %v929_v15, 16  ;;  %v930_v28 = vand.u32 65535, %v929_v15 }
 0x581   : > { %v933_v18 = vcvt.s32.f32 %v931_v16  ;;  %v932_v31 = vcvt.s32.f32 %v930_v28 }
 0x583   : > { %934 = vmin.xlane.f32.xlu1 %v933_v18 }
 0x5c0   : > { %v1513_v20 = vpop.f32.mrb[2].mxu0 }
 0x5c1   : > { %v848_v21 = vsub.f32 %v1513_v20, %v1911_v2  ;;  %v838_v22 = vpop.f32.mrb[3].mxu0 }
 0x5c2   : > { %v847_v23 = vsub.f32 %v838_v22, %v1909_v1 }
 0x5c4   : > { %v849_v24 = vpack.c.bf16 %v848_v21, %v847_v23 }
 0x5c6   : > { %1517 = vmatmul.mubr.msk.bf16.vlgmr.msra.gmra.mrb[4].mxu0 %vm327_vm0, %v849_v24 }
 0x5c7   : > { %1567 = vmatpush3.bf16.msra.mxu0 %v1919_v7  ;;  %v715_v7 = vadd.f32 %v2031_v34, %v705_v51 }
 0x5c8   : > { %1540 = vmatprep.subr.bf16.mxu0 %v1745_v44 }
 0x5c9   : > { %v717_v47 = vmul.f32 0.2, %v715_v7 }
 0x5cb   : > { %v719_v58 = vmax.f32 %v715_v7, %v717_v47 }
 0x60c   : > { %v920_v26 = vpop.xlane.xlu1 %919 }
 0x60d   : > { %vm921_vm6 = vcmp.eq.f32.partialorder %v918_v14, %v920_v26  ;;  %v926_v36 = vcvt.f32.s32 %v920_v26 }
 0x60e   : > { %v922_v29 = vsel %vm921_vm6, %v917_v27, inf }
 0x60f   : > { %923 = vmin.xlane.f32.xlu1 %v922_v29  ;;  %v927_v49 = vshll.u32 %v926_v36, 16 }
 0x610   : > { %v935_v30 = vpop.xlane.xlu1 %934 }
 0x611   : > { %vm936_vm7 = vcmp.eq.f32.partialorder %v933_v18, %v935_v30  ;;  %v941_v50 = vcvt.f32.s32 %v935_v30 }
 0x612   : > { %v937_v33 = vsel %vm936_vm7, %v932_v31, inf }
 0x613   : > { %938 = vmin.xlane.f32.xlu1 %v937_v33  ;;  %v942_v59 = vshll.u32 %v941_v50, 16 }
 0x699   : > { %v887_v37 = vpop.f32.mrb[4].mxu0 }
 0x69a   : > { %v888_v38 = vadd.f32 %v887_v37, %v1981_v17  ;;  %v1518_v39 = vpop.f32.mrb[5].mxu0 }
 0x69b   : > { %v890_v40 = vpop.f32.mrb[6].mxu0 }
 0x69c   : > { %v894_v42 = vadd.f32 %v2031_v34, %v888_v38  ;;  %v891_v43 = vadd.f32 %v890_v40, %v1983_v19  ;;  %v1519_v45 = vpop.f32.mrb[7].mxu0  ;;  %v924_v46 = vpop.xlane.xlu1 %923 }
 0x69d   : > { %v925_v52 = vcvt.f32.s32 %v924_v46 }
 0x69e   : > { %v896_v48 = vmul.f32 0.2, %v894_v42  ;;  %v895_v51 = vadd.f32 %v2031_v34, %v891_v43 }
 0x69f   : > { %v928_v53 = vadd.s32 %v927_v49, %v925_v52 }
 0x6a0   : > { %v898_v55 = vmax.f32 %v894_v42, %v896_v48  ;;  %v897_v56 = vmul.f32 0.2, %v895_v51  ;;  %v939_v57 = vpop.xlane.xlu1 %938 }
 0x6a1   : > { %v940_v60 = vcvt.f32.s32 %v939_v57  ;;  %vm944_vm8 = vcmp.eq.s32.totalorder %v1941_v32, %v928_v53 }
 0x6a2   : > { %v2041_v61 = vmax.f32 %v718_v54, %v898_v55  ;;  %v899_v63 = vmax.f32 %v895_v51, %v897_v56  ;;  %v946_v0 = vsel %vm944_vm8, 1.0, %v1745_v44  ;;  %v1084_v3 = vsel %vm944_vm8, -inf, %v2003_v62 }
 0x6a3   : > { %v943_v5 = vadd.s32 %v942_v59, %v940_v60  ;;  %1524 = vmatprep.mubr.msk.f32.mxu1 %vm532_vm2, %v946_v0  ;;  %v1086_v6 = vsel %vm532_vm2, %v1084_v3, -inf }
 0x6a4   : > { %v2047_v8 = vmax.f32 %v719_v58, %v899_v63  ;;  %1087 = vmax.xlane.f32.xlu1 %v1086_v6 }
 0x6a5   : > { %vm945_vm10 = vcmp.eq.s32.totalorder %v1941_v32, %v943_v5 }
 0x6a6   : > { %v947_v9 = vsel %vm945_vm10, 1.0, %v1745_v44  ;;  %v1085_v10 = vsel %vm945_vm10, -inf, %v2011_v4 }
 0x6a7   : > { %1525 = vmatmul.mubr.msk.f32.vlgmr.msra.gmra.mrb[6].mxu1 %vm532_vm2, %v947_v9  ;;  %v1089_v11 = vsel %vm532_vm2, %v1085_v10, -inf }
 0x6a8   : > { %1090 = vmax.xlane.f32.xlu1 %v1089_v11  ;;  %1528 = vmatpush3.bf16.msra.mxu1 %v1967_v13 }
 0x6a9   : > { %1529 = vmatprep.mubr.msk.bf16.mxu1 %vm1747_vm9, %v1745_v44 }
 0x731   : > { %v1088_v62 = vpop.xlane.xlu1 %1087 }
 0x732   : > { %vm1092_vm11 = vcmp.ge.f32.partialorder %v1084_v3, %v1088_v62 }
 0x733   : > { %v1094_v12 = vsel %vm1092_vm11, %v1941_v32, 16 }
 0x734   : > { %v1096_v14 = vsel %vm532_vm2, %v1094_v12, 2147483647 }
 0x735   : > { %v1091_v15 = vpop.xlane.xlu1 %1090  ;;  %v1098_v16 = vshra.s32 %v1096_v14, 16  ;;  %v1097_v28 = vand.u32 65535, %v1096_v14 }
 0x736   : > { %vm1093_vm12 = vcmp.ge.f32.partialorder %v1085_v10, %v1091_v15 }
 0x737   : > { %v1095_v4 = vsel %vm1093_vm12, %v1941_v32, 16  ;;  %v1100_v18 = vcvt.s32.f32 %v1098_v16  ;;  %v1099_v30 = vcvt.s32.f32 %v1097_v28 }
 0x738   : > { %v1111_v20 = vsel %vm532_vm2, %v1095_v4, 2147483647 }
 0x739   : > { %1101 = vmin.xlane.f32.xlu1 %v1100_v18  ;;  %v1113_v21 = vshra.s32 %v1111_v20, 16  ;;  %v1112_v31 = vand.u32 65535, %v1111_v20 }
 0x73b   : > { %v1115_v22 = vcvt.s32.f32 %v1113_v21  ;;  %v1114_v7 = vcvt.s32.f32 %v1112_v31 }
 0x73d   : > { %1116 = vmin.xlane.f32.xlu1 %v1115_v22 }
 0x77a   : > { %v1526_v23 = vpop.f32.mrb[6].mxu1 }
 0x77b   : > { %v1030_v24 = vsub.f32 %v1526_v23, %v1911_v2  ;;  %v1020_v25 = vpop.f32.mrb[7].mxu1 }
 0x77c   : > { %v1029_v26 = vsub.f32 %v1020_v25, %v1909_v1 }
 0x77e   : > { %v1031_v27 = vpack.c.bf16 %v1030_v24, %v1029_v26 }
 0x780   : > { %1530 = vmatmul.mubr.msk.bf16.vlgmr.msra.gmra.mrb[12].mxu1 %vm327_vm0, %v1031_v27 }
 0x7c6   : > { %v1102_v29 = vpop.xlane.xlu1 %1101 }
 0x7c7   : > { %vm1103_vm13 = vcmp.eq.f32.partialorder %v1100_v18, %v1102_v29  ;;  %v1108_v37 = vcvt.f32.s32 %v1102_v29 }
 0x7c8   : > { %v1104_v33 = vsel %vm1103_vm13, %v1099_v30, inf }
 0x7c9   : > { %1105 = vmin.xlane.f32.xlu1 %v1104_v33  ;;  %v1109_v47 = vshll.u32 %v1108_v37, 16 }
 0x7ca   : > { %v1117_v35 = vpop.xlane.xlu1 %1116 }
 0x7cb   : > { %vm1118_vm14 = vcmp.eq.f32.partialorder %v1115_v22, %v1117_v35  ;;  %v1123_v49 = vcvt.f32.s32 %v1117_v35 }
 0x7cc   : > { %v1119_v36 = vsel %vm1118_vm14, %v1114_v7, inf }
 0x7cd   : > { %1120 = vmin.xlane.f32.xlu1 %v1119_v36  ;;  %v1124_v56 = vshll.u32 %v1123_v49, 16 }
 0x853   : > { %v1069_v38 = vpop.f32.mrb[12].mxu1 }
 0x854   : > { %v1070_v39 = vadd.f32 %v1069_v38, %v1981_v17  ;;  %v1531_v40 = vpop.f32.mrb[13].mxu1 }
 0x855   : > { %v1072_v41 = vpop.f32.mrb[14].mxu1 }
 0x856   : > { %v1076_v42 = vadd.f32 %v2031_v34, %v1070_v39  ;;  %v1073_v43 = vadd.f32 %v1072_v41, %v1983_v19  ;;  %v1532_v45 = vpop.f32.mrb[15].mxu1  ;;  %v1106_v46 = vpop.xlane.xlu1 %1105 }
 0x857   : > { %v1107_v50 = vcvt.f32.s32 %v1106_v46 }
 0x858   : > { %v1078_v52 = vmul.f32 0.2, %v1076_v42  ;;  %v1077_v48 = vadd.f32 %v2031_v34, %v1073_v43 }
 0x859   : > { %v1110_v51 = vadd.s32 %v1109_v47, %v1107_v50 }
 0x85a   : > { %v1080_v53 = vmax.f32 %v1076_v42, %v1078_v52  ;;  %v1079_v54 = vmul.f32 0.2, %v1077_v48  ;;  %v1121_v55 = vpop.xlane.xlu1 %1120 }
 0x85b   : > { %v1122_v57 = vcvt.f32.s32 %v1121_v55  ;;  %vm1126_vm15 = vcmp.eq.s32.totalorder %v1941_v32, %v1110_v51 }
 0x85c   : > { %v1082_v58 = vmax.f32 %v2041_v61, %v1080_v53  ;;  %v1081_v59 = vmax.f32 %v1077_v48, %v1079_v54  ;;  %v1128_v60 = vsel %vm1126_vm15, 1.0, %v1745_v44 }
 0x85d   : > { %v1125_v63 = vadd.s32 %v1124_v56, %v1122_v57  ;;  %1537 = vmatprep.mubr.msk.f32.mxu0 %vm532_vm2, %v1128_v60 }
 0x85e   : > { %v1083_v0 = vmax.f32 %v2047_v8, %v1081_v59 }
 0x85f   : > { %vm1127_vm1 = vcmp.eq.s32.totalorder %v1941_v32, %v1125_v63 }
 0x860   : > { %v1129_v3 = vsel %vm1127_vm1, 1.0, %v1745_v44 }
 0x861   : > { %1538 = vmatmul.mubr.msk.f32.vlgmr.msra.gmra.mrb[8].mxu0 %vm532_vm2, %v1129_v3 }
 0x862   : > { %1541 = vmatpush3.bf16.msra.mxu0 %v1967_v13  ;;  %1542 = vmatprep.mubr.msk.bf16.mxu0 %vm1747_vm9, %v1745_v44 }
 0x934   : > { %v1539_v61 = vpop.f32.mrb[8].mxu0 }
 0x935   : > { %v1212_v5 = vsub.f32 %v1539_v61, %v1911_v2  ;;  %v1202_v6 = vpop.f32.mrb[9].mxu0 }
 0x936   : > { %v1211_v9 = vsub.f32 %v1202_v6, %v1909_v1 }
 0x938   : > { %v1213_v10 = vpack.c.bf16 %v1212_v5, %v1211_v9 }
 0x93a   : > { %1543 = vmatmul.mubr.msk.bf16.vlgmr.msra.gmra.mrb[12].mxu0 %vm327_vm0, %v1213_v10  ;;  %vm1274_vm0 = vcmask 519168  }
 0xa0d   : > { %v1251_v32 = vpop.f32.mrb[12].mxu0 }
 0xa0e   : > { %v1252_v8 = vadd.f32 %v1251_v32, %v1981_v17  ;;  %v1544_v11 = vpop.f32.mrb[13].mxu0 }
 0xa0f   : > { %v1254_v62 = vpop.f32.mrb[14].mxu0 }
 0xa10   : > { %v1258_v13 = vadd.f32 %v2031_v34, %v1252_v8  ;;  %v1255_v12 = vadd.f32 %v1254_v62, %v1983_v19  ;;  %v1545_v44 = vpop.f32.mrb[15].mxu0 }
 0xa12   : > { %v1260_v14 = vmul.f32 0.2, %v1258_v13  ;;  %v1259_v15 = vadd.f32 %v2031_v34, %v1255_v12 }
 0xa14   : > { %v1262_v2 = vmax.f32 %v1258_v13, %v1260_v14  ;;  %v1261_v16 = vmul.f32 0.2, %v1259_v15 }
 0xa16   : > { %v1264_v1 = vmax.f32 %v1082_v58, %v1262_v2  ;;  %v1263_v4 = vmax.f32 %v1259_v15, %v1261_v16 }
 0xa18   : > { %v1449_v17 = vpack.c.bf16 %v1264_v1, %v1264_v1  ;;  %v1265_v18 = vmax.f32 %v1083_v0, %v1263_v4 }
 0xa1a   : > { %1275 = vst.msk [vmem:[%s320_s13] sm:$0xf] %vm1274_vm0, %v1449_v17  ;;  %v1450_v20 = vpack.c.bf16 %v1265_v18, %v1265_v18 }
 0xa1c   : > { %1276 = vst.msk [vmem:[%s320_s13 + $0x4] sm:$0xf] %vm1274_vm0, %v1450_v20 }
 0xa1d PF: > { %s17_s20 = sadd.s32 1, %s1740_s20   ;;  %s2116_s18 = smov %s1736_s19 }
 0xa1e   : > { %p14_p5 = scmp.ge.s32.totalorder %s17_s20, 4   ;;  %s2117_s19 = smov %s2119_s26 }
 0xa20   :  { %16 = sbr.rel (!%p14_p5) target bundleno = 3 (0x3), region = 86 }
 0xa27   :  { %1307 = vsyncpa [#allocation3], 1 }
 0xa28   :  { %1309 = vsyncpa [#allocation3 + $0x1], 1 }
 0xa29   :  { %1310 = vsyncpa [#allocation5], 1 }

// kernel: dgcnn_forward.6
= control target key start
LH: loop header
LB: loop body
LE: loop exit
PB: predicated region body
PF: predicated region fallthrough
CT: control target
= control target key end

     0   :  { %10 = vsyncpa [#allocation3], 0  ;;  %s2039_s0 = inlined_call_operand.vmem [shape: bf16[2,16,64], index: 0, kind: input, shape index: {}, may-alias: {0,1}]   ;;  %s2040_s1 = inlined_call_operand.vmem [shape: bf16[2,16,64], index: 1, kind: input, shape index: {}, may-alias: {0,1}]   ;;  %s2041_s2 = inlined_call_operand.hbm [shape: f32[64,64], index: 2, kind: input, shape index: {}]   ;;  %s2042_s3 = inlined_call_operand.hbm [shape: f32[64,64], index: 3, kind: input, shape index: {}]   ;;  %s2043_s4 = inlined_call_operand.hbm [shape: f32[1,64], index: 4, kind: input, shape index: {}]   ;;  %s2044_s5 = inlined_call_operand.vmem [shape: bf16[2,16,64], index: 5, kind: output, shape index: {}]  }
   0x1   :  { %11 = vsyncpa [#allocation5], 0  ;;  %s1685_s18 = smov 0   ;;  %s1687_s19 = smov 0  }
   0x2   :  { %s1689_s20 = smov 0  }
   0x3 LB: > { %s1291_s21 = sadd.s32 4294967295, %s1646_s20   ;;  %p1293_p0 = scmp.ge.s32.totalorder %s1646_s20, 1  ;;  %s1646_s20 = sphi %s1689_s20, %s17_s20   ;;  %s1642_s19 = sphi %s1687_s19, %s2056_s19   ;;  %s1638_s18 = sphi %s1685_s18, %s2055_s18  }
   0x4   : > { %p179_p1 = scmp.lt.s32.totalorder %s1646_s20, 3  ;;  %p1703_p2 = scmp.eq.s32.totalorder %s1291_s21, 0 }
   0x5   : > { %s1648_s24 = smov [#allocation4]   ;;  %s29_s27 = sadd.s32 1, %s1642_s19 }
   0x6   : > { %s2048_s22 = scalar_select %p1703_p2, 1, 0 }
   0x7   : > { %p1707_p3 = pnand %p1293_p0, %p179_p1  ;;  %s204_s25 = sshll.u32 %s1648_s24, 4  ;;  %s1711_s25 = int_to_ptr.vmem [resolvable:$true] %s204_s25 }
   0x8   : > { %p1722_p6 = scmp.ge.s32.totalorder %s29_s27, 2  ;;  %s1649_s29 = smov [#allocation2]  }
   0x9   : > { %s2049_s23 = scalar_select %p1707_p3, 1, 0 }
   0xa   : > { %p1481_p4 = pneg %p1707_p3  ;;  %s191_s30 = sshll.u32 %s1649_s29, 4  ;;  %s192_s30 = int_to_ptr.vmem [resolvable:$true] %s191_s30 }
   0xb   : > { %s1532_s8 = scalar_lea.hbm %s2042_s3, 1024 }
   0xc   : > { %p1717_p5 = pnand %p1703_p2, %p1481_p4  ;;  %p1533_p7 = scmp.ne.s32.totalorder %s2042_s3, %s1532_s8 }
   0xd   : > { %p1539_p11 = scmp.lt.u32.totalorder %s1532_s8, %s2042_s3 }
   0xe   : > { %p1734_p8 = pneg %p1717_p5 }
  0x10   : > { %p1535_p9 = pnand %p1734_p8, %p1533_p7 }
  0x12   : > { %p1536_p10 = pneg %p1535_p9 }
  0x14   : > { %p1541_p12 = pnand %p1539_p11, %p1536_p10 }
  0x16   : > { %1544 = shalt.err (!%p1541_p12)
}
  0x17   : > { %s1545_s14 = scalar_lea.vmem %s1711_s25, 1024  ;;  %p1553_p4 = scmp.lt.s32.totalorder %s1711_s25, %s1711_s25 }
  0x18   : > { %p1546_p13 = scmp.ne.s32.totalorder %s1711_s25, %s1545_s14  ;;  %p1554_p2 = scmp.lt.s32.totalorder %s1545_s14, %s1545_s14 }
  0x1a   : > { %p1548_p0 = pnand %p1546_p13, %p1734_p8  ;;  %p1555_p7 = por %p1554_p2, %p1553_p4 }
  0x1c   : > { %p1549_p1 = pneg %p1548_p0 }
  0x1e   : > { %p1556_p9 = pnand %p1555_p7, %p1549_p1 }
  0x20   : > { %1559 = shalt.err (!%p1556_p9)
}
  0x21   : > { %s1650_s15 = smov 128   ;;  %s1651_s16 = smov 8  }
  0x22   : > { %1487 = dma.hbm_to_vmem [thread:$0]  (!%p1717_p5), %s2042_s3, 1024, %s1711_s25, [#allocation5], %s1650_s15, %s1650_s15, %s1651_s16  }
  0x23   : > { %s2058_s27 = smov (%p1722_p6, %s29_s27), 0  ;;  %s1560_s6 = scalar_lea.hbm %s2041_s2, 1024 }
  0x24   : > { %p1561_p2 = scmp.ne.s32.totalorder %s2041_s2, %s1560_s6  ;;  %p1567_p12 = scmp.lt.u32.totalorder %s1560_s6, %s2041_s2 }
  0x26   : > { %p1563_p10 = pnand %p1561_p2, %p1734_p8 }
  0x28   : > { %p1564_p11 = pneg %p1563_p10 }
  0x2a   : > { %p1569_p13 = pnand %p1567_p12, %p1564_p11 }
  0x2c   : > { %1572 = shalt.err (!%p1569_p13)
}
  0x2d   : > { %s1573_s25 = scalar_lea.vmem %s192_s30, 1024  ;;  %p1581_p4 = scmp.lt.s32.totalorder %s192_s30, %s192_s30 }
  0x2e   : > { %p1574_p6 = scmp.ne.s32.totalorder %s192_s30, %s1573_s25  ;;  %p1582_p7 = scmp.lt.s32.totalorder %s1573_s25, %s1573_s25 }
  0x30   : > { %p1576_p0 = pnand %p1574_p6, %p1734_p8  ;;  %p1583_p9 = por %p1582_p7, %p1581_p4 }
  0x32   : > { %p1577_p1 = pneg %p1576_p0 }
  0x34   : > { %p1584_p3 = pnand %p1583_p9, %p1577_p1 }
  0x36   : > { %1587 = shalt.err (!%p1584_p3)
}
  0x37   : > { %1484 = dma.hbm_to_vmem [thread:$0]  (!%p1717_p5), %s2041_s2, 1024, %s192_s30, [#allocation3], %s1650_s15, %s1650_s15, %s1651_s16  }
  0x38   : > { %s1652_s13 = smov [#allocation6]   ;;  %s1588_s24 = scalar_lea.hbm %s2043_s4, 16 }
  0x39   : > { %s218_s14 = sshll.u32 %s1652_s13, 4  ;;  %p1589_p2 = scmp.ne.s32.totalorder %s2043_s4, %s1588_s24  ;;  %s219_s14 = int_to_ptr.vmem [resolvable:$true] %s218_s14 }
  0x3a   : > { %p1595_p11 = scmp.lt.u32.totalorder %s1588_s24, %s2043_s4 }
  0x3b   : > { %p1591_p3 = pnand %p1589_p2, %p1734_p8 }
  0x3d   : > { %p1592_p10 = pneg %p1591_p3 }
  0x3f   : > { %p1597_p12 = pnand %p1595_p11, %p1592_p10 }
  0x41   : > { %1600 = shalt.err (!%p1597_p12)
}
  0x42   : > { %s1601_s30 = scalar_lea.vmem %s219_s14, 16  ;;  %s1608_s15 = scalar_lea.vmem %s219_s14, 32 }
  0x43   : > { %p1602_p13 = scmp.ne.s32.totalorder %s219_s14, %s1601_s30  ;;  %p1609_p1 = scmp.lt.s32.totalorder %s219_s14, %s219_s14 }
  0x44   : > { %p1610_p4 = scmp.lt.s32.totalorder %s1608_s15, %s1601_s30 }
  0x45   : > { %p1604_p6 = pnand %p1602_p13, %p1734_p8 }
  0x46   : > { %p1611_p7 = por %p1610_p4, %p1609_p1 }
  0x47   : > { %p1605_p0 = pneg %p1604_p6 }
  0x49   : > { %p1612_p9 = pnand %p1611_p7, %p1605_p0 }
  0x4b   : > { %1615 = shalt.err (!%p1612_p9)
}
  0x4c   : > { %1490 = dma.hbm_to_vmem [thread:$0]  (!%p1717_p5), %s2043_s4, 16, %s219_s14, [#allocation5]  }
  0x4d   : > { %p2053_p2 = scmp.ne.s32.totalorder %s2049_s23, 0 }
  0x4e   : > { %p2054_p3 = scmp.ne.s32.totalorder (!%p2053_p2), %s2048_s22, 0 }
  0x4f   : > { %252 = sbr.rel (%p2053_p2) target bundleno = 2594 (0xa22), region = 40 }
  0x56   : > { %1629 = dma.done.wait (%p2054_p3), [#allocation3], 1024  }
  0x57   : > { %1631 = vsyncadd (%p2054_p3), [#allocation3], 4294966272 }
  0x58   : > { %1633 = dma.done.wait (%p2054_p3), [#allocation5], 1040  }
  0x59   : > { %1635 = vsyncadd (%p2054_p3), [#allocation5], 4294966256  ;;  %p301_p8 = scmp.lt.s32.totalorder %s1638_s18, 1  ;;  %vm335_vm0 = vcmask 523264   ;;  %v475_v18 = vlaneseq  ;;  %vm557_vm2 = vcmask 130048   ;;  %v1653_v52 = vmov 0.0  }
  0x5a   : > { %vm1462_vm1 = vmpackc.low %vm335_vm0, %vm335_vm0  ;;  %1377 = vmatprep.subr.bf16.mxu1 %v1653_v52  ;;  %vm1654_vm7 = vmmov 0  }
  0x5b   : > { %s2060_s18 = smov (!%p301_p8, %s1638_s18), 1  ;;  %v476_v20 = vshrl.u32 %v475_v18, 7  ;;  %v1847_v33 = vand.u32 127, %v475_v18  ;;  %1385 = vmatprep.mubr.msk.bf16.mxu1 %vm1654_vm7, %v1653_v52  ;;  %v483_v18 = vld [vmem:[#allocation2 + $0x10] sm:$0xff] }
  0x5c   : > { %s1807_s26 = sshll.u32 %s2060_s18, 3 }
  0x5d   : > { %s305_s10 = scalar_lea.vmem %s2039_s0, %s1807_s26  ;;  %s314_s12 = scalar_lea.vmem %s2040_s1, %s1807_s26  ;;  %v477_v23 = vsub.s32 0, %v476_v20 }
  0x5e   : > { %v1817_v0 = vld [vmem:[%s305_s10] sm:$0xff]   ;;  %s324_s13 = scalar_lea.vmem %s2044_s5, %s1807_s26 }
  0x5f   : > { %v1819_v1 = vld [vmem:[%s314_s12] sm:$0xff]   ;;  %v331_v2 = vunpack.c.l.bf16 %v1817_v0  ;;  %v332_v5 = vunpack.c.h.bf16 %v1817_v0  ;;  %1463 = vmatprep.subr.msk.bf16.mxu0 %vm1462_vm1, %v1817_v0 }
  0x60   : > { %v1823_v3 = vunpack.c.l.bf16 %v1819_v1  ;;  %v1826_v4 = vunpack.c.h.bf16 %v1819_v1  ;;  %1466 = vmatpush3.bf16.xpose.msk.msra.mxu0 %vm1462_vm1, %v1817_v0 }
  0x61   : > { %v431_v6 = vmul.f32 %v331_v2, %v331_v2  ;;  %v432_v7 = vmul.f32 %v332_v5, %v332_v5  ;;  %1389 = vmatprep.subr.bf16.mxu0 %v1653_v52 }
  0x62   : > { %1374 = vmatprep.mubr.msk.f32.mxu0 %vm335_vm0, %v1823_v3  ;;  %v423_v8 = vmul.f32 %v1823_v3, %v1823_v3  ;;  %v424_v9 = vmul.f32 %v1826_v4, %v1826_v4 }
  0x63   : > { %v433_v10 = vsel %vm335_vm0, %v431_v6, 0.0  ;;  %v436_v12 = vsel %vm335_vm0, %v432_v7, 0.0 }
  0x64   : > { %v425_v11 = vsel %vm335_vm0, %v423_v8, 0.0  ;;  %434 = vadd.xlane.f32.xlu0 %v433_v10  ;;  %v428_v13 = vsel %vm335_vm0, %v424_v9, 0.0  ;;  %v493_v10 = vld [vmem:[#allocation4] sm:$0xff] }
  0x65   : > { %426 = vadd.xlane.f32.xlu1 %v425_v11  ;;  %v494_v11 = vld [vmem:[#allocation4 + $0x8] sm:$0xff] }
  0x67   : > { %1375 = vmatmul.mubr.msk.f32.vlgmr.msra.gmra.mrb[0].mxu0 %vm335_vm0, %v1826_v4 }
  0x68   : > { %437 = vadd.xlane.f32.xlu0 %v436_v12  ;;  %1390 = vmatpush3.bf16.msra.mxu0 %v1817_v0  ;;  %v481_v12 = vld [vmem:[#allocation2] sm:$0xff] }
  0x69   : > { %429 = vadd.xlane.f32.xlu1 %v428_v13  ;;  %1395 = vmatprep.subr.bf16.mxu0 %v1653_v52  ;;  %v501_v13 = vpack.c.bf16 %v494_v11, %v493_v10 }
  0x6a   : > { %1391 = vmatprep.mubr.msk.bf16.mxu0 %vm1654_vm7, %v1653_v52 }
  0x6b   : > { %1378 = vmatpush3.bf16.msra.mxu1 %v501_v13 }
  0x6c   : > { %1379 = vmatprep.subr.bf16.mxu1 %v1653_v52 }
  0xf1   : > { %v435_v14 = vpop.xlane.xlu0 %434 }
  0xf2   : > { %443 = vxpose.xlu0.b32.start [1/2] (short) (narrow) %v435_v14, 8  ;;  %v427_v19 = vpop.xlane.xlu1 %426  ;;  %v482_v14 = vld [vmem:[#allocation2 + $0x8] sm:$0xff] }
  0xf5   : > { %v438_v15 = vpop.xlane.xlu0 %437 }
  0xf6   : > { %444 = vxpose.xlu0.b32.end [2/2] (short) (narrow) %v438_v15, 8  ;;  %v430_v24 = vpop.xlane.xlu1 %429  ;;  %v495_v15 = vld [vmem:[#allocation4 + $0x10] sm:$0xff] }
 0x13a   : > { %v1376_v16 = vpop.f32.mrb[0].mxu0 }
 0x13b   : > { %v414_v17 = vpop.f32.mrb[1].mxu0  ;;  %v440_v22 = vmul.f32 2.0, %v1376_v16  ;;  %v496_v16 = vld [vmem:[#allocation4 + $0x18] sm:$0xff] }
 0x13c   : > { %v439_v21 = vmul.f32 2.0, %v414_v17  ;;  %v1876_v17 = vpack.c.bf16 %v482_v14, %v481_v12  ;;  %v502_v20 = vpack.c.bf16 %v496_v16, %v495_v15 }
 0x13d   : > { %v442_v27 = vsub.f32 %v440_v22, %v430_v24  ;;  %v497_v22 = vld [vmem:[#allocation4 + $0x20] sm:$0xff] }
 0x13e   : > { %v441_v25 = vsub.f32 %v439_v21, %v427_v19  ;;  %v484_v19 = vld [vmem:[#allocation2 + $0x18] sm:$0xff]  ;;  %1380 = vmatpush3.bf16.msra.mxu1 %v502_v20 }
 0x13f   : > { %v1880_v21 = vpack.c.bf16 %v484_v19, %v483_v18  ;;  %1381 = vmatprep.subr.bf16.mxu1 %v1653_v52 }
 0x172   : > { %v459_v26 = vpop.trf.xlu0 }
 0x173   : > { %v478_v28 = vrot.slane %v459_v26, %v477_v23  ;;  %v498_v23 = vld [vmem:[#allocation4 + $0x28] sm:$0xff] }
 0x174   : > { %v503_v24 = vpack.c.bf16 %v498_v23, %v497_v22  ;;  %v486_v26 = vld [vmem:[#allocation2 + $0x28] sm:$0xff] }
 0x175   : > { %v479_v29 = vsub.f32 %v441_v25, %v478_v28  ;;  %v480_v30 = vsub.f32 %v442_v27, %v478_v28  ;;  %v485_v25 = vld [vmem:[#allocation2 + $0x20] sm:$0xff]  ;;  %v499_v28 = vld [vmem:[#allocation4 + $0x30] sm:$0xff] }
 0x176   : > { %1382 = vmatpush3.bf16.msra.mxu1 %v503_v24  ;;  %v1887_v27 = vpack.c.bf16 %v486_v26, %v485_v25 }
 0x177   : > { %v558_v31 = vsel %vm557_vm2, %v479_v29, -inf  ;;  %v561_v32 = vsel %vm557_vm2, %v480_v30, -inf  ;;  %1383 = vmatprep.subr.bf16.mxu1 %v1653_v52 }
 0x178   : > { %559 = vmax.xlane.f32.xlu1 %v558_v31 }
 0x17c   : > { %562 = vmax.xlane.f32.xlu1 %v561_v32  ;;  %v488_v32 = vld [vmem:[#allocation2 + $0x38] sm:$0xff] }
 0x205   : > { %v560_v34 = vpop.xlane.xlu1 %559 }
 0x206   : > { %vm564_vm3 = vcmp.ge.f32.partialorder %v479_v29, %v560_v34 }
 0x207   : > { %v566_v35 = vsel %vm564_vm3, %v1847_v33, 16 }
 0x208   : > { %v568_v36 = vsel %vm557_vm2, %v566_v35, 2147483647 }
 0x209   : > { %v563_v37 = vpop.xlane.xlu1 %562  ;;  %v570_v38 = vshra.s32 %v568_v36, 16  ;;  %v569_v44 = vand.u32 65535, %v568_v36 }
 0x20a   : > { %vm565_vm4 = vcmp.ge.f32.partialorder %v480_v30, %v563_v37 }
 0x20b   : > { %v567_v39 = vsel %vm565_vm4, %v1847_v33, 16  ;;  %v572_v40 = vcvt.s32.f32 %v570_v38  ;;  %v571_v46 = vcvt.s32.f32 %v569_v44 }
 0x20c   : > { %v583_v41 = vsel %vm557_vm2, %v567_v39, 2147483647 }
 0x20d   : > { %573 = vmin.xlane.f32.xlu1 %v572_v40  ;;  %v585_v42 = vshra.s32 %v583_v41, 16  ;;  %v584_v47 = vand.u32 65535, %v583_v41 }
 0x20f   : > { %v587_v43 = vcvt.s32.f32 %v585_v42  ;;  %v586_v50 = vcvt.s32.f32 %v584_v47 }
 0x211   : > { %588 = vmin.xlane.f32.xlu1 %v587_v43 }
 0x29a   : > { %v574_v45 = vpop.xlane.xlu1 %573 }
 0x29b   : > { %vm575_vm5 = vcmp.eq.f32.partialorder %v572_v40, %v574_v45  ;;  %v580_v53 = vcvt.f32.s32 %v574_v45 }
 0x29c   : > { %v576_v48 = vsel %vm575_vm5, %v571_v46, inf }
 0x29d   : > { %577 = vmin.xlane.f32.xlu1 %v576_v48  ;;  %v581_v55 = vshll.u32 %v580_v53, 16 }
 0x29e   : > { %v589_v49 = vpop.xlane.xlu1 %588 }
 0x29f   : > { %vm590_vm6 = vcmp.eq.f32.partialorder %v587_v43, %v589_v49  ;;  %v595_v56 = vcvt.f32.s32 %v589_v49 }
 0x2a0   : > { %v591_v51 = vsel %vm590_vm6, %v586_v50, inf }
 0x2a1   : > { %592 = vmin.xlane.f32.xlu1 %v591_v51  ;;  %v596_v60 = vshll.u32 %v595_v56, 16 }
 0x32a   : > { %v578_v54 = vpop.xlane.xlu1 %577 }
 0x32b   : > { %v579_v57 = vcvt.f32.s32 %v578_v54 }
 0x32d   : > { %v582_v58 = vadd.s32 %v581_v55, %v579_v57 }
 0x32e   : > { %v593_v59 = vpop.xlane.xlu1 %592 }
 0x32f   : > { %v594_v61 = vcvt.f32.s32 %v593_v59  ;;  %vm598_vm8 = vcmp.eq.s32.totalorder %v1847_v33, %v582_v58 }
 0x330   : > { %v1862_v62 = vsel %vm598_vm8, -inf, %v479_v29  ;;  %v600_v5 = vsel %vm598_vm8, 1.0, %v1653_v52  ;;  %v500_v29 = vld [vmem:[#allocation4 + $0x38] sm:$0xff] }
 0x331   : > { %v597_v63 = vadd.s32 %v596_v60, %v594_v61  ;;  %v714_v2 = vsel %vm557_vm2, %v1862_v62, -inf  ;;  %v504_v31 = vpack.c.bf16 %v500_v29, %v499_v28 }
 0x332   : > { %715 = vmax.xlane.f32.xlu1 %v714_v2 }
 0x333   : > { %vm599_vm9 = vcmp.eq.s32.totalorder %v1847_v33, %v597_v63  ;;  %1384 = vmatpush3.bf16.msra.mxu1 %v504_v31 }
 0x334   : > { %v1868_v6 = vsel %vm599_vm9, -inf, %v480_v30  ;;  %v601_v7 = vsel %vm599_vm9, 1.0, %v1653_v52  ;;  %v487_v30 = vld [vmem:[#allocation2 + $0x30] sm:$0xff]  ;;  %1413 = vmatprep.subr.bf16.mxu1 %v1653_v52 }
 0x335   : > { %v717_v8 = vsel %vm557_vm2, %v1868_v6, -inf  ;;  %v602_v9 = vpack.c.bf16 %v601_v7, %v600_v5  ;;  %v1891_v34 = vpack.c.bf16 %v488_v32, %v487_v30 }
 0x336   : > { %718 = vmax.xlane.f32.xlu1 %v717_v8  ;;  %1386 = vmatmul.mubr.msk.bf16.vlgmr.msra.gmra.mrb[0].mxu1 %vm335_vm0, %v1819_v1 }
 0x337   : > { %1392 = vmatmul.mubr.msk.bf16.vlgmr.msra.gmra.mrb[4].mxu0 %vm557_vm2, %v602_v9  ;;  %1414 = vmatpush3.bf16.msra.mxu1 %v1876_v17 }
 0x338   : > { %1403 = vmatprep.mubr.msk.bf16.mxu0 %vm1654_vm7, %v1653_v52  ;;  %1396 = vmatpush3.bf16.msra.mxu0 %v1876_v17 }
 0x339   : > { %1397 = vmatprep.subr.bf16.mxu0 %v1653_v52  ;;  %1421 = vmatprep.mubr.msk.bf16.mxu1 %vm1654_vm7, %v1653_v52 }
 0x33a   : > { %1415 = vmatprep.subr.bf16.mxu1 %v1653_v52 }
 0x33b   : > { %1416 = vmatpush3.bf16.msra.mxu1 %v1880_v21 }
 0x33c   : > { %1398 = vmatpush3.bf16.msra.mxu0 %v1880_v21  ;;  %1417 = vmatprep.subr.bf16.mxu1 %v1653_v52 }
 0x33d   : > { %1399 = vmatprep.subr.bf16.mxu0 %v1653_v52 }
 0x33f   : > { %1418 = vmatpush3.bf16.msra.mxu1 %v1887_v27 }
 0x340   : > { %1400 = vmatpush3.bf16.msra.mxu0 %v1887_v27  ;;  %1419 = vmatprep.subr.bf16.mxu1 %v1653_v52 }
 0x341   : > { %1401 = vmatprep.subr.bf16.mxu0 %v1653_v52 }
 0x343   : > { %1420 = vmatpush3.bf16.msra.mxu1 %v1891_v34 }
 0x344   : > { %1402 = vmatpush3.bf16.msra.mxu0 %v1891_v34  ;;  %1443 = vmatprep.subr.bf16.mxu1 %v1653_v52 }
 0x345   : > { %1407 = vmatprep.subr.bf16.mxu0 %v1653_v52 }
 0x3bf   : > { %v716_v1 = vpop.xlane.xlu1 %715 }
 0x3c0   : > { %vm720_vm10 = vcmp.ge.f32.partialorder %v1862_v62, %v716_v1 }
 0x3c1   : > { %v722_v35 = vsel %vm720_vm10, %v1847_v33, 16 }
 0x3c2   : > { %v724_v36 = vsel %vm557_vm2, %v722_v35, 2147483647 }
 0x3c3   : > { %v719_v37 = vpop.xlane.xlu1 %718  ;;  %v726_v38 = vshra.s32 %v724_v36, 16  ;;  %v725_v51 = vand.u32 65535, %v724_v36 }
 0x3c4   : > { %vm721_vm11 = vcmp.ge.f32.partialorder %v1868_v6, %v719_v37 }
 0x3c5   : > { %v723_v39 = vsel %vm721_vm11, %v1847_v33, 16  ;;  %v728_v40 = vcvt.s32.f32 %v726_v38  ;;  %v727_v54 = vcvt.s32.f32 %v725_v51 }
 0x3c6   : > { %v739_v41 = vsel %vm557_vm2, %v723_v39, 2147483647 }
 0x3c7   : > { %729 = vmin.xlane.f32.xlu1 %v728_v40  ;;  %v741_v42 = vshra.s32 %v739_v41, 16  ;;  %v740_v55 = vand.u32 65535, %v739_v41 }
 0x3c9   : > { %v743_v43 = vcvt.s32.f32 %v741_v42  ;;  %v742_v58 = vcvt.s32.f32 %v740_v55 }
 0x3cb   : > { %744 = vmin.xlane.f32.xlu1 %v743_v43 }
 0x409   : > { %v1921_v60 = vpop.f32.mrb[0].mxu1 }
 0x40a   : > { %v646_v44 = vpop.f32.mrb[4].mxu0  ;;  %v1387_v61 = vpop.f32.mrb[1].mxu1 }
 0x40b   : > { %v1393_v45 = vpop.f32.mrb[5].mxu0  ;;  %v653_v47 = vsub.f32 %v646_v44, %v1823_v3  ;;  %v1923_v63 = vpop.f32.mrb[2].mxu1 }
 0x40c   : > { %v649_v46 = vpop.f32.mrb[6].mxu0  ;;  %v1388_v2 = vpop.f32.mrb[3].mxu1 }
 0x40d   : > { %v654_v48 = vsub.f32 %v649_v46, %v1826_v4  ;;  %v1394_v49 = vpop.f32.mrb[7].mxu0 }
 0x40f   : > { %v655_v50 = vpack.c.bf16 %v654_v48, %v653_v47 }
 0x411   : > { %1404 = vmatmul.mubr.msk.bf16.vlgmr.msra.gmra.mrb[8].mxu0 %vm335_vm0, %v655_v50 }
 0x412   : > { %1408 = vmatpush3.bf16.msra.mxu0 %v1817_v0  ;;  %1409 = vmatprep.mubr.msk.bf16.mxu0 %vm1654_vm7, %v1653_v52 }
 0x413   : > { %1425 = vmatprep.subr.bf16.mxu0 %v1653_v52 }
 0x454   : > { %v730_v53 = vpop.xlane.xlu1 %729 }
 0x455   : > { %vm731_vm12 = vcmp.eq.f32.partialorder %v728_v40, %v730_v53  ;;  %v736_v5 = vcvt.f32.s32 %v730_v53 }
 0x456   : > { %v732_v56 = vsel %vm731_vm12, %v727_v54, inf }
 0x457   : > { %733 = vmin.xlane.f32.xlu1 %v732_v56  ;;  %v737_v9 = vshll.u32 %v736_v5, 16 }
 0x458   : > { %v745_v57 = vpop.xlane.xlu1 %744 }
 0x459   : > { %vm746_vm13 = vcmp.eq.f32.partialorder %v743_v43, %v745_v57  ;;  %v751_v10 = vcvt.f32.s32 %v745_v57  ;;  %v1961_v57 = vld [vmem:[#allocation6] ss:$0 sm:$0xff] }
 0x45a   : > { %v747_v59 = vsel %vm746_vm13, %v742_v58, inf }
 0x45b   : > { %748 = vmin.xlane.f32.xlu1 %v747_v59  ;;  %v752_v20 = vshll.u32 %v751_v10, 16 }
 0x4e4   : > { %v693_v7 = vpop.f32.mrb[8].mxu0  ;;  %v734_v8 = vpop.xlane.xlu1 %733 }
 0x4e5   : > { %v1926_v11 = vadd.f32 %v693_v7, %v1921_v60  ;;  %v735_v12 = vcvt.f32.s32 %v734_v8  ;;  %v1405_v13 = vpop.f32.mrb[9].mxu0 }
 0x4e6   : > { %v696_v14 = vpop.f32.mrb[10].mxu0 }
 0x4e7   : > { %v738_v15 = vadd.s32 %v737_v9, %v735_v12  ;;  %v697_v16 = vadd.f32 %v696_v14, %v1923_v63  ;;  %v1406_v18 = vpop.f32.mrb[11].mxu0  ;;  %v706_v58 = vadd.f32 %v1961_v57, %v1926_v11 }
 0x4e8   : > { %v749_v19 = vpop.xlane.xlu1 %748 }
 0x4e9   : > { %v750_v22 = vcvt.f32.s32 %v749_v19  ;;  %vm754_vm14 = vcmp.eq.s32.totalorder %v1847_v33, %v738_v15  ;;  %v707_v59 = vadd.f32 %v1961_v57, %v697_v16  ;;  %v708_v12 = vmul.f32 0.2, %v706_v58 }
 0x4ea   : > { %v1931_v23 = vsel %vm754_vm14, -inf, %v1862_v62  ;;  %v756_v26 = vsel %vm754_vm14, 1.0, %v1653_v52 }
 0x4eb   : > { %v753_v24 = vadd.s32 %v752_v20, %v750_v22  ;;  %v860_v25 = vsel %vm557_vm2, %v1931_v23, -inf  ;;  %v709_v20 = vmul.f32 0.2, %v707_v59 }
 0x4ec   : > { %861 = vmax.xlane.f32.xlu1 %v860_v25 }
 0x4ed   : > { %vm755_vm15 = vcmp.eq.s32.totalorder %v1847_v33, %v753_v24 }
 0x4ee   : > { %v1938_v28 = vsel %vm755_vm15, -inf, %v1868_v6  ;;  %v757_v29 = vsel %vm755_vm15, 1.0, %v1653_v52 }
 0x4ef   : > { %v863_v30 = vsel %vm557_vm2, %v1938_v28, -inf  ;;  %v758_v31 = vpack.c.bf16 %v757_v29, %v756_v26  ;;  %v710_v26 = vmax.f32 %v706_v58, %v708_v12 }
 0x4f0   : > { %864 = vmax.xlane.f32.xlu0 %v863_v30 }
 0x4f1   : > { %1410 = vmatmul.mubr.msk.bf16.vlgmr.msra.gmra.mrb[12].mxu0 %vm557_vm2, %v758_v31 }
 0x4f2   : > { %1426 = vmatpush3.bf16.msra.mxu0 %v1817_v0  ;;  %1427 = vmatprep.mubr.msk.bf16.mxu0 %vm1654_vm7, %v1653_v52 }
 0x4f3   : > { %1431 = vmatprep.subr.bf16.mxu0 %v1653_v52 }
 0x579   : > { %v862_v62 = vpop.xlane.xlu1 %861 }
 0x57a   : > { %vm866_vm1 = vcmp.ge.f32.partialorder %v1931_v23, %v862_v62 }
 0x57b   : > { %v868_v6 = vsel %vm866_vm1, %v1847_v33, 16 }
 0x57c   : > { %v870_v32 = vsel %vm557_vm2, %v868_v6, 2147483647 }
 0x57d   : > { %v865_v1 = vpop.xlane.xlu0 %864  ;;  %v872_v35 = vshra.s32 %v870_v32, 16  ;;  %v871_v48 = vand.u32 65535, %v870_v32  ;;  %v711_v32 = vmax.f32 %v707_v59, %v709_v20 }
 0x57e   : > { %vm867_vm3 = vcmp.ge.f32.partialorder %v1938_v28, %v865_v1 }
 0x57f   : > { %v869_v36 = vsel %vm867_vm3, %v1847_v33, 16  ;;  %v874_v37 = vcvt.s32.f32 %v872_v35  ;;  %v873_v50 = vcvt.s32.f32 %v871_v48 }
 0x580   : > { %v885_v38 = vsel %vm557_vm2, %v869_v36, 2147483647 }
 0x581   : > { %875 = vmin.xlane.f32.xlu1 %v874_v37  ;;  %v887_v39 = vshra.s32 %v885_v38, 16  ;;  %v886_v51 = vand.u32 65535, %v885_v38 }
 0x583   : > { %v889_v40 = vcvt.s32.f32 %v887_v39  ;;  %v888_v55 = vcvt.s32.f32 %v886_v51 }
 0x585   : > { %890 = vmin.xlane.f32.xlu1 %v889_v40 }
 0x5c4   : > { %v796_v41 = vpop.f32.mrb[12].mxu0 }
 0x5c5   : > { %v1411_v42 = vpop.f32.mrb[13].mxu0  ;;  %v803_v44 = vsub.f32 %v796_v41, %v1823_v3 }
 0x5c6   : > { %v799_v43 = vpop.f32.mrb[14].mxu0 }
 0x5c7   : > { %v804_v45 = vsub.f32 %v799_v43, %v1826_v4  ;;  %v1412_v46 = vpop.f32.mrb[15].mxu0 }
 0x5c9   : > { %v805_v47 = vpack.c.bf16 %v804_v45, %v803_v44 }
 0x5cb   : > { %1422 = vmatmul.mubr.msk.bf16.vlgmr.msra.gmra.mrb[4].mxu1 %vm335_vm0, %v805_v47 }
 0x5cc   : > { %1444 = vmatpush3.bf16.msra.mxu1 %v1817_v0  ;;  %1445 = vmatprep.mubr.msk.bf16.mxu1 %vm1654_vm7, %v1653_v52 }
 0x5cd   : > { %1449 = vmatprep.subr.bf16.mxu1 %v1653_v52 }
 0x60e   : > { %v876_v49 = vpop.xlane.xlu1 %875 }
 0x60f   : > { %vm877_vm4 = vcmp.eq.f32.partialorder %v874_v37, %v876_v49  ;;  %v882_v0 = vcvt.f32.s32 %v876_v49 }
 0x610   : > { %v878_v53 = vsel %vm877_vm4, %v873_v50, inf }
 0x611   : > { %879 = vmin.xlane.f32.xlu1 %v878_v53  ;;  %v883_v7 = vshll.u32 %v882_v0, 16 }
 0x612   : > { %v891_v54 = vpop.xlane.xlu1 %890 }
 0x613   : > { %vm892_vm5 = vcmp.eq.f32.partialorder %v889_v40, %v891_v54  ;;  %v897_v61 = vcvt.f32.s32 %v891_v54 }
 0x614   : > { %v893_v56 = vsel %vm892_vm5, %v888_v55, inf }
 0x615   : > { %894 = vmin.xlane.f32.xlu1 %v893_v56  ;;  %v898_v11 = vshll.u32 %v897_v61, 16 }
 0x69e   : > { %v843_v2 = vpop.f32.mrb[4].mxu1  ;;  %v880_v5 = vpop.xlane.xlu1 %879 }
 0x69f   : > { %v844_v8 = vadd.f32 %v843_v2, %v1921_v60  ;;  %v881_v9 = vcvt.f32.s32 %v880_v5  ;;  %v1423_v10 = vpop.f32.mrb[5].mxu1 }
 0x6a0   : > { %v846_v13 = vpop.f32.mrb[6].mxu1 }
 0x6a1   : > { %v850_v14 = vadd.f32 %v1961_v57, %v844_v8  ;;  %v884_v15 = vadd.s32 %v883_v7, %v881_v9  ;;  %v847_v18 = vadd.f32 %v846_v13, %v1923_v63  ;;  %v1424_v19 = vpop.f32.mrb[7].mxu1 }
 0x6a2   : > { %v895_v22 = vpop.xlane.xlu1 %894 }
 0x6a3   : > { %v852_v16 = vmul.f32 0.2, %v850_v14  ;;  %v851_v24 = vadd.f32 %v1961_v57, %v847_v18  ;;  %v896_v25 = vcvt.f32.s32 %v895_v22  ;;  %vm900_vm6 = vcmp.eq.s32.totalorder %v1847_v33, %v884_v15 }
 0x6a4   : > { %v1004_v29 = vsel %vm900_vm6, -inf, %v1931_v23  ;;  %v902_v36 = vsel %vm900_vm6, 1.0, %v1653_v52 }
 0x6a5   : > { %v854_v30 = vmax.f32 %v850_v14, %v852_v16  ;;  %v853_v31 = vmul.f32 0.2, %v851_v24  ;;  %v899_v62 = vadd.s32 %v898_v11, %v896_v25  ;;  %v1006_v6 = vsel %vm557_vm2, %v1004_v29, -inf }
 0x6a6   : > { %1007 = vmax.xlane.f32.xlu1 %v1006_v6 }
 0x6a7   : > { %v1973_v1 = vmax.f32 %v710_v26, %v854_v30  ;;  %v855_v35 = vmax.f32 %v851_v24, %v853_v31  ;;  %vm901_vm8 = vcmp.eq.s32.totalorder %v1847_v33, %v899_v62 }
 0x6a8   : > { %v1005_v37 = vsel %vm901_vm8, -inf, %v1938_v28  ;;  %v903_v38 = vsel %vm901_vm8, 1.0, %v1653_v52 }
 0x6a9   : > { %v1979_v39 = vmax.f32 %v711_v32, %v855_v35  ;;  %v1009_v23 = vsel %vm557_vm2, %v1005_v37, -inf  ;;  %v904_v40 = vpack.c.bf16 %v903_v38, %v902_v36 }
 0x6aa   : > { %1010 = vmax.xlane.f32.xlu1 %v1009_v23 }
 0x6ab   : > { %1428 = vmatmul.mubr.msk.bf16.vlgmr.msra.gmra.mrb[16].mxu0 %vm557_vm2, %v904_v40 }
 0x6ac   : > { %1432 = vmatpush3.bf16.msra.mxu0 %v1876_v17  ;;  %1439 = vmatprep.mubr.msk.bf16.mxu0 %vm1654_vm7, %v1653_v52 }
 0x6ad   : > { %1433 = vmatprep.subr.bf16.mxu0 %v1653_v52 }
 0x6b0   : > { %1434 = vmatpush3.bf16.msra.mxu0 %v1880_v21 }
 0x6b1   : > { %1435 = vmatprep.subr.bf16.mxu0 %v1653_v52 }
 0x6b4   : > { %1436 = vmatpush3.bf16.msra.mxu0 %v1887_v27 }
 0x6b5   : > { %1437 = vmatprep.subr.bf16.mxu0 %v1653_v52 }
 0x6b8   : > { %1438 = vmatpush3.bf16.msra.mxu0 %v1891_v34 }
 0x733   : > { %v1008_v28 = vpop.xlane.xlu1 %1007 }
 0x734   : > { %vm1012_vm9 = vcmp.ge.f32.partialorder %v1004_v29, %v1008_v28 }
 0x735   : > { %v1014_v41 = vsel %vm1012_vm9, %v1847_v33, 16 }
 0x736   : > { %v1016_v42 = vsel %vm557_vm2, %v1014_v41, 2147483647 }
 0x737   : > { %v1011_v43 = vpop.xlane.xlu1 %1010  ;;  %v1018_v44 = vshra.s32 %v1016_v42, 16  ;;  %v1017_v58 = vand.u32 65535, %v1016_v42 }
 0x738   : > { %vm1013_vm10 = vcmp.ge.f32.partialorder %v1005_v37, %v1011_v43 }
 0x739   : > { %v1015_v45 = vsel %vm1013_vm10, %v1847_v33, 16  ;;  %v1020_v46 = vcvt.s32.f32 %v1018_v44  ;;  %v1019_v61 = vcvt.s32.f32 %v1017_v58 }
 0x73a   : > { %v1031_v47 = vsel %vm557_vm2, %v1015_v45, 2147483647 }
 0x73b   : > { %1021 = vmin.xlane.f32.xlu1 %v1020_v46  ;;  %v1033_v48 = vshra.s32 %v1031_v47, 16  ;;  %v1032_v2 = vand.u32 65535, %v1031_v47 }
 0x73d   : > { %v1035_v49 = vcvt.s32.f32 %v1033_v48  ;;  %v1034_v8 = vcvt.s32.f32 %v1032_v2 }
 0x73f   : > { %1036 = vmin.xlane.f32.xlu1 %v1035_v49 }
 0x77e   : > { %v942_v50 = vpop.f32.mrb[16].mxu0 }
 0x77f   : > { %v1429_v51 = vpop.f32.mrb[17].mxu0  ;;  %v949_v54 = vsub.f32 %v942_v50, %v1823_v3 }
 0x780   : > { %v945_v53 = vpop.f32.mrb[18].mxu0 }
 0x781   : > { %v950_v55 = vsub.f32 %v945_v53, %v1826_v4  ;;  %v1430_v56 = vpop.f32.mrb[19].mxu0 }
 0x783   : > { %v951_v0 = vpack.c.bf16 %v950_v55, %v949_v54 }
 0x785   : > { %1440 = vmatmul.mubr.msk.bf16.vlgmr.msra.gmra.mrb[20].mxu0 %vm335_vm0, %v951_v0 }
 0x7c8   : > { %v1022_v59 = vpop.xlane.xlu1 %1021 }
 0x7c9   : > { %vm1023_vm11 = vcmp.eq.f32.partialorder %v1020_v46, %v1022_v59  ;;  %v1028_v10 = vcvt.f32.s32 %v1022_v59 }
 0x7ca   : > { %v1024_v5 = vsel %vm1023_vm11, %v1019_v61, inf }
 0x7cb   : > { %1025 = vmin.xlane.f32.xlu1 %v1024_v5  ;;  %v1029_v14 = vshll.u32 %v1028_v10, 16 }
 0x7cc   : > { %v1037_v7 = vpop.xlane.xlu1 %1036 }
 0x7cd   : > { %vm1038_vm12 = vcmp.eq.f32.partialorder %v1035_v49, %v1037_v7  ;;  %v1043_v15 = vcvt.f32.s32 %v1037_v7 }
 0x7ce   : > { %v1039_v9 = vsel %vm1038_vm12, %v1034_v8, inf }
 0x7cf   : > { %1040 = vmin.xlane.f32.xlu1 %v1039_v9  ;;  %v1044_v29 = vshll.u32 %v1043_v15, 16 }
 0x858   : > { %v989_v12 = vpop.f32.mrb[20].mxu0  ;;  %v1026_v13 = vpop.xlane.xlu1 %1025 }
 0x859   : > { %v990_v18 = vadd.f32 %v989_v12, %v1921_v60  ;;  %v1027_v19 = vcvt.f32.s32 %v1026_v13  ;;  %v1441_v20 = vpop.f32.mrb[21].mxu0 }
 0x85a   : > { %v992_v11 = vpop.f32.mrb[22].mxu0 }
 0x85b   : > { %v996_v22 = vadd.f32 %v1961_v57, %v990_v18  ;;  %v1030_v16 = vadd.s32 %v1029_v14, %v1027_v19  ;;  %v993_v24 = vadd.f32 %v992_v11, %v1923_v63  ;;  %v1442_v25 = vpop.f32.mrb[23].mxu0 }
 0x85c   : > { %v1041_v26 = vpop.xlane.xlu1 %1040 }
 0x85d   : > { %v998_v30 = vmul.f32 0.2, %v996_v22  ;;  %v997_v31 = vadd.f32 %v1961_v57, %v993_v24  ;;  %v1042_v62 = vcvt.f32.s32 %v1041_v26  ;;  %vm1046_vm13 = vcmp.eq.s32.totalorder %v1847_v33, %v1030_v16 }
 0x85e   : > { %v1048_v38 = vsel %vm1046_vm13, 1.0, %v1653_v52 }
 0x85f   : > { %v1000_v6 = vmax.f32 %v996_v22, %v998_v30  ;;  %v999_v32 = vmul.f32 0.2, %v997_v31  ;;  %v1045_v35 = vadd.s32 %v1044_v29, %v1042_v62 }
 0x861   : > { %v1002_v36 = vmax.f32 %v1973_v1, %v1000_v6  ;;  %v1001_v37 = vmax.f32 %v997_v31, %v999_v32  ;;  %vm1047_vm14 = vcmp.eq.s32.totalorder %v1847_v33, %v1045_v35 }
 0x862   : > { %v1049_v23 = vsel %vm1047_vm14, 1.0, %v1653_v52 }
 0x863   : > { %v1003_v40 = vmax.f32 %v1979_v39, %v1001_v37  ;;  %v1050_v28 = vpack.c.bf16 %v1049_v23, %v1048_v38 }
 0x865   : > { %1446 = vmatmul.mubr.msk.bf16.vlgmr.msra.gmra.mrb[8].mxu1 %vm557_vm2, %v1050_v28 }
 0x866   : > { %1450 = vmatpush3.bf16.msra.mxu1 %v1876_v17  ;;  %1457 = vmatprep.mubr.msk.bf16.mxu1 %vm1654_vm7, %v1653_v52 }
 0x867   : > { %1451 = vmatprep.subr.bf16.mxu1 %v1653_v52 }
 0x86a   : > { %1452 = vmatpush3.bf16.msra.mxu1 %v1880_v21 }
 0x86b   : > { %1453 = vmatprep.subr.bf16.mxu1 %v1653_v52 }
 0x86e   : > { %1454 = vmatpush3.bf16.msra.mxu1 %v1887_v27 }
 0x86f   : > { %1455 = vmatprep.subr.bf16.mxu1 %v1653_v52 }
 0x872   : > { %1456 = vmatpush3.bf16.msra.mxu1 %v1891_v34 }
 0x938   : > { %v1088_v33 = vpop.f32.mrb[8].mxu1 }
 0x939   : > { %v1447_v1 = vpop.f32.mrb[9].mxu1  ;;  %v1095_v17 = vsub.f32 %v1088_v33, %v1823_v3 }
 0x93a   : > { %v1091_v39 = vpop.f32.mrb[10].mxu1 }
 0x93b   : > { %v1096_v41 = vsub.f32 %v1091_v39, %v1826_v4  ;;  %v1448_v42 = vpop.f32.mrb[11].mxu1 }
 0x93d   : > { %v1097_v43 = vpack.c.bf16 %v1096_v41, %v1095_v17 }
 0x93f   : > { %1458 = vmatmul.mubr.msk.bf16.vlgmr.msra.gmra.mrb[12].mxu1 %vm335_vm0, %v1097_v43  ;;  %vm1158_vm0 = vcmask 519168  }
 0xa12   : > { %v1135_v21 = vpop.f32.mrb[12].mxu1 }
 0xa13   : > { %v1136_v44 = vadd.f32 %v1135_v21, %v1921_v60  ;;  %v1459_v27 = vpop.f32.mrb[13].mxu1 }
 0xa14   : > { %v1138_v45 = vpop.f32.mrb[14].mxu1 }
 0xa15   : > { %v1142_v52 = vadd.f32 %v1961_v57, %v1136_v44  ;;  %v1139_v34 = vadd.f32 %v1138_v45, %v1923_v63  ;;  %v1460_v46 = vpop.f32.mrb[15].mxu1 }
 0xa17   : > { %v1144_v47 = vmul.f32 0.2, %v1142_v52  ;;  %v1143_v3 = vadd.f32 %v1961_v57, %v1139_v34 }
 0xa19   : > { %v1146_v48 = vmax.f32 %v1142_v52, %v1144_v47  ;;  %v1145_v4 = vmul.f32 0.2, %v1143_v3 }
 0xa1b   : > { %v1148_v49 = vmax.f32 %v1002_v36, %v1146_v48  ;;  %v1147_v50 = vmax.f32 %v1143_v3, %v1145_v4 }
 0xa1d   : > { %v1331_v60 = vpack.c.bf16 %v1148_v49, %v1148_v49  ;;  %v1149_v51 = vmax.f32 %v1003_v40, %v1147_v50 }
 0xa1f   : > { %1159 = vst.msk [vmem:[%s324_s13] sm:$0xf] %vm1158_vm0, %v1331_v60  ;;  %v1332_v53 = vpack.c.bf16 %v1149_v51, %v1149_v51 }
 0xa21   : > { %1160 = vst.msk [vmem:[%s324_s13 + $0x4] sm:$0xf] %vm1158_vm0, %v1332_v53 }
 0xa22 PF: > { %s17_s20 = sadd.s32 1, %s1646_s20   ;;  %s2055_s18 = smov %s1642_s19 }
 0xa23   : > { %p14_p5 = scmp.ge.s32.totalorder %s17_s20, 4   ;;  %s2056_s19 = smov %s2058_s27 }
 0xa25   :  { %16 = sbr.rel (!%p14_p5) target bundleno = 3 (0x3), region = 86 }
 0xa2c   :  { %1191 = vsyncpa [#allocation3], 1 }
 0xa2d   :  { %1193 = vsyncpa [#allocation3 + $0x1], 1 }
 0xa2e   :  { %1194 = vsyncpa [#allocation5], 1 }

// kernel: dgcnn_forward.8
= control target key start
LH: loop header
LB: loop body
LE: loop exit
PB: predicated region body
PF: predicated region fallthrough
CT: control target
= control target key end

     0   :  { %s1478_s18 = smov 0   ;;  %s1480_s19 = smov 0   ;;  %s2011_s0 = inlined_call_operand.vmem [shape: bf16[2,16,128], index: 0, kind: input, shape index: {}, may-alias: {0,1}]   ;;  %s2012_s1 = inlined_call_operand.vmem [shape: bf16[2,16,128], index: 1, kind: input, shape index: {}, may-alias: {0,1}]   ;;  %s2013_s2 = inlined_call_operand.vmem [shape: f32[128,256], index: 2, kind: input, shape index: {}]   ;;  %s2014_s3 = inlined_call_operand.vmem [shape: f32[128,256], index: 3, kind: input, shape index: {}]   ;;  %s2015_s4 = inlined_call_operand.vmem [shape: f32[1,256], index: 4, kind: input, shape index: {}]   ;;  %s2016_s5 = inlined_call_operand.vmem [shape: bf16[2,16,256], index: 5, kind: output, shape index: {}]  }
   0x1   :  { %s1482_s20 = smov 0  }
   0x2 LB: > { %s27_s21 = sadd.s32 1, %s1439_s19  ;;  %p1319_p0 = scmp.ge.s32.totalorder %s1443_s20, 1  ;;  %s1443_s20 = sphi %s1482_s20, %s15_s20   ;;  %s1439_s19 = sphi %s1480_s19, %s2018_s19   ;;  %s1435_s18 = sphi %s1478_s18, %s2017_s18  }
   0x3   : > { %p29_p1 = scmp.ge.s32.totalorder %s27_s21, 2  ;;  %p218_p2 = scmp.lt.s32.totalorder %s1443_s20, 3 }
   0x5   : > { %s2020_s21 = smov (%p29_p1, %s27_s21), 0  ;;  %p219_p3 = pnand %p1319_p0, %p218_p2 }
   0x6   : > { %p260_p4 = scmp.lt.s32.totalorder (!%p219_p3), %s1435_s18, 1  ;;  %v418_v14 = vlaneseq (!%p219_p3)  ;;  %vm572_vm0 = vcmask (!%p219_p3), 130048   ;;  %v1445_v48 = vmov (!%p219_p3), 0.0   ;;  %vm1446_vm5 = vmmov (!%p219_p3), 0  }
   0x7   : > { %222 = sbr.rel (%p219_p3) target bundleno = 2517 (0x9d5), region = 40 }
   0x8   : > { %v1525_v16 = vshrl.u32 (!%p219_p3), %v418_v14, 7  ;;  %v1532_v29 = vand.u32 (!%p219_p3), 127, %v418_v14 }
   0xa   : > { %v420_v19 = vsub.s32 (!%p219_p3), 0, %v1525_v16 }
   0xe   : > { %s2022_s18 = smov (!%p260_p4, %s1435_s18), 1 }
   0xf   : > { %s1336_s22 = sshll.u32 %s2022_s18, 3  ;;  %s1338_s8 = sshll.u32 %s2022_s18, 4 }
  0x10   : > { %s264_s25 = scalar_lea.vmem %s2011_s0, %s1336_s22  ;;  %s273_s28 = scalar_lea.vmem %s2012_s1, %s1336_s22 }
  0x11   : > { %v1505_v0 = vld [vmem:[%s264_s25] sm:$0xff]   ;;  %s284_s11 = scalar_lea.vmem %s2016_s5, %s1338_s8 }
  0x12   : > { %v1507_v1 = vld [vmem:[%s273_s28] sm:$0xff]   ;;  %v291_v2 = vunpack.c.l.bf16 %v1505_v0  ;;  %v292_v4 = vunpack.c.h.bf16 %v1505_v0  ;;  %1385 = vmatprep.subr.bf16.mxu0 %v1505_v0 }
  0x13   : > { %v1511_v3 = vunpack.c.l.bf16 %v1507_v1  ;;  %v1515_v5 = vunpack.c.h.bf16 %v1507_v1  ;;  %1387 = vmatpush3.bf16.xpose.msra.mxu0 %v1505_v0 }
  0x14   : > { %v376_v6 = vmul.f32 %v291_v2, %v291_v2  ;;  %v377_v8 = vmul.f32 %v292_v4, %v292_v4  ;;  %1360 = vmatprep.subr.bf16.mxu0 %v1445_v48 }
  0x15   : > { %1357 = vmatprep.mubr.f32.mxu0 %v1511_v3  ;;  %v370_v7 = vmul.f32 %v1511_v3, %v1511_v3  ;;  %v371_v9 = vmul.f32 %v1515_v5, %v1515_v5 }
  0x16   : > { %378 = vadd.xlane.f32.xlu0 %v376_v6  ;;  %v473_v6 = vld [vmem:[%s2014_s3 + $0x8] sm:$0xff] }
  0x17   : > { %372 = vadd.xlane.f32.xlu1 %v370_v7  ;;  %v475_v7 = vld [vmem:[%s2014_s3 + $0x18] sm:$0xff] }
  0x1a   : > { %380 = vadd.xlane.f32.xlu0 %v377_v8  ;;  %1358 = vmatmul.mubr.f32.vlgmr.msra.gmra.mrb[0].mxu0 %v1515_v5  ;;  %v425_v8 = vld [vmem:[%s2013_s2 + $0x8] sm:$0xff] }
  0x1b   : > { %374 = vadd.xlane.f32.xlu1 %v371_v9  ;;  %1361 = vmatpush3.bf16.msra.mxu0 %v1505_v0  ;;  %v505_v9 = vpack.c.bf16 %v475_v7, %v473_v6  ;;  %v490_v6 = vld [vmem:[%s2014_s3 + $0x90] sm:$0xff]  ;;  %v440_v7 = vld [vmem:[%s2013_s2 + $0x80] sm:$0xff] }
  0x1c   : > { %1362 = vmatprep.mubr.msk.bf16.mxu0 %vm1446_vm5, %v1445_v48 }
  0x1d   : > { %527 = vmatprep.subr.bf16.mxu1 %v505_v9  ;;  %v442_v9 = vld [vmem:[%s2013_s2 + $0x90] sm:$0xff] }
  0xa3   : > { %v379_v10 = vpop.xlane.xlu0 %378 }
  0xa4   : > { %386 = vxpose.xlu0.b32.start [1/2] (short) (narrow) %v379_v10, 8  ;;  %v373_v15 = vpop.xlane.xlu1 %372  ;;  %v427_v10 = vld [vmem:[%s2013_s2 + $0x18] sm:$0xff] }
  0xa7   : > { %v381_v11 = vpop.xlane.xlu0 %380 }
  0xa8   : > { %387 = vxpose.xlu0.b32.end [2/2] (short) (narrow) %v381_v11, 8  ;;  %v375_v20 = vpop.xlane.xlu1 %374  ;;  %v472_v11 = vld [vmem:[%s2014_s3] sm:$0xff] }
  0xed   : > { %v1359_v12 = vpop.f32.mrb[0].mxu0 }
  0xee   : > { %v361_v13 = vpop.f32.mrb[1].mxu0  ;;  %v383_v18 = vmul.f32 2.0, %v1359_v12  ;;  %v474_v12 = vld [vmem:[%s2014_s3 + $0x10] sm:$0xff] }
  0xef   : > { %v382_v17 = vmul.f32 2.0, %v361_v13  ;;  %v1573_v13 = vpack.c.bf16 %v427_v10, %v425_v8  ;;  %v504_v14 = vpack.c.bf16 %v474_v12, %v472_v11  ;;  %v493_v10 = vld [vmem:[%s2014_s3 + $0xa8] sm:$0xff]  ;;  %v495_v11 = vld [vmem:[%s2014_s3 + $0xb8] sm:$0xff] }
  0xf0   : > { %v385_v23 = vsub.f32 %v383_v18, %v375_v20  ;;  %v477_v18 = vld [vmem:[%s2014_s3 + $0x28] sm:$0xff] }
  0xf1   : > { %v384_v21 = vsub.f32 %v382_v17, %v373_v15  ;;  %v424_v15 = vld [vmem:[%s2013_s2] sm:$0xff]  ;;  %v426_v17 = vld [vmem:[%s2013_s2 + $0x10] sm:$0xff]  ;;  %671 = vmatprep.subr.bf16.mxu0 %v1573_v13  ;;  %528 = vmatpush1.bf16.msra.mxu1 %v504_v14  ;;  %v445_v12 = vld [vmem:[%s2013_s2 + $0xa8] sm:$0xff] }
  0xf2   : > { %v1584_v20 = vpack.c.bf16 %v426_v17, %v424_v15  ;;  %v447_v14 = vld [vmem:[%s2013_s2 + $0xb8] sm:$0xff]  ;;  %v1713_v17 = vpack.c.bf16 %v442_v9, %v440_v7 }
 0x124   : > { %v402_v22 = vpop.trf.xlu0 }
 0x125   : > { %v421_v24 = vrot.slane %v402_v22, %v420_v19  ;;  %v429_v22 = vld [vmem:[%s2013_s2 + $0x28] sm:$0xff] }
 0x127   : > { %v422_v25 = vsub.f32 %v384_v21, %v421_v24  ;;  %v423_v26 = vsub.f32 %v385_v23, %v421_v24  ;;  %v479_v21 = vld [vmem:[%s2014_s3 + $0x38] sm:$0xff] }
 0x128   : > { %v431_v23 = vld [vmem:[%s2013_s2 + $0x38] sm:$0xff]  ;;  %v507_v24 = vpack.c.bf16 %v479_v21, %v477_v18  ;;  %v515_v18 = vpack.c.bf16 %v495_v11, %v493_v10  ;;  %v492_v21 = vld [vmem:[%s2014_s3 + $0xa0] sm:$0xff] }
 0x129   : > { %v573_v27 = vsel %vm572_vm0, %v422_v25, -inf  ;;  %v576_v28 = vsel %vm572_vm0, %v423_v26, -inf }
 0x12a   : > { %574 = vmax.xlane.f32.xlu1 %v573_v27  ;;  %v478_v27 = vld [vmem:[%s2014_s3 + $0x30] sm:$0xff]  ;;  %529 = vmatprep.subr.bf16.mxu1 %v507_v24  ;;  %v1725_v24 = vpack.c.bf16 %v447_v14, %v445_v12 }
 0x12e   : > { %577 = vmax.xlane.f32.xlu1 %v576_v28  ;;  %v428_v28 = vld [vmem:[%s2013_s2 + $0x20] sm:$0xff] }
 0x1b7   : > { %v575_v30 = vpop.xlane.xlu1 %574 }
 0x1b8   : > { %vm579_vm1 = vcmp.ge.f32.partialorder %v422_v25, %v575_v30 }
 0x1b9   : > { %v581_v31 = vsel %vm579_vm1, %v1532_v29, 16 }
 0x1ba   : > { %v583_v32 = vsel %vm572_vm0, %v581_v31, 2147483647  ;;  %v430_v31 = vld [vmem:[%s2013_s2 + $0x30] sm:$0xff] }
 0x1bb   : > { %v578_v33 = vpop.xlane.xlu1 %577  ;;  %v585_v34 = vshra.s32 %v583_v32, 16  ;;  %v584_v40 = vand.u32 65535, %v583_v32  ;;  %v481_v32 = vld [vmem:[%s2014_s3 + $0x48] sm:$0xff] }
 0x1bc   : > { %vm580_vm2 = vcmp.ge.f32.partialorder %v423_v26, %v578_v33  ;;  %v483_v33 = vld [vmem:[%s2014_s3 + $0x58] sm:$0xff] }
 0x1bd   : > { %v582_v35 = vsel %vm580_vm2, %v1532_v29, 16  ;;  %v587_v36 = vcvt.s32.f32 %v585_v34  ;;  %v586_v42 = vcvt.s32.f32 %v584_v40  ;;  %v1618_v34 = vpack.c.bf16 %v430_v31, %v428_v28  ;;  %v482_v40 = vld [vmem:[%s2014_s3 + $0x50] sm:$0xff]  ;;  %v499_v28 = vld [vmem:[%s2014_s3 + $0xd8] sm:$0xff] }
 0x1be   : > { %v598_v37 = vsel %vm572_vm0, %v582_v35, 2147483647  ;;  %v509_v35 = vpack.c.bf16 %v483_v33, %v481_v32  ;;  %v451_v31 = vld [vmem:[%s2013_s2 + $0xd8] sm:$0xff] }
 0x1bf   : > { %588 = vmin.xlane.f32.xlu1 %v587_v36  ;;  %v600_v38 = vshra.s32 %v598_v37, 16  ;;  %v599_v43 = vand.u32 65535, %v598_v37  ;;  %v435_v37 = vld [vmem:[%s2013_s2 + $0x58] sm:$0xff] }
 0x1c1   : > { %v602_v39 = vcvt.s32.f32 %v600_v38  ;;  %v601_v46 = vcvt.s32.f32 %v599_v43  ;;  %v480_v38 = vld [vmem:[%s2014_s3 + $0x40] sm:$0xff] }
 0x1c2   : > { %v508_v43 = vpack.c.bf16 %v482_v40, %v480_v38 }
 0x1c3   : > { %603 = vmin.xlane.f32.xlu1 %v602_v39 }
 0x24c   : > { %v589_v41 = vpop.xlane.xlu1 %588 }
 0x24d   : > { %vm590_vm3 = vcmp.eq.f32.partialorder %v587_v36, %v589_v41  ;;  %v595_v49 = vcvt.f32.s32 %v589_v41  ;;  %v433_v36 = vld [vmem:[%s2013_s2 + $0x48] sm:$0xff]  ;;  %v432_v41 = vld [vmem:[%s2013_s2 + $0x40] sm:$0xff] }
 0x24e   : > { %v591_v44 = vsel %vm590_vm3, %v586_v42, inf  ;;  %v434_v42 = vld [vmem:[%s2013_s2 + $0x50] sm:$0xff] }
 0x24f   : > { %592 = vmin.xlane.f32.xlu1 %v591_v44  ;;  %v596_v51 = vshll.u32 %v595_v49, 16  ;;  %v485_v44 = vld [vmem:[%s2014_s3 + $0x68] sm:$0xff] }
 0x250   : > { %v604_v45 = vpop.xlane.xlu1 %603 }
 0x251   : > { %vm605_vm4 = vcmp.eq.f32.partialorder %v602_v39, %v604_v45  ;;  %v610_v52 = vcvt.f32.s32 %v604_v45  ;;  %v1629_v39 = vpack.c.bf16 %v435_v37, %v433_v36  ;;  %v487_v45 = vld [vmem:[%s2014_s3 + $0x78] sm:$0xff]  ;;  %v496_v36 = vld [vmem:[%s2014_s3 + $0xc0] sm:$0xff]  ;;  %v498_v37 = vld [vmem:[%s2014_s3 + $0xd0] sm:$0xff] }
 0x252   : > { %v606_v47 = vsel %vm605_vm4, %v601_v46, inf  ;;  %v437_v46 = vld [vmem:[%s2013_s2 + $0x68] sm:$0xff]  ;;  %v511_v49 = vpack.c.bf16 %v487_v45, %v485_v44  ;;  %v516_v40 = vpack.c.bf16 %v498_v37, %v496_v36  ;;  %v503_v45 = vld [vmem:[%s2014_s3 + $0xf8] sm:$0xff] }
 0x253   : > { %607 = vmin.xlane.f32.xlu1 %v606_v47  ;;  %v611_v56 = vshll.u32 %v610_v52, 16  ;;  %v1650_v47 = vpack.c.bf16 %v434_v42, %v432_v41  ;;  %v486_v52 = vld [vmem:[%s2014_s3 + $0x70] sm:$0xff]  ;;  %v448_v41 = vld [vmem:[%s2013_s2 + $0xc0] sm:$0xff]  ;;  %v501_v44 = vld [vmem:[%s2014_s3 + $0xe8] sm:$0xff] }
 0x254   : > { %v450_v42 = vld [vmem:[%s2013_s2 + $0xd0] sm:$0xff] }
 0x2dc   : > { %v593_v50 = vpop.xlane.xlu1 %592 }
 0x2dd   : > { %v594_v53 = vcvt.f32.s32 %v593_v50  ;;  %v439_v50 = vld [vmem:[%s2013_s2 + $0x78] sm:$0xff] }
 0x2df   : > { %v597_v54 = vadd.s32 %v596_v51, %v594_v53  ;;  %v484_v51 = vld [vmem:[%s2014_s3 + $0x60] sm:$0xff]  ;;  %v1662_v53 = vpack.c.bf16 %v439_v50, %v437_v46  ;;  %v453_v46 = vld [vmem:[%s2013_s2 + $0xe8] sm:$0xff]  ;;  %v455_v50 = vld [vmem:[%s2013_s2 + $0xf8] sm:$0xff] }
 0x2e0   : > { %v608_v55 = vpop.xlane.xlu1 %607 }
 0x2e1   : > { %v609_v57 = vcvt.f32.s32 %v608_v55  ;;  %vm613_vm6 = vcmp.eq.s32.totalorder %v1532_v29, %v597_v54  ;;  %v436_v54 = vld [vmem:[%s2013_s2 + $0x60] sm:$0xff]  ;;  %v438_v55 = vld [vmem:[%s2013_s2 + $0x70] sm:$0xff] }
 0x2e2   : > { %v1543_v58 = vsel %vm613_vm6, -inf, %v422_v25  ;;  %v615_v61 = vsel %vm613_vm6, 1.0, %v1445_v48  ;;  %v1596_v25 = vpack.c.bf16 %v431_v23, %v429_v22  ;;  %v494_v22 = vld [vmem:[%s2014_s3 + $0xb0] sm:$0xff]  ;;  %v444_v23 = vld [vmem:[%s2013_s2 + $0xa0] sm:$0xff] }
 0x2e3   : > { %v612_v59 = vadd.s32 %v611_v56, %v609_v57  ;;  %v739_v60 = vsel %vm572_vm0, %v1543_v58, -inf  ;;  %v489_v56 = vld [vmem:[%s2014_s3 + $0x88] sm:$0xff]  ;;  %v491_v57 = vld [vmem:[%s2014_s3 + $0x98] sm:$0xff]  ;;  %v514_v32 = vpack.c.bf16 %v494_v22, %v492_v21 }
 0x2e4   : > { %740 = vmax.xlane.f32.xlu1 %v739_v60  ;;  %v443_v60 = vld [vmem:[%s2013_s2 + $0x98] sm:$0xff] }
 0x2e5   : > { %vm614_vm7 = vcmp.eq.s32.totalorder %v1532_v29, %v612_v59  ;;  %v441_v59 = vld [vmem:[%s2013_s2 + $0x88] sm:$0xff] }
 0x2e6   : > { %v1549_v62 = vsel %vm614_vm7, -inf, %v423_v26  ;;  %v616_v63 = vsel %vm614_vm7, 1.0, %v1445_v48  ;;  %v476_v26 = vld [vmem:[%s2014_s3 + $0x20] sm:$0xff]  ;;  %v1695_v8 = vpack.c.bf16 %v443_v60, %v441_v59  ;;  %v1447_v60 = vmov 0  }
 0x2e7   : > { %v742_v2 = vsel %vm572_vm0, %v1549_v62, -inf  ;;  %v617_v4 = vpack.c.bf16 %v616_v63, %v615_v61  ;;  %v506_v30 = vpack.c.bf16 %v478_v27, %v476_v26  ;;  %v510_v61 = vpack.c.bf16 %v486_v52, %v484_v51  ;;  %v446_v26 = vld [vmem:[%s2013_s2 + $0xb0] sm:$0xff]  ;;  %v497_v27 = vld [vmem:[%s2014_s3 + $0xc8] sm:$0xff]  ;;  %v500_v51 = vld [vmem:[%s2014_s3 + $0xe0] sm:$0xff]  ;;  %559 = vmatprep.mubr.bf16.mxu1 %v1447_v60 }
 0x2e8   : > { %743 = vmax.xlane.f32.xlu1 %v742_v2  ;;  %v1683_v63 = vpack.c.bf16 %v438_v55, %v436_v54  ;;  %v513_v2 = vpack.c.bf16 %v491_v57, %v489_v56  ;;  %v1743_v33 = vpack.c.bf16 %v446_v26, %v444_v23  ;;  %v502_v52 = vld [vmem:[%s2014_s3 + $0xf0] sm:$0xff]  ;;  %v1783_v54 = vpack.c.bf16 %v455_v50, %v453_v46  ;;  %v452_v56 = vld [vmem:[%s2013_s2 + $0xe0] sm:$0xff] }
 0x2e9   : > { %1363 = vmatmul.mubr.msk.bf16.vlgmr.msra.gmra.mrb[4].mxu0 %vm572_vm0, %v617_v4  ;;  %530 = vmatpush1.bf16.msra.mxu1 %v506_v30  ;;  %v488_v4 = vld [vmem:[%s2014_s3 + $0x80] sm:$0xff]  ;;  %v449_v30 = vld [vmem:[%s2013_s2 + $0xc8] sm:$0xff]  ;;  %v518_v55 = vpack.c.bf16 %v502_v52, %v500_v51  ;;  %v454_v57 = vld [vmem:[%s2013_s2 + $0xf0] sm:$0xff] }
 0x2ea   : > { %672 = vmatpush1.bf16.msra.mxu0 %v1584_v20  ;;  %531 = vmatprep.subr.bf16.mxu1 %v509_v35  ;;  %v512_v15 = vpack.c.bf16 %v490_v6, %v488_v4  ;;  %v517_v35 = vpack.c.bf16 %v499_v28, %v497_v27  ;;  %v1752_v38 = vpack.c.bf16 %v451_v31, %v449_v30  ;;  %v1841_v46 = vld [vmem:[%s2015_s4] sm:$0x3] }
 0x2eb   : > { %673 = vmatprep.subr.bf16.mxu0 %v1596_v25  ;;  %v1791_v59 = vpack.c.bf16 %v454_v57, %v452_v56  ;;  %703 = vmatprep.mubr.bf16.mxu0 %v1447_v60 }
 0x2ed   : > { %532 = vmatpush1.bf16.msra.mxu1 %v508_v43  ;;  %v1762_v43 = vpack.c.bf16 %v450_v42, %v448_v41 }
 0x2ee   : > { %674 = vmatpush1.bf16.msra.mxu0 %v1618_v34  ;;  %533 = vmatprep.subr.bf16.mxu1 %v511_v49  ;;  %v519_v49 = vpack.c.bf16 %v503_v45, %v501_v44  ;;  %v721_v45 = vsub.s32 1, %v1525_v16 }
 0x2ef   : > { %675 = vmatprep.subr.bf16.mxu0 %v1629_v39 }
 0x2f0   : > { %v1844_v50 = vrot.slane %v1841_v46, %v721_v45 }
 0x2f1   : > { %534 = vmatpush1.bf16.msra.mxu1 %v510_v61 }
 0x2f2   : > { %676 = vmatpush1.bf16.msra.mxu0 %v1650_v47  ;;  %535 = vmatprep.subr.bf16.mxu1 %v513_v2 }
 0x2f3   : > { %677 = vmatprep.subr.bf16.mxu0 %v1662_v53 }
 0x2f5   : > { %536 = vmatpush1.bf16.msra.mxu1 %v512_v15 }
 0x2f6   : > { %678 = vmatpush1.bf16.msra.mxu0 %v1683_v63  ;;  %537 = vmatprep.subr.bf16.mxu1 %v515_v18 }
 0x2f7   : > { %679 = vmatprep.subr.bf16.mxu0 %v1695_v8 }
 0x2f9   : > { %538 = vmatpush1.bf16.msra.mxu1 %v514_v32 }
 0x2fa   : > { %680 = vmatpush1.bf16.msra.mxu0 %v1713_v17  ;;  %539 = vmatprep.subr.bf16.mxu1 %v517_v35 }
 0x2fb   : > { %681 = vmatprep.subr.bf16.mxu0 %v1725_v24 }
 0x2fd   : > { %540 = vmatpush1.bf16.msra.mxu1 %v516_v40 }
 0x2fe   : > { %682 = vmatpush1.bf16.msra.mxu0 %v1743_v33  ;;  %541 = vmatprep.subr.bf16.mxu1 %v519_v49 }
 0x2ff   : > { %683 = vmatprep.subr.bf16.mxu0 %v1752_v38 }
 0x301   : > { %542 = vmatpush1.bf16.msra.mxu1 %v518_v55 }
 0x302   : > { %684 = vmatpush1.bf16.msra.mxu0 %v1762_v43  ;;  %831 = vmatprep.subr.bf16.mxu1 %v1573_v13 }
 0x303   : > { %685 = vmatprep.subr.bf16.mxu0 %v1783_v54 }
 0x304   : > { %560 = vmatmul.mubr.bf16.vlgmr.msra.gmra.mrb[0].mxu1 %v1507_v1 }
 0x305   : > { %832 = vmatpush1.bf16.msra.mxu1 %v1584_v20  ;;  %863 = vmatprep.mubr.bf16.mxu1 %v1447_v60 }
 0x306   : > { %686 = vmatpush1.bf16.msra.mxu0 %v1791_v59  ;;  %833 = vmatprep.subr.bf16.mxu1 %v1596_v25 }
 0x307   : > { %1366 = vmatprep.subr.bf16.mxu0 %v1445_v48 }
 0x309   : > { %834 = vmatpush1.bf16.msra.mxu1 %v1618_v34 }
 0x30a   : > { %835 = vmatprep.subr.bf16.mxu1 %v1629_v39 }
 0x30d   : > { %836 = vmatpush1.bf16.msra.mxu1 %v1650_v47 }
 0x30e   : > { %837 = vmatprep.subr.bf16.mxu1 %v1662_v53 }
 0x311   : > { %838 = vmatpush1.bf16.msra.mxu1 %v1683_v63 }
 0x312   : > { %839 = vmatprep.subr.bf16.mxu1 %v1695_v8 }
 0x315   : > { %840 = vmatpush1.bf16.msra.mxu1 %v1713_v17 }
 0x316   : > { %841 = vmatprep.subr.bf16.mxu1 %v1725_v24 }
 0x319   : > { %842 = vmatpush1.bf16.msra.mxu1 %v1743_v33 }
 0x31a   : > { %843 = vmatprep.subr.bf16.mxu1 %v1752_v38 }
 0x31d   : > { %844 = vmatpush1.bf16.msra.mxu1 %v1762_v43 }
 0x31e   : > { %845 = vmatprep.subr.bf16.mxu1 %v1783_v54 }
 0x321   : > { %846 = vmatpush1.bf16.msra.mxu1 %v1791_v59 }
 0x322   : > { %1137 = vmatprep.subr.bf16.mxu1 %v1573_v13 }
 0x371   : > { %v741_v1 = vpop.xlane.xlu1 %740 }
 0x372   : > { %vm745_vm8 = vcmp.ge.f32.partialorder %v1543_v58, %v741_v1 }
 0x373   : > { %v747_v61 = vsel %vm745_vm8, %v1532_v29, 16 }
 0x374   : > { %v749_v2 = vsel %vm572_vm0, %v747_v61, 2147483647 }
 0x375   : > { %v744_v4 = vpop.xlane.xlu1 %743  ;;  %v751_v6 = vshra.s32 %v749_v2, 16  ;;  %v750_v27 = vand.u32 65535, %v749_v2 }
 0x376   : > { %vm746_vm9 = vcmp.ge.f32.partialorder %v1549_v62, %v744_v4 }
 0x377   : > { %v748_v7 = vsel %vm746_vm9, %v1532_v29, 16  ;;  %v753_v9 = vcvt.s32.f32 %v751_v6  ;;  %v752_v30 = vcvt.s32.f32 %v750_v27 }
 0x378   : > { %v764_v10 = vsel %vm572_vm0, %v748_v7, 2147483647 }
 0x379   : > { %754 = vmin.xlane.f32.xlu1 %v753_v9  ;;  %v766_v11 = vshra.s32 %v764_v10, 16  ;;  %v765_v31 = vand.u32 65535, %v764_v10 }
 0x37b   : > { %v768_v12 = vcvt.s32.f32 %v766_v11  ;;  %v767_v36 = vcvt.s32.f32 %v765_v31 }
 0x37d   : > { %769 = vmin.xlane.f32.xlu1 %v768_v12 }
 0x3bc   : > { %v661_v14 = vpop.f32.mrb[4].mxu0 }
 0x3bd   : > { %v1364_v15 = vpop.f32.mrb[5].mxu0  ;;  %v668_v21 = vsub.f32 %v661_v14, %v1511_v3 }
 0x3be   : > { %v664_v18 = vpop.f32.mrb[6].mxu0 }
 0x3bf   : > { %v669_v22 = vsub.f32 %v664_v18, %v1515_v5  ;;  %v1365_v23 = vpop.f32.mrb[7].mxu0 }
 0x3c1   : > { %v670_v26 = vpack.c.bf16 %v669_v22, %v668_v21 }
 0x3c3   : > { %704 = vmatmul.mubr.bf16.vlgmr.msra.gmra.mrb[8].mxu0 %v670_v26 }
 0x3c4   : > { %1367 = vmatpush3.bf16.msra.mxu0 %v1505_v0  ;;  %1368 = vmatprep.mubr.msk.bf16.mxu0 %vm1446_vm5, %v1445_v48 }
 0x3c5   : > { %1372 = vmatprep.subr.bf16.mxu0 %v1445_v48 }
 0x3d7   : > { %v1829_v40 = vpop.f32.mrb[0].mxu1 }
 0x3d8   : > { %v1831_v41 = vpop.f32.mrb[1].mxu1 }
 0x3d9   : > { %v1833_v42 = vpop.f32.mrb[2].mxu1 }
 0x3da   : > { %v1835_v44 = vpop.f32.mrb[3].mxu1 }
 0x406   : > { %v755_v28 = vpop.xlane.xlu1 %754 }
 0x407   : > { %vm756_vm10 = vcmp.eq.f32.partialorder %v753_v9, %v755_v28  ;;  %v761_v49 = vcvt.f32.s32 %v755_v28 }
 0x408   : > { %v757_v32 = vsel %vm756_vm10, %v752_v30, inf }
 0x409   : > { %758 = vmin.xlane.f32.xlu1 %v757_v32  ;;  %v762_v55 = vshll.u32 %v761_v49, 16 }
 0x40a   : > { %v770_v35 = vpop.xlane.xlu1 %769 }
 0x40b   : > { %vm771_vm11 = vcmp.eq.f32.partialorder %v768_v12, %v770_v35  ;;  %v776_v56 = vcvt.f32.s32 %v770_v35 }
 0x40c   : > { %v772_v37 = vsel %vm771_vm11, %v767_v36, inf }
 0x40d   : > { %773 = vmin.xlane.f32.xlu1 %v772_v37  ;;  %v777_v14 = vshll.u32 %v776_v56, 16 }
 0x496   : > { %v705_v51 = vpop.f32.mrb[8].mxu0  ;;  %v759_v52 = vpop.xlane.xlu1 %758 }
 0x497   : > { %v1847_v57 = vadd.f32 %v705_v51, %v1829_v40  ;;  %v760_v1 = vcvt.f32.s32 %v759_v52  ;;  %v707_v61 = vpop.f32.mrb[9].mxu0 }
 0x498   : > { %v708_v2 = vadd.f32 %v707_v61, %v1831_v41  ;;  %v709_v4 = vpop.f32.mrb[10].mxu0 }
 0x499   : > { %v763_v6 = vadd.s32 %v762_v55, %v760_v1  ;;  %v1851_v7 = vadd.f32 %v709_v4, %v1833_v42  ;;  %v711_v9 = vpop.f32.mrb[11].mxu0 }
 0x49a   : > { %v1854_v10 = vadd.f32 %v1844_v50, %v708_v2  ;;  %v712_v11 = vadd.f32 %v711_v9, %v1835_v44  ;;  %v774_v12 = vpop.xlane.xlu1 %773 }
 0x49b   : > { %v775_v15 = vcvt.f32.s32 %v774_v12  ;;  %vm779_vm12 = vcmp.eq.s32.totalorder %v1532_v29, %v763_v6 }
 0x49c   : > { %v1859_v18 = vadd.f32 %v1844_v50, %v712_v11  ;;  %v1862_v21 = vsel %vm779_vm12, -inf, %v1543_v58  ;;  %v781_v26 = vsel %vm779_vm12, 1.0, %v1445_v48 }
 0x49d   : > { %v778_v22 = vadd.s32 %v777_v14, %v775_v15  ;;  %v892_v23 = vsel %vm572_vm0, %v1862_v21, -inf }
 0x49e   : > { %893 = vmax.xlane.f32.xlu1 %v892_v23 }
 0x49f   : > { %vm780_vm13 = vcmp.eq.s32.totalorder %v1532_v29, %v778_v22 }
 0x4a0   : > { %v1869_v27 = vsel %vm780_vm13, -inf, %v1549_v62  ;;  %v782_v28 = vsel %vm780_vm13, 1.0, %v1445_v48 }
 0x4a1   : > { %v895_v30 = vsel %vm572_vm0, %v1869_v27, -inf  ;;  %v783_v31 = vpack.c.bf16 %v782_v28, %v781_v26  ;;  %v1906_v26 = vrot.slane %v1841_v46, %v420_v19  ;;  %v730_v19 = vmul.f32 0.2, %v1854_v10 }
 0x4a2   : > { %896 = vmax.xlane.f32.xlu0 %v895_v30 }
 0x4a3   : > { %1369 = vmatmul.mubr.msk.bf16.vlgmr.msra.gmra.mrb[12].mxu0 %vm572_vm0, %v783_v31  ;;  %v725_v28 = vadd.f32 %v1906_v26, %v1847_v57 }
 0x4a4   : > { %1373 = vmatpush3.bf16.msra.mxu0 %v1505_v0  ;;  %1374 = vmatprep.mubr.msk.bf16.mxu0 %vm1446_vm5, %v1445_v48 }
 0x4a5   : > { %984 = vmatprep.subr.bf16.mxu0 %v1573_v13  ;;  %v729_v31 = vmul.f32 0.2, %v725_v28 }
 0x4a7   : > { %v733_v16 = vmax.f32 %v725_v28, %v729_v31 }
 0x52b   : > { %v894_v58 = vpop.xlane.xlu1 %893 }
 0x52c   : > { %vm898_vm14 = vcmp.ge.f32.partialorder %v1862_v21, %v894_v58  ;;  %v727_v58 = vadd.f32 %v1906_v26, %v1851_v7 }
 0x52d   : > { %v900_v62 = vsel %vm898_vm14, %v1532_v29, 16 }
 0x52e   : > { %v902_v32 = vsel %vm572_vm0, %v900_v62, 2147483647  ;;  %v731_v57 = vmul.f32 0.2, %v727_v58 }
 0x52f   : > { %v897_v35 = vpop.xlane.xlu0 %896  ;;  %v904_v36 = vshra.s32 %v902_v32, 16  ;;  %v903_v6 = vand.u32 65535, %v902_v32 }
 0x530   : > { %vm899_vm15 = vcmp.ge.f32.partialorder %v1869_v27, %v897_v35 }
 0x531   : > { %v901_v37 = vsel %vm899_vm15, %v1532_v29, 16  ;;  %v906_v45 = vcvt.s32.f32 %v904_v36  ;;  %v905_v11 = vcvt.s32.f32 %v903_v6 }
 0x532   : > { %v917_v49 = vsel %vm572_vm0, %v901_v37, 2147483647 }
 0x533   : > { %907 = vmin.xlane.f32.xlu1 %v906_v45  ;;  %v919_v51 = vshra.s32 %v917_v49, 16  ;;  %v918_v12 = vand.u32 65535, %v917_v49 }
 0x535   : > { %v921_v52 = vcvt.s32.f32 %v919_v51  ;;  %v920_v22 = vcvt.s32.f32 %v918_v12  ;;  %v734_v12 = vmax.f32 %v1854_v10, %v730_v19 }
 0x537   : > { %922 = vmin.xlane.f32.xlu1 %v921_v52 }
 0x576   : > { %v821_v13 = vpop.f32.mrb[12].mxu0 }
 0x577   : > { %v1370_v55 = vpop.f32.mrb[13].mxu0  ;;  %v828_v1 = vsub.f32 %v821_v13, %v1511_v3 }
 0x578   : > { %v824_v56 = vpop.f32.mrb[14].mxu0 }
 0x579   : > { %v829_v61 = vsub.f32 %v824_v56, %v1515_v5  ;;  %v1371_v2 = vpop.f32.mrb[15].mxu0  ;;  %v732_v56 = vmul.f32 0.2, %v1859_v18 }
 0x57b   : > { %v830_v4 = vpack.c.bf16 %v829_v61, %v828_v1 }
 0x57d   : > { %864 = vmatmul.mubr.bf16.vlgmr.msra.gmra.mrb[4].mxu1 %v830_v4 }
 0x57e   : > { %1138 = vmatpush1.bf16.msra.mxu1 %v1584_v20  ;;  %1169 = vmatprep.mubr.bf16.mxu1 %v1447_v60 }
 0x57f   : > { %1139 = vmatprep.subr.bf16.mxu1 %v1596_v25 }
 0x582   : > { %1140 = vmatpush1.bf16.msra.mxu1 %v1618_v34 }
 0x583   : > { %1141 = vmatprep.subr.bf16.mxu1 %v1629_v39 }
 0x586   : > { %1142 = vmatpush1.bf16.msra.mxu1 %v1650_v47 }
 0x587   : > { %1143 = vmatprep.subr.bf16.mxu1 %v1662_v53 }
 0x58a   : > { %1144 = vmatpush1.bf16.msra.mxu1 %v1683_v63 }
 0x58b   : > { %1145 = vmatprep.subr.bf16.mxu1 %v1695_v8 }
 0x58e   : > { %1146 = vmatpush1.bf16.msra.mxu1 %v1713_v17 }
 0x58f   : > { %1147 = vmatprep.subr.bf16.mxu1 %v1725_v24 }
 0x592   : > { %1148 = vmatpush1.bf16.msra.mxu1 %v1743_v33 }
 0x593   : > { %1149 = vmatprep.subr.bf16.mxu1 %v1752_v38 }
 0x596   : > { %1150 = vmatpush1.bf16.msra.mxu1 %v1762_v43 }
 0x597   : > { %1151 = vmatprep.subr.bf16.mxu1 %v1783_v54 }
 0x59a   : > { %1152 = vmatpush1.bf16.msra.mxu1 %v1791_v59 }
 0x5c0   : > { %v908_v9 = vpop.xlane.xlu1 %907 }
 0x5c1   : > { %vm909_vm1 = vcmp.eq.f32.partialorder %v906_v45, %v908_v9  ;;  %v914_v30 = vcvt.f32.s32 %v908_v9 }
 0x5c2   : > { %v910_v14 = vsel %vm909_vm1, %v905_v11, inf }
 0x5c3   : > { %911 = vmin.xlane.f32.xlu1 %v910_v14  ;;  %v915_v36 = vshll.u32 %v914_v30, 16 }
 0x5c4   : > { %v923_v15 = vpop.xlane.xlu1 %922 }
 0x5c5   : > { %vm924_vm2 = vcmp.eq.f32.partialorder %v921_v52, %v923_v15  ;;  %v929_v62 = vcvt.f32.s32 %v923_v15 }
 0x5c6   : > { %v925_v23 = vsel %vm924_vm2, %v920_v22, inf }
 0x5c7   : > { %926 = vmin.xlane.f32.xlu1 %v925_v23  ;;  %v930_v1 = vshll.u32 %v929_v62, 16  ;;  %v735_v62 = vmax.f32 %v727_v58, %v731_v57 }
 0x650   : > { %v865_v32 = vpop.f32.mrb[4].mxu1  ;;  %v912_v35 = vpop.xlane.xlu1 %911 }
 0x651   : > { %v866_v37 = vadd.f32 %v865_v32, %v1829_v40  ;;  %v913_v45 = vcvt.f32.s32 %v912_v35  ;;  %v867_v49 = vpop.f32.mrb[5].mxu1  ;;  %v736_v32 = vmax.f32 %v1859_v18, %v732_v56 }
 0x652   : > { %v868_v46 = vadd.f32 %v867_v49, %v1831_v41  ;;  %v869_v51 = vpop.f32.mrb[6].mxu1 }
 0x653   : > { %v874_v52 = vadd.f32 %v866_v37, %v1906_v26  ;;  %v916_v13 = vadd.s32 %v915_v36, %v913_v45  ;;  %v870_v7 = vadd.f32 %v869_v51, %v1833_v42  ;;  %v871_v55 = vpop.f32.mrb[7].mxu1 }
 0x654   : > { %v875_v61 = vadd.f32 %v868_v46, %v1844_v50  ;;  %v872_v2 = vadd.f32 %v871_v55, %v1835_v44  ;;  %v927_v4 = vpop.xlane.xlu1 %926 }
 0x655   : > { %v878_v6 = vmul.f32 0.2, %v874_v52  ;;  %v876_v9 = vadd.f32 %v870_v7, %v1906_v26  ;;  %v928_v11 = vcvt.f32.s32 %v927_v4  ;;  %vm932_vm3 = vcmp.eq.s32.totalorder %v1532_v29, %v916_v13 }
 0x656   : > { %v879_v14 = vmul.f32 0.2, %v875_v61  ;;  %v877_v15 = vadd.f32 %v872_v2, %v1844_v50  ;;  %v1043_v22 = vsel %vm932_vm3, -inf, %v1862_v21  ;;  %v934_v45 = vsel %vm932_vm3, 1.0, %v1445_v48 }
 0x657   : > { %v882_v23 = vmax.f32 %v874_v52, %v878_v6  ;;  %v880_v28 = vmul.f32 0.2, %v876_v9  ;;  %v931_v30 = vadd.s32 %v930_v1, %v928_v11  ;;  %v1045_v31 = vsel %vm572_vm0, %v1043_v22, -inf }
 0x658   : > { %v883_v35 = vmax.f32 %v875_v61, %v879_v14  ;;  %v881_v36 = vmul.f32 0.2, %v877_v15  ;;  %1046 = vmax.xlane.f32.xlu1 %v1045_v31 }
 0x659   : > { %v1929_v37 = vmax.f32 %v733_v16, %v882_v23  ;;  %v884_v10 = vmax.f32 %v876_v9, %v880_v28  ;;  %vm933_vm4 = vcmp.eq.s32.totalorder %v1532_v29, %v931_v30 }
 0x65a   : > { %v1935_v21 = vmax.f32 %v734_v12, %v883_v35  ;;  %v885_v49 = vmax.f32 %v877_v15, %v881_v36  ;;  %v1044_v19 = vsel %vm933_vm4, -inf, %v1869_v27  ;;  %v935_v58 = vsel %vm933_vm4, 1.0, %v1445_v48 }
 0x65b   : > { %v1939_v18 = vmax.f32 %v735_v62, %v884_v10  ;;  %v1048_v46 = vsel %vm572_vm0, %v1044_v19, -inf  ;;  %v936_v16 = vpack.c.bf16 %v935_v58, %v934_v45 }
 0x65c   : > { %v1942_v51 = vmax.f32 %v736_v32, %v885_v49  ;;  %1049 = vmax.xlane.f32.xlu1 %v1048_v46 }
 0x65d   : > { %1375 = vmatmul.mubr.msk.bf16.vlgmr.msra.gmra.mrb[16].mxu0 %vm572_vm0, %v936_v16 }
 0x65e   : > { %985 = vmatpush1.bf16.msra.mxu0 %v1584_v20  ;;  %1016 = vmatprep.mubr.bf16.mxu0 %v1447_v60 }
 0x65f   : > { %986 = vmatprep.subr.bf16.mxu0 %v1596_v25 }
 0x662   : > { %987 = vmatpush1.bf16.msra.mxu0 %v1618_v34 }
 0x663   : > { %988 = vmatprep.subr.bf16.mxu0 %v1629_v39 }
 0x666   : > { %989 = vmatpush1.bf16.msra.mxu0 %v1650_v47 }
 0x667   : > { %990 = vmatprep.subr.bf16.mxu0 %v1662_v53 }
 0x66a   : > { %991 = vmatpush1.bf16.msra.mxu0 %v1683_v63 }
 0x66b   : > { %992 = vmatprep.subr.bf16.mxu0 %v1695_v8 }
 0x66e   : > { %993 = vmatpush1.bf16.msra.mxu0 %v1713_v17 }
 0x66f   : > { %994 = vmatprep.subr.bf16.mxu0 %v1725_v24 }
 0x672   : > { %995 = vmatpush1.bf16.msra.mxu0 %v1743_v33 }
 0x673   : > { %996 = vmatprep.subr.bf16.mxu0 %v1752_v38 }
 0x676   : > { %997 = vmatpush1.bf16.msra.mxu0 %v1762_v43 }
 0x677   : > { %998 = vmatprep.subr.bf16.mxu0 %v1783_v54 }
 0x67a   : > { %999 = vmatpush1.bf16.msra.mxu0 %v1791_v59 }
 0x67b   : > { %1378 = vmatprep.subr.bf16.mxu0 %v1445_v48 }
 0x6e5   : > { %v1047_v20 = vpop.xlane.xlu1 %1046 }
 0x6e6   : > { %vm1051_vm6 = vcmp.ge.f32.partialorder %v1043_v22, %v1047_v20 }
 0x6e7   : > { %v1053_v25 = vsel %vm1051_vm6, %v1532_v29, 16 }
 0x6e8   : > { %v1055_v34 = vsel %vm572_vm0, %v1053_v25, 2147483647 }
 0x6e9   : > { %v1050_v39 = vpop.xlane.xlu1 %1049  ;;  %v1057_v47 = vshra.s32 %v1055_v34, 16  ;;  %v1056_v57 = vand.u32 65535, %v1055_v34 }
 0x6ea   : > { %vm1052_vm7 = vcmp.ge.f32.partialorder %v1044_v19, %v1050_v39 }
 0x6eb   : > { %v1054_v53 = vsel %vm1052_vm7, %v1532_v29, 16  ;;  %v1059_v63 = vcvt.s32.f32 %v1057_v47  ;;  %v1058_v13 = vcvt.s32.f32 %v1056_v57 }
 0x6ec   : > { %v1070_v8 = vsel %vm572_vm0, %v1054_v53, 2147483647 }
 0x6ed   : > { %1060 = vmin.xlane.f32.xlu1 %v1059_v63  ;;  %v1072_v17 = vshra.s32 %v1070_v8, 16  ;;  %v1071_v7 = vand.u32 65535, %v1070_v8 }
 0x6ef   : > { %v1074_v24 = vcvt.s32.f32 %v1072_v17  ;;  %v1073_v1 = vcvt.s32.f32 %v1071_v7 }
 0x6f1   : > { %1075 = vmin.xlane.f32.xlu1 %v1074_v24 }
 0x730   : > { %v974_v33 = vpop.f32.mrb[16].mxu0 }
 0x731   : > { %v1376_v38 = vpop.f32.mrb[17].mxu0  ;;  %v981_v54 = vsub.f32 %v974_v33, %v1511_v3 }
 0x732   : > { %v977_v43 = vpop.f32.mrb[18].mxu0 }
 0x733   : > { %v982_v59 = vsub.f32 %v977_v43, %v1515_v5  ;;  %v1377_v60 = vpop.f32.mrb[19].mxu0 }
 0x735   : > { %v983_v27 = vpack.c.bf16 %v982_v59, %v981_v54 }
 0x737   : > { %1017 = vmatmul.mubr.bf16.vlgmr.msra.gmra.mrb[20].mxu0 %v983_v27 }
 0x738   : > { %1379 = vmatpush3.bf16.msra.mxu0 %v1505_v0  ;;  %1380 = vmatprep.mubr.msk.bf16.mxu0 %vm1446_vm5, %v1445_v48 }
 0x77a   : > { %v1061_v52 = vpop.xlane.xlu1 %1060 }
 0x77b   : > { %vm1062_vm8 = vcmp.eq.f32.partialorder %v1059_v63, %v1061_v52  ;;  %v1067_v2 = vcvt.f32.s32 %v1061_v52 }
 0x77c   : > { %v1063_v55 = vsel %vm1062_vm8, %v1058_v13, inf }
 0x77d   : > { %1064 = vmin.xlane.f32.xlu1 %v1063_v55  ;;  %v1068_v9 = vshll.u32 %v1067_v2, 16 }
 0x77e   : > { %v1076_v56 = vpop.xlane.xlu1 %1075 }
 0x77f   : > { %vm1077_vm9 = vcmp.eq.f32.partialorder %v1074_v24, %v1076_v56  ;;  %v1082_v0 = vcvt.f32.s32 %v1076_v56 }
 0x780   : > { %v1078_v61 = vsel %vm1077_vm9, %v1073_v1, inf }
 0x781   : > { %1079 = vmin.xlane.f32.xlu1 %v1078_v61  ;;  %v1083_v36 = vshll.u32 %v1082_v0, 16 }
 0x80a   : > { %v1018_v4 = vpop.f32.mrb[20].mxu0  ;;  %v1065_v6 = vpop.xlane.xlu1 %1064 }
 0x80b   : > { %v1019_v11 = vadd.f32 %v1018_v4, %v1829_v40  ;;  %v1066_v12 = vcvt.f32.s32 %v1065_v6  ;;  %v1020_v14 = vpop.f32.mrb[21].mxu0 }
 0x80c   : > { %v1021_v15 = vadd.f32 %v1020_v14, %v1831_v41  ;;  %v1022_v22 = vpop.f32.mrb[22].mxu0 }
 0x80d   : > { %v1027_v23 = vadd.f32 %v1019_v11, %v1906_v26  ;;  %v1069_v28 = vadd.s32 %v1068_v9, %v1066_v12  ;;  %v1023_v30 = vadd.f32 %v1022_v22, %v1833_v42  ;;  %v1024_v31 = vpop.f32.mrb[23].mxu0 }
 0x80e   : > { %v1028_v62 = vadd.f32 %v1021_v15, %v1844_v50  ;;  %v1025_v32 = vadd.f32 %v1024_v31, %v1835_v44  ;;  %v1080_v35 = vpop.xlane.xlu1 %1079 }
 0x80f   : > { %v1031_v10 = vmul.f32 0.2, %v1027_v23  ;;  %v1029_v45 = vadd.f32 %v1023_v30, %v1906_v26  ;;  %v1081_v49 = vcvt.f32.s32 %v1080_v35  ;;  %vm1085_vm5 = vcmp.eq.s32.totalorder %v1532_v29, %v1069_v28 }
 0x810   : > { %v1032_v19 = vmul.f32 0.2, %v1028_v62  ;;  %v1030_v58 = vadd.f32 %v1025_v32, %v1844_v50  ;;  %v1087_v53 = vsel %vm1085_vm5, 1.0, %v1445_v48 }
 0x811   : > { %v1035_v46 = vmax.f32 %v1027_v23, %v1031_v10  ;;  %v1033_v16 = vmul.f32 0.2, %v1029_v45  ;;  %v1084_v20 = vadd.s32 %v1083_v36, %v1081_v49 }
 0x812   : > { %v1036_v25 = vmax.f32 %v1028_v62, %v1032_v19  ;;  %v1034_v34 = vmul.f32 0.2, %v1030_v58 }
 0x813   : > { %v1039_v39 = vmax.f32 %v1929_v37, %v1035_v46  ;;  %v1037_v47 = vmax.f32 %v1029_v45, %v1033_v16  ;;  %vm1086_vm10 = vcmp.eq.s32.totalorder %v1532_v29, %v1084_v20 }
 0x814   : > { %v1040_v63 = vmax.f32 %v1935_v21, %v1036_v25  ;;  %v1038_v8 = vmax.f32 %v1030_v58, %v1034_v34  ;;  %v1088_v17 = vsel %vm1086_vm10, 1.0, %v1445_v48 }
 0x815   : > { %v1041_v24 = vmax.f32 %v1939_v18, %v1037_v47  ;;  %v1089_v33 = vpack.c.bf16 %v1088_v17, %v1087_v53 }
 0x816   : > { %v1042_v38 = vmax.f32 %v1942_v51, %v1038_v8 }
 0x817   : > { %1381 = vmatmul.mubr.msk.bf16.vlgmr.msra.gmra.mrb[24].mxu0 %vm572_vm0, %v1089_v33 }
 0x8ea   : > { %v1127_v43 = vpop.f32.mrb[24].mxu0 }
 0x8eb   : > { %v1382_v54 = vpop.f32.mrb[25].mxu0  ;;  %v1134_v59 = vsub.f32 %v1127_v43, %v1511_v3 }
 0x8ec   : > { %v1130_v37 = vpop.f32.mrb[26].mxu0 }
 0x8ed   : > { %v1135_v29 = vsub.f32 %v1130_v37, %v1515_v5  ;;  %v1383_v60 = vpop.f32.mrb[27].mxu0 }
 0x8ef   : > { %v1136_v27 = vpack.c.bf16 %v1135_v29, %v1134_v59 }
 0x8f1   : > { %1170 = vmatmul.mubr.bf16.vlgmr.msra.gmra.mrb[8].mxu1 %v1136_v27 }
 0x9c4   : > { %v1171_v21 = vpop.f32.mrb[8].mxu1 }
 0x9c5   : > { %v1172_v48 = vadd.f32 %v1171_v21, %v1829_v40  ;;  %v1173_v18 = vpop.f32.mrb[9].mxu1 }
 0x9c6   : > { %v1174_v57 = vadd.f32 %v1173_v18, %v1831_v41  ;;  %v1175_v51 = vpop.f32.mrb[10].mxu1 }
 0x9c7   : > { %v1180_v52 = vadd.f32 %v1172_v48, %v1906_v26  ;;  %v1176_v13 = vadd.f32 %v1175_v51, %v1833_v42  ;;  %v1177_v7 = vpop.f32.mrb[11].mxu1 }
 0x9c8   : > { %v1181_v3 = vadd.f32 %v1174_v57, %v1844_v50  ;;  %v1178_v5 = vadd.f32 %v1177_v7, %v1835_v44 }
 0x9c9   : > { %v1184_v55 = vmul.f32 0.2, %v1180_v52  ;;  %v1182_v56 = vadd.f32 %v1176_v13, %v1906_v26 }
 0x9ca   : > { %v1185_v1 = vmul.f32 0.2, %v1181_v3  ;;  %v1183_v61 = vadd.f32 %v1178_v5, %v1844_v50 }
 0x9cb   : > { %v1188_v40 = vmax.f32 %v1180_v52, %v1184_v55  ;;  %v1186_v2 = vmul.f32 0.2, %v1182_v56 }
 0x9cc   : > { %v1189_v41 = vmax.f32 %v1181_v3, %v1185_v1  ;;  %v1187_v4 = vmul.f32 0.2, %v1183_v61 }
 0x9cd   : > { %v1192_v6 = vmax.f32 %v1039_v39, %v1188_v40  ;;  %v1190_v9 = vmax.f32 %v1182_v56, %v1186_v2 }
 0x9ce   : > { %v1193_v0 = vmax.f32 %v1040_v63, %v1189_v41  ;;  %v1191_v42 = vmax.f32 %v1183_v61, %v1187_v4 }
 0x9cf   : > { %v1194_v44 = vmax.f32 %v1041_v24, %v1190_v9 }
 0x9d0   : > { %v1339_v11 = vpack.c.bf16 %v1193_v0, %v1192_v6  ;;  %v1195_v12 = vmax.f32 %v1042_v38, %v1191_v42 }
 0x9d2   : > { %1208 = vst [vmem:[%s284_s11] sm:$0xff] %v1339_v11  ;;  %v1340_v26 = vpack.c.bf16 %v1195_v12, %v1194_v44 }
 0x9d4   : > { %1209 = vst [vmem:[%s284_s11 + $0x8] sm:$0xff] %v1340_v26 }
 0x9d5 PF: > { %s15_s20 = sadd.s32 1, %s1443_s20   ;;  %s2017_s18 = smov %s1439_s19 }
 0x9d6   : > { %p12_p5 = scmp.ge.s32.totalorder %s15_s20, 4   ;;  %s2018_s19 = smov %s2020_s21 }
 0x9d8   :  { %14 = sbr.rel (!%p12_p5) target bundleno = 2 (0x2), region = 73 }

// kernel: dgcnn_forward.9
= control target key start
LH: loop header
LB: loop body
LE: loop exit
PB: predicated region body
PF: predicated region fallthrough
CT: control target
= control target key end

     0   :  { %s1013_s30 = smov 0   ;;  %s1283_s0 = inlined_call_operand.vmem [shape: bf16[2,16,64], index: 0, kind: input, shape index: {}]   ;;  %s1284_s1 = inlined_call_operand.vmem [shape: bf16[2,16,64], index: 1, kind: input, shape index: {}]   ;;  %s1285_s2 = inlined_call_operand.vmem [shape: bf16[2,16,128], index: 2, kind: input, shape index: {}]   ;;  %s1286_s3 = inlined_call_operand.vmem [shape: bf16[2,16,256], index: 3, kind: input, shape index: {}]   ;;  %s1287_s4 = inlined_call_operand.vmem [shape: f32[64,32], index: 4, kind: input, shape index: {}]   ;;  %s1288_s5 = inlined_call_operand.vmem [shape: f32[64,32], index: 5, kind: input, shape index: {}]   ;;  %s1289_s6 = inlined_call_operand.vmem [shape: f32[128,32], index: 6, kind: input, shape index: {}]   ;;  %s1290_s7 = inlined_call_operand.vmem [shape: f32[256,32], index: 7, kind: input, shape index: {}]   ;;  %s1291_s8 = inlined_call_operand.vmem [shape: f32[1,32], index: 8, kind: input, shape index: {}]   ;;  %s1292_s9 = inlined_call_operand.vmem [shape: f32[2,2,32], index: 9, kind: output, shape index: {}]  }
   0x1 LB: > { %s824_s10 = sadd.s32 4294967295, %s959_s30   ;;  %p828_p0 = scmp.ge.s32.totalorder %s959_s30, 1  ;;  %s959_s30 = sphi %s1013_s30, %s19_s30  }
   0x2   : > { %p317_p1 = scmp.lt.s32.totalorder %s959_s30, 3 }
   0x4   : > { %p318_p2 = pnand %p828_p0, %p317_p1 }
   0x5   : > { %v408_v0 = vld [vmem:[%s1288_s5] sm:$0xff] (!%p318_p2)  ;;  %v409_v1 = vld [vmem:[%s1288_s5 + $0x8] sm:$0xff] (!%p318_p2)  ;;  %p1030_p3 = scmp.lt.s32.totalorder (!%p318_p2), %s824_s10, 1  ;;  %v961_v3 = vmov (!%p318_p2), 0.0   ;;  %v410_v6 = vld [vmem:[%s1288_s5 + $0x10] sm:$0xff] (!%p318_p2)  ;;  %vm962_vm0 = vmmov (!%p318_p2), 0  }
   0x6   : > { %321 = sbr.rel (%p318_p2) target bundleno = 300 (0x12c), region = 56  ;;  %v394_v2 = vld [vmem:[%s1287_s4] sm:$0xff] (!%p318_p2)  ;;  %893 = vmatprep.subr.bf16.mxu0 (!%p318_p2), %v961_v3  ;;  %905 = vmatprep.subr.bf16.mxu1 (!%p318_p2), %v961_v3  ;;  %v416_v4 = vpack.c.bf16 (!%p318_p2), %v409_v1, %v408_v0  ;;  %v395_v5 = vld [vmem:[%s1287_s4 + $0x8] sm:$0xff] (!%p318_p2)  ;;  %v411_v7 = vld [vmem:[%s1288_s5 + $0x18] sm:$0xff] (!%p318_p2)  ;;  %vm425_vm1 = vcmask (!%p318_p2), 523264   ;;  %vm710_vm2 = vcmask (!%p318_p2), 261120  }
   0x7   : > { %v402_v8 = vpack.c.bf16 (!%p318_p2), %v395_v5, %v394_v2  ;;  %v396_v9 = vld [vmem:[%s1287_s4 + $0x10] sm:$0xff] (!%p318_p2)  ;;  %v397_v10 = vld [vmem:[%s1287_s4 + $0x18] sm:$0xff] (!%p318_p2)  ;;  %901 = vmatprep.mubr.msk.bf16.mxu0 (!%p318_p2), %vm962_vm0, %v961_v3  ;;  %913 = vmatprep.mubr.msk.bf16.mxu1 (!%p318_p2), %vm962_vm0, %v961_v3  ;;  %v417_v11 = vpack.c.bf16 (!%p318_p2), %v411_v7, %v410_v6  ;;  %v412_v13 = vld [vmem:[%s1288_s5 + $0x20] sm:$0xff] (!%p318_p2)  ;;  %vm731_vm3 = vcmask (!%p318_p2), 1040384   ;;  %vm733_vm4 = vcmask (!%p318_p2), 254976  }
   0x8   : > { %894 = vmatpush3.bf16.msra.mxu0 (!%p318_p2), %v416_v4  ;;  %v403_v12 = vpack.c.bf16 (!%p318_p2), %v397_v10, %v396_v9  ;;  %v413_v14 = vld [vmem:[%s1288_s5 + $0x28] sm:$0xff] (!%p318_p2)  ;;  %v398_v15 = vld [vmem:[%s1287_s4 + $0x20] sm:$0xff] (!%p318_p2)  ;;  %v414_v19 = vld [vmem:[%s1288_s5 + $0x30] sm:$0xff] (!%p318_p2) }
   0x9   : > { %906 = vmatpush3.bf16.msra.mxu1 (!%p318_p2), %v402_v8  ;;  %895 = vmatprep.subr.bf16.mxu0 (!%p318_p2), %v961_v3  ;;  %v399_v16 = vld [vmem:[%s1287_s4 + $0x28] sm:$0xff] (!%p318_p2)  ;;  %v418_v17 = vpack.c.bf16 (!%p318_p2), %v413_v14, %v412_v13  ;;  %v415_v20 = vld [vmem:[%s1288_s5 + $0x38] sm:$0xff] (!%p318_p2)  ;;  %v400_v21 = vld [vmem:[%s1287_s4 + $0x30] sm:$0xff] (!%p318_p2) }
   0xa   : > { %907 = vmatprep.subr.bf16.mxu1 (!%p318_p2), %v961_v3  ;;  %v404_v18 = vpack.c.bf16 (!%p318_p2), %v399_v16, %v398_v15  ;;  %v401_v22 = vld [vmem:[%s1287_s4 + $0x38] sm:$0xff] (!%p318_p2)  ;;  %v612_v23 = vld [vmem:[%s1290_s7 + $0x80] sm:$0xff] (!%p318_p2)  ;;  %v613_v24 = vld [vmem:[%s1290_s7 + $0x88] sm:$0xff] (!%p318_p2)  ;;  %v419_v25 = vpack.c.bf16 (!%p318_p2), %v415_v20, %v414_v19 }
   0xb   : > { %v405_v26 = vpack.c.bf16 (!%p318_p2), %v401_v22, %v400_v21  ;;  %v521_v27 = vld [vmem:[%s1289_s6] sm:$0xff] (!%p318_p2)  ;;  %v522_v28 = vld [vmem:[%s1289_s6 + $0x8] sm:$0xff] (!%p318_p2)  ;;  %v636_v29 = vpack.c.bf16 (!%p318_p2), %v613_v24, %v612_v23  ;;  %v614_v33 = vld [vmem:[%s1290_s7 + $0x90] sm:$0xff] (!%p318_p2) }
   0xc   : > { %896 = vmatpush3.bf16.msra.mxu0 (!%p318_p2), %v417_v11  ;;  %v596_v30 = vld [vmem:[%s1290_s7] sm:$0xff] (!%p318_p2)  ;;  %v597_v31 = vld [vmem:[%s1290_s7 + $0x8] sm:$0xff] (!%p318_p2)  ;;  %v615_v34 = vld [vmem:[%s1290_s7 + $0x98] sm:$0xff] (!%p318_p2)  ;;  %v537_v36 = vpack.c.bf16 (!%p318_p2), %v522_v28, %v521_v27 }
   0xd   : > { %s1295_s10 = smov (!%p1030_p3, %s824_s10), 1  ;;  %908 = vmatpush3.bf16.msra.mxu1 %v403_v12  ;;  %897 = vmatprep.subr.bf16.mxu0 %v961_v3  ;;  %v628_v37 = vpack.c.bf16 %v597_v31, %v596_v30  ;;  %v523_v38 = vld [vmem:[%s1289_s6 + $0x10] sm:$0xff]  ;;  %v524_v39 = vld [vmem:[%s1289_s6 + $0x18] sm:$0xff]  ;;  %v637_v40 = vpack.c.bf16 %v615_v34, %v614_v33  ;;  %v616_v43 = vld [vmem:[%s1290_s7 + $0xa0] sm:$0xff] }
   0xe   : > { %s1067_s13 = sshll.u32 %s1295_s10, 3  ;;  %909 = vmatprep.subr.bf16.mxu1 %v961_v3  ;;  %v598_v41 = vld [vmem:[%s1290_s7 + $0x10] sm:$0xff]  ;;  %v599_v42 = vld [vmem:[%s1290_s7 + $0x18] sm:$0xff]  ;;  %v617_v44 = vld [vmem:[%s1290_s7 + $0xa8] sm:$0xff]  ;;  %s851_s26 = sshll.u32 %s1295_s10, 4  ;;  %v538_v45 = vpack.c.bf16 %v524_v39, %v523_v38 }
   0xf   : > { %s376_s20 = scalar_lea.vmem %s1284_s1, %s1067_s13  ;;  %s371_s23 = scalar_lea.vmem %s1283_s0, %s1067_s13  ;;  %v629_v46 = vpack.c.bf16 %v599_v42, %v598_v41  ;;  %v525_v47 = vld [vmem:[%s1289_s6 + $0x20] sm:$0xff]  ;;  %v526_v48 = vld [vmem:[%s1289_s6 + $0x28] sm:$0xff]  ;;  %v638_v49 = vpack.c.bf16 %v617_v44, %v616_v43  ;;  %v618_v52 = vld [vmem:[%s1290_s7 + $0xb0] sm:$0xff] }
  0x10   : > { %898 = vmatpush3.bf16.msra.mxu0 %v418_v17  ;;  %v947_v32 = vld [vmem:[%s376_s20] sm:$0xff]   ;;  %v601_v51 = vld [vmem:[%s1290_s7 + $0x28] sm:$0xff]  ;;  %s1164_s18 = scalar_lea.vmem %s1286_s3, %s851_s26  ;;  %v619_v53 = vld [vmem:[%s1290_s7 + $0xb8] sm:$0xff]  ;;  %v539_v54 = vpack.c.bf16 %v526_v48, %v525_v47  ;;  %s381_s26 = scalar_lea.vmem %s1285_s2, %s1067_s13 }
  0x11   : > { %910 = vmatpush3.bf16.msra.mxu1 %v404_v18  ;;  %899 = vmatprep.subr.bf16.mxu0 %v961_v3  ;;  %v948_v35 = vld [vmem:[%s371_s23] sm:$0xff]   ;;  %v527_v55 = vld [vmem:[%s1289_s6 + $0x30] sm:$0xff]  ;;  %v528_v57 = vld [vmem:[%s1289_s6 + $0x38] sm:$0xff]  ;;  %v639_v59 = vpack.c.bf16 %v619_v53, %v618_v52 }
  0x12   : > { %911 = vmatprep.subr.bf16.mxu1 %v961_v3  ;;  %v600_v50 = vld [vmem:[%s1290_s7 + $0x20] sm:$0xff]  ;;  %v602_v60 = vld [vmem:[%s1290_s7 + $0x30] sm:$0xff]  ;;  %v603_v61 = vld [vmem:[%s1290_s7 + $0x38] sm:$0xff]  ;;  %v540_v0 = vpack.c.bf16 %v528_v57, %v527_v55 }
  0x13   : > { %v630_v56 = vpack.c.bf16 %v601_v51, %v600_v50  ;;  %v951_v58 = vld [vmem:[%s1164_s18 + $0x4] ss:$8 sps:$4 sm:$0xff]   ;;  %v631_v1 = vpack.c.bf16 %v603_v61, %v602_v60  ;;  %v622_v8 = vld [vmem:[%s1290_s7 + $0xd0] sm:$0xff]  ;;  %v623_v9 = vld [vmem:[%s1290_s7 + $0xd8] sm:$0xff] }
  0x14   : > { %900 = vmatpush3.bf16.msra.mxu0 %v419_v25  ;;  %v620_v62 = vld [vmem:[%s1290_s7 + $0xc0] sm:$0xff]  ;;  %v621_v63 = vld [vmem:[%s1290_s7 + $0xc8] sm:$0xff]  ;;  %v531_v12 = vld [vmem:[%s1289_s6 + $0x50] sm:$0xff]  ;;  %v641_v14 = vpack.c.bf16 %v623_v9, %v622_v8 }
  0x15   : > { %912 = vmatpush3.bf16.msra.mxu1 %v405_v26  ;;  %917 = vmatprep.subr.bf16.mxu0 %v961_v3  ;;  %v529_v2 = vld [vmem:[%s1289_s6 + $0x40] sm:$0xff]  ;;  %v530_v4 = vld [vmem:[%s1289_s6 + $0x48] sm:$0xff]  ;;  %v640_v5 = vpack.c.bf16 %v621_v63, %v620_v62  ;;  %v532_v13 = vld [vmem:[%s1289_s6 + $0x58] sm:$0xff] }
  0x16   : > { %871 = vmatprep.subr.bf16.mxu1 %v636_v29  ;;  %v604_v6 = vld [vmem:[%s1290_s7 + $0x40] sm:$0xff]  ;;  %v605_v7 = vld [vmem:[%s1290_s7 + $0x48] sm:$0xff]  ;;  %v541_v10 = vpack.c.bf16 %v530_v4, %v529_v2  ;;  %v606_v15 = vld [vmem:[%s1290_s7 + $0x50] sm:$0xff]  ;;  %v542_v19 = vpack.c.bf16 %v532_v13, %v531_v12 }
  0x17   : > { %902 = vmatmul.mubr.msk.bf16.vlgmr.msra.gmra.mrb[0].mxu0 %vm425_vm1, %v947_v32  ;;  %v632_v11 = vpack.c.bf16 %v605_v7, %v604_v6  ;;  %v607_v16 = vld [vmem:[%s1290_s7 + $0x58] sm:$0xff]  ;;  %v624_v17 = vld [vmem:[%s1290_s7 + $0xe0] sm:$0xff]  ;;  %v625_v18 = vld [vmem:[%s1290_s7 + $0xe8] sm:$0xff] }
  0x18   : > { %914 = vmatmul.mubr.msk.bf16.vlgmr.msra.gmra.mrb[0].mxu1 %vm425_vm1, %v948_v35  ;;  %918 = vmatpush3.bf16.msra.mxu0 %v537_v36  ;;  %v633_v20 = vpack.c.bf16 %v607_v16, %v606_v15  ;;  %v533_v21 = vld [vmem:[%s1289_s6 + $0x60] sm:$0xff]  ;;  %v534_v22 = vld [vmem:[%s1289_s6 + $0x68] sm:$0xff]  ;;  %v642_v23 = vpack.c.bf16 %v625_v18, %v624_v17  ;;  %v626_v26 = vld [vmem:[%s1290_s7 + $0xf0] sm:$0xff] }
  0x19   : > { %872 = vmatpush3.bf16.msra.mxu1 %v628_v37  ;;  %919 = vmatprep.subr.bf16.mxu0 %v961_v3  ;;  %v608_v24 = vld [vmem:[%s1290_s7 + $0x60] sm:$0xff]  ;;  %v609_v25 = vld [vmem:[%s1290_s7 + $0x68] sm:$0xff]  ;;  %v627_v27 = vld [vmem:[%s1290_s7 + $0xf8] sm:$0xff]  ;;  %v543_v28 = vpack.c.bf16 %v534_v22, %v533_v21 }
  0x1a   : > { %873 = vmatprep.subr.bf16.mxu1 %v637_v40  ;;  %933 = vmatprep.mubr.msk.bf16.mxu0 %vm962_vm0, %v961_v3  ;;  %v634_v29 = vpack.c.bf16 %v609_v25, %v608_v24  ;;  %v535_v30 = vld [vmem:[%s1289_s6 + $0x70] sm:$0xff]  ;;  %v536_v31 = vld [vmem:[%s1289_s6 + $0x78] sm:$0xff]  ;;  %v643_v32 = vpack.c.bf16 %v627_v27, %v626_v26  ;;  %v952_v37 = vld [vmem:[%s381_s26] sm:$0xff]   ;;  %s837_s26 = sshll.u32 %s1295_s10, 1 }
  0x1b   : > { %686 = vmatprep.mubr.bf16.mxu1 %v951_v58  ;;  %v610_v33 = vld [vmem:[%s1290_s7 + $0x70] sm:$0xff]  ;;  %v611_v34 = vld [vmem:[%s1290_s7 + $0x78] sm:$0xff]  ;;  %v544_v35 = vpack.c.bf16 %v536_v31, %v535_v30  ;;  %v949_v38 = vld [vmem:[%s1164_s18] ss:$8 sps:$4 sm:$0xff]   ;;  %s390_s21 = scalar_lea.vmem %s1292_s9, %s837_s26 }
  0x1c   : > { %920 = vmatpush3.bf16.msra.mxu0 %v538_v45  ;;  %v635_v36 = vpack.c.bf16 %v611_v34, %v610_v33  ;;  %v845_v58 = vld [vmem:[%s1291_s8] ss:$0 sm:$0xff] }
  0x1d   : > { %874 = vmatpush3.bf16.msra.mxu1 %v629_v46  ;;  %921 = vmatprep.subr.bf16.mxu0 %v961_v3 }
  0x1e   : > { %875 = vmatprep.subr.bf16.mxu1 %v638_v49 }
  0x20   : > { %922 = vmatpush3.bf16.msra.mxu0 %v539_v54 }
  0x21   : > { %876 = vmatpush3.bf16.msra.mxu1 %v630_v56  ;;  %923 = vmatprep.subr.bf16.mxu0 %v961_v3 }
  0x22   : > { %877 = vmatprep.subr.bf16.mxu1 %v639_v59 }
  0x24   : > { %924 = vmatpush3.bf16.msra.mxu0 %v540_v0 }
  0x25   : > { %878 = vmatpush3.bf16.msra.mxu1 %v631_v1  ;;  %925 = vmatprep.subr.bf16.mxu0 %v961_v3 }
  0x26   : > { %879 = vmatprep.subr.bf16.mxu1 %v640_v5 }
  0x28   : > { %926 = vmatpush3.bf16.msra.mxu0 %v541_v10 }
  0x29   : > { %880 = vmatpush3.bf16.msra.mxu1 %v632_v11  ;;  %927 = vmatprep.subr.bf16.mxu0 %v961_v3 }
  0x2a   : > { %881 = vmatprep.subr.bf16.mxu1 %v641_v14 }
  0x2c   : > { %928 = vmatpush3.bf16.msra.mxu0 %v542_v19 }
  0x2d   : > { %882 = vmatpush3.bf16.msra.mxu1 %v633_v20  ;;  %929 = vmatprep.subr.bf16.mxu0 %v961_v3 }
  0x2e   : > { %883 = vmatprep.subr.bf16.mxu1 %v642_v23 }
  0x30   : > { %930 = vmatpush3.bf16.msra.mxu0 %v543_v28 }
  0x31   : > { %884 = vmatpush3.bf16.msra.mxu1 %v634_v29  ;;  %931 = vmatprep.subr.bf16.mxu0 %v961_v3 }
  0x32   : > { %885 = vmatprep.subr.bf16.mxu1 %v643_v32 }
  0x34   : > { %932 = vmatpush3.bf16.msra.mxu0 %v544_v35 }
  0x35   : > { %886 = vmatpush3.bf16.msra.mxu1 %v635_v36 }
  0x37   : > { %934 = vmatmul.mubr.bf16.vlgmr.msra.gmra.mrb[4].mxu0 %v952_v37 }
  0x38   : > { %687 = vmatmul.mubr.bf16.vlgmr.msra.gmra.mrb[4].mxu1 %v949_v38 }
  0xea   : > { %v463_v39 = vpop.f32.mrb[0].mxu0 }
  0xeb   : > { %v512_v40 = vpop.f32.mrb[0].mxu1  ;;  %v903_v41 = vpop.f32.mrb[1].mxu0 }
  0xec   : > { %v513_v42 = vadd.f32 %v512_v40, %v463_v39  ;;  %v915_v43 = vpop.f32.mrb[1].mxu1  ;;  %v466_v44 = vpop.f32.mrb[2].mxu0 }
  0xed   : > { %v515_v45 = vpop.f32.mrb[2].mxu1  ;;  %v904_v3 = vpop.f32.mrb[3].mxu0 }
  0xee   : > { %v516_v46 = vadd.f32 %v515_v45, %v466_v44  ;;  %v916_v47 = vpop.f32.mrb[3].mxu1 }
 0x10a   : > { %v585_v48 = vpop.f32.mrb[4].mxu0 }
 0x10b   : > { %v592_v49 = vadd.f32 %v585_v48, %v513_v42  ;;  %v887_v50 = vpop.f32.mrb[4].mxu1  ;;  %v935_v51 = vpop.f32.mrb[5].mxu0 }
 0x10c   : > { %v888_v52 = vpop.f32.mrb[5].mxu1  ;;  %v588_v53 = vpop.f32.mrb[6].mxu0 }
 0x10d   : > { %v889_v54 = vadd.f32 %v888_v52, %v887_v50  ;;  %v593_v55 = vadd.f32 %v588_v53, %v516_v46  ;;  %v890_v56 = vpop.f32.mrb[6].mxu1  ;;  %v936_v57 = vpop.f32.mrb[7].mxu0 }
 0x10e   : > { %v891_v59 = vpop.f32.mrb[7].mxu1 }
 0x10f   : > { %v695_v60 = vadd.f32 %v889_v54, %v592_v49  ;;  %v892_v61 = vadd.f32 %v891_v59, %v890_v56 }
 0x111   : > { %v704_v62 = vadd.f32 %v845_v58, %v695_v60  ;;  %v696_v63 = vadd.f32 %v892_v61, %v593_v55 }
 0x113   : > { %v706_v0 = vmul.f32 0.2, %v704_v62  ;;  %v705_v1 = vadd.f32 %v845_v58, %v696_v63 }
 0x115   : > { %v708_v2 = vmax.f32 %v704_v62, %v706_v0  ;;  %v707_v4 = vmul.f32 0.2, %v705_v1 }
 0x117   : > { %v709_v5 = vmax.f32 %v705_v1, %v707_v4  ;;  %v711_v6 = vsel %vm710_vm2, %v708_v2, -inf  ;;  %v720_v7 = vsel %vm710_vm2, %v708_v2, 0.0 }
 0x119   : > { %v712_v8 = vsel %vm710_vm2, %v709_v5, -inf  ;;  %v721_v9 = vsel %vm710_vm2, %v709_v5, 0.0 }
 0x11a   : > { %v713_v10 = vmax.f32 %v711_v6, %v712_v8  ;;  %v722_v11 = vadd.f32 %v721_v9, %v720_v7 }
 0x11c   : > { %v714_v12 = vrot.slane %v713_v10, 4  ;;  %v723_v13 = vrot.slane %v722_v11, 4 }
 0x11e   : > { %v715_v14 = vmax.f32 %v713_v10, %v714_v12  ;;  %v724_v15 = vadd.f32 %v723_v13, %v722_v11 }
 0x120   : > { %v716_v16 = vrot.slane %v715_v14, 2  ;;  %v725_v17 = vrot.slane %v724_v15, 2 }
 0x122   : > { %v717_v18 = vmax.f32 %v715_v14, %v716_v16  ;;  %v726_v19 = vadd.f32 %v725_v17, %v724_v15 }
 0x124   : > { %v718_v20 = vrot.slane %v717_v18, 1  ;;  %v727_v21 = vrot.slane %v726_v19, 1 }
 0x126   : > { %v728_v22 = vadd.f32 %v727_v21, %v726_v19  ;;  %v719_v23 = vmax.f32 %v717_v18, %v718_v20 }
 0x128   : > { %v730_v24 = vmul.f32 0.0625, %v728_v22 }
 0x12a   : > { %v732_v25 = vsel %vm731_vm3, %v719_v23, %v730_v24 }
 0x12b   : > { %734 = vst.msk [vmem:[%s390_s21] sm:$0x3] %vm733_vm4, %v732_v25 }
 0x12c PF: > { %s19_s30 = sadd.s32 1, %s959_s30  }
 0x12d   : > { %p16_p4 = scmp.ge.s32.totalorder %s19_s30, 4  }
 0x12f   :  { %18 = sbr.rel (!%p16_p4) target bundleno = 1 (0x1), region = 95 }

</bundles_post_ra>
